<compile_context>
chip_gen: v5e
topology: v5e:2x2
jax: 0.10.0
libtpu: 0.0.40
codegen_flags: <defaults>
</compile_context>

<pallas_src>
import functools

import jax
import jax.numpy as jnp
from jax import lax
from jax.experimental import pallas as pl
from jax.experimental.pallas import tpu as pltpu


# -----------------------------------------------------------------------------
# Pallas kernel: whole LSTM + FC forward in ONE invocation.
# -----------------------------------------------------------------------------
def _decoder_lstm_kernel(x_ref, wih_ref, whh_ref, b_ref, wfc_ref, bfc_ref,
                         out_ref, gx_ref, hs_ref, *, T, B):
    H = whh_ref.shape[0]

    # ---- Hoisted input projection for ALL timesteps at once -----------------
    # (T*B, E) @ (E, 4H) -> (T*B, 4H); fused bias added once (broadcast hoisted
    # out of the recurrent loop).
    gx_ref[...] = (
        jnp.dot(x_ref[...], wih_ref[...], preferred_element_type=jnp.float32)
        + b_ref[...]
    )

    # ---- Sequential LSTM recurrence (only h @ W_hh^T on the serial path) ----
    # T is tiny and static -> full unroll (== lax.fori_loop(..., unroll=True)).
    h = jnp.zeros((B, H), jnp.float32)
    c = jnp.zeros((B, H), jnp.float32)
    for t in range(T):
        row = pl.ds(t * B, B)  # static, sublane-tile-aligned (B == 8)
        gates = gx_ref[row, :] + jnp.dot(
            h.astype(whh_ref.dtype), whh_ref[...],
            preferred_element_type=jnp.float32)

        # PyTorch gate order: i, f, g, o
        i_g = jax.nn.sigmoid(gates[:, 0 * H:1 * H])
        f_g = jax.nn.sigmoid(gates[:, 1 * H:2 * H])
        g_g = jnp.tanh(gates[:, 2 * H:3 * H])
        o_g = jax.nn.sigmoid(gates[:, 3 * H:4 * H])

        c = f_g * c + i_g * g_g
        h = o_g * jnp.tanh(c)
        hs_ref[row, :] = h

    # ---- Hoisted output projection over all timesteps ------------------------
    # (T*B, H) @ (H, V) -> (T*B, V), lane-dense output block.
    out_ref[...] = (
        jnp.dot(hs_ref[...].astype(wfc_ref.dtype), wfc_ref[...],
                preferred_element_type=jnp.float32)
        + bfc_ref[...]
    )


def decoder_lstm_fc_pallas(x2d, w_ih_t, w_hh_t, bias, w_fc_t, b_fc, *, T, B):
    """x2d: (T*B, E) bf16 (time-major, flattened).  Returns (T*B, V) f32."""
    TB, E = x2d.shape
    H = w_hh_t.shape[0]
    V = w_fc_t.shape[1]
    assert TB == T * B

    kernel = functools.partial(_decoder_lstm_kernel, T=T, B=B)

    return pl.pallas_call(
        kernel,
        out_shape=jax.ShapeDtypeStruct((TB, V), jnp.float32),
        grid_spec=pltpu.PrefetchScalarGridSpec(
            num_scalar_prefetch=0,
            grid=(1,),  # single grid point: whole recurrence in one invocation
            in_specs=[
                pl.BlockSpec((TB, E), lambda i: (0, 0)),       # x (all steps)
                pl.BlockSpec((E, 4 * H), lambda i: (0, 0)),    # W_ih^T (bf16)
                pl.BlockSpec((H, 4 * H), lambda i: (0, 0)),    # W_hh^T (bf16)
                pl.BlockSpec((1, 4 * H), lambda i: (0, 0)),    # b_ih + b_hh (f32)
                pl.BlockSpec((H, V), lambda i: (0, 0)),        # W_fc^T (bf16)
                pl.BlockSpec((1, V), lambda i: (0, 0)),        # b_fc (f32)
            ],
            out_specs=pl.BlockSpec((TB, V), lambda i: (0, 0)),
            scratch_shapes=[
                pltpu.VMEM((TB, 4 * H), jnp.float32),   # precomputed x-gates
                pltpu.VMEM((TB, H), jnp.float32),       # all h_t for the FC
            ],
        ),
        compiler_params=pltpu.CompilerParams(
            dimension_semantics=("arbitrary",),
        ),
    )(x2d, w_ih_t, w_hh_t, bias, w_fc_t, b_fc)


# -----------------------------------------------------------------------------
# DecoderRNN forward (glue in plain JAX + Pallas hot path)
# -----------------------------------------------------------------------------
def decoder_rnn_forward(params, features, captions):
    """features: (B, E) f32, captions: (B, L) int32 -> logits (B, L, V) f32."""
    # embedding lookup of captions[:, :-1]  (gather done in plain JAX)
    embed = jnp.take(params["emb"], captions[:, :-1], axis=0)        # (B, L-1, E)
    # prepend image features as the first "token"
    x = jnp.concatenate([features[:, None, :], embed], axis=1)       # (B, T, E)
    B, T, E = x.shape
    H = params["w_hh"].shape[1]
    V = params["w_fc"].shape[0]

    # time-major, flattened for the kernel; bf16 inputs for the MXU fast path
    x2d = jnp.transpose(x, (1, 0, 2)).reshape(T * B, E).astype(jnp.bfloat16)

    logits2d = decoder_lstm_fc_pallas(
        x2d,
        params["w_ih"].T.astype(jnp.bfloat16),                # (E, 4H)
        params["w_hh"].T.astype(jnp.bfloat16),                # (H, 4H)
        (params["b_ih"] + params["b_hh"])[None].astype(jnp.float32),  # (1, 4H)
        params["w_fc"].T.astype(jnp.bfloat16),                # (H, V)
        params["b_fc"][None].astype(jnp.float32),             # (1, V)
        T=T, B=B,
    )
    return jnp.transpose(logits2d.reshape(T, B, V), (1, 0, 2))       # (B, T, V)


# -----------------------------------------------------------------------------
# Pure-JAX reference (lax.scan LSTM, f32) for correctness checking
# -----------------------------------------------------------------------------
def decoder_rnn_reference(params, features, captions):
    embed = jnp.take(params["emb"], captions[:, :-1], axis=0)
    x = jnp.concatenate([features[:, None, :], embed], axis=1)       # (B, T, E)
    B = x.shape[0]
    H = params["w_hh"].shape[1]

    def step(carry, x_t):
        h, c = carry
        gates = x_t @ params["w_ih"].T + h @ params["w_hh"].T \
                + params["b_ih"] + params["b_hh"]
        i, f, g, o = jnp.split(gates, 4, axis=-1)
        c = jax.nn.sigmoid(f) * c + jax.nn.sigmoid(i) * jnp.tanh(g)
        h = jax.nn.sigmoid(o) * jnp.tanh(c)
        return (h, c), h

    init = (jnp.zeros((B, H), jnp.float32), jnp.zeros((B, H), jnp.float32))
    _, hs = lax.scan(step, init, jnp.transpose(x, (1, 0, 2)))        # (T, B, H)
    hs = jnp.transpose(hs, (1, 0, 2))                                 # (B, T, H)
    return hs @ params["w_fc"].T + params["b_fc"]


# -----------------------------------------------------------------------------
# Deterministic parameter init (shapes from DecoderRNN.__init__)
# -----------------------------------------------------------------------------
def make_params(key, embed_size, hidden_size, vocab_size):
    ks = jax.random.split(key, 7)
    s = 0.05
    return {
        "emb":  s * jax.random.normal(ks[0], (vocab_size, embed_size), jnp.float32),
        "w_ih": s * jax.random.normal(ks[1], (4 * hidden_size, embed_size), jnp.float32),
        "w_hh": s * jax.random.normal(ks[2], (4 * hidden_size, hidden_size), jnp.float32),
        "b_ih": s * jax.random.normal(ks[3], (4 * hidden_size,), jnp.float32),
        "b_hh": s * jax.random.normal(ks[4], (4 * hidden_size,), jnp.float32),
        "w_fc": s * jax.random.normal(ks[5], (vocab_size, hidden_size), jnp.float32),
        "b_fc": s * jax.random.normal(ks[6], (vocab_size,), jnp.float32),
    }


if __name__ == "__main__":
    # small, TPU-tile-friendly shapes (B>=128 would be needed to approach MXU
    # roofline; kept small per task requirements)
    B, E, H, V, L = 8, 128, 128, 256, 9   # T = L = 9 (features + 8 embedded tokens)

    key = jax.random.PRNGKey(0)
    kp, kf, kc = jax.random.split(key, 3)
    params = make_params(kp, E, H, V)
    features = jax.random.normal(kf, (B, E), jnp.float32)
    captions = jax.random.randint(kc, (B, L), 0, V, jnp.int32)

    out = jax.jit(decoder_rnn_forward)(params, features, captions)
    out = jax.block_until_ready(out)

    ref = decoder_rnn_reference(params, features, captions)
    assert out.shape == (B, L, V), out.shape
    # bf16 weights/activations on the MXU (f32 accumulation) -> looser tolerance
    max_err = float(jnp.abs(out - ref).max())
    assert jnp.allclose(out, ref, atol=2e-2, rtol=2e-2), max_err

    # TODO(synk): DecoderRNN.sample() (autoregressive greedy decoding) is a
    # host-driven loop with data-dependent token feedback; not implemented here.

    print("KERNEL_OK")
</pallas_src>

<mosaic_0001>
module attributes {stable_mosaic.version = 11 : i64} {
  func.func @_decoder_lstm_kernel(%arg0: i32, %arg1: memref<72x128xbf16, #tpu.memory_space<vmem>>, %arg2: memref<128x512xbf16, #tpu.memory_space<vmem>>, %arg3: memref<128x512xbf16, #tpu.memory_space<vmem>>, %arg4: memref<1x512xf32, #tpu.memory_space<vmem>>, %arg5: memref<128x256xbf16, #tpu.memory_space<vmem>>, %arg6: memref<1x256xf32, #tpu.memory_space<vmem>>, %arg7: memref<72x256xf32, #tpu.memory_space<vmem>>, %arg8: memref<72x512xf32, #tpu.memory_space<vmem>>, %arg9: memref<72x128xf32, #tpu.memory_space<vmem>>) attributes {dimension_semantics = [#tpu.dimension_semantics<arbitrary>], iteration_bounds = array<i64: 1>, scalar_prefetch = 0 : i64, scratch_operands = 2 : i64, tpu.core_type = #tpu.core_type<tc>, window_params = [{pipeline_mode = #tpu.pipeline_mode<synchronous>, transform_indices = @transform_0, window_bounds = array<i64: 72, 128>}, {pipeline_mode = #tpu.pipeline_mode<synchronous>, transform_indices = @transform_1, window_bounds = array<i64: 128, 512>}, {pipeline_mode = #tpu.pipeline_mode<synchronous>, transform_indices = @transform_2, window_bounds = array<i64: 128, 512>}, {pipeline_mode = #tpu.pipeline_mode<synchronous>, transform_indices = @transform_3, window_bounds = array<i64: 1, 512>}, {pipeline_mode = #tpu.pipeline_mode<synchronous>, transform_indices = @transform_4, window_bounds = array<i64: 128, 256>}, {pipeline_mode = #tpu.pipeline_mode<synchronous>, transform_indices = @transform_5, window_bounds = array<i64: 1, 256>}, {pipeline_mode = #tpu.pipeline_mode<synchronous>, transform_indices = @transform_6, window_bounds = array<i64: 72, 256>}]} {
    %c0 = arith.constant 0 : index
    %c0_0 = arith.constant 0 : index
    %0 = vector.load %arg1[%c0, %c0_0] : memref<72x128xbf16, #tpu.memory_space<vmem>>, vector<72x128xbf16>
    %c0_1 = arith.constant 0 : index
    %c0_2 = arith.constant 0 : index
    %1 = vector.load %arg2[%c0_1, %c0_2] : memref<128x512xbf16, #tpu.memory_space<vmem>>, vector<128x512xbf16>
    %cst = arith.constant dense<0.000000e+00> : vector<72x512xf32>
    %2 = tpu.matmul %0, %1, %cst {dimension_numbers = #tpu.dot_dimension_numbers<[1], [0], [0], [1], [0, 0, 1, 1], [], []>} : vector<72x128xbf16>, vector<128x512xbf16>, vector<72x512xf32> -> vector<72x512xf32>
    %c0_3 = arith.constant 0 : index
    %c0_4 = arith.constant 0 : index
    %3 = vector.load %arg4[%c0_3, %c0_4] : memref<1x512xf32, #tpu.memory_space<vmem>>, vector<1x512xf32>
    %4 = vector.broadcast %3 : vector<1x512xf32> to vector<72x512xf32>
    %5 = arith.addf %2, %4 : vector<72x512xf32>
    %c0_5 = arith.constant 0 : index
    %c0_6 = arith.constant 0 : index
    %6 = vector.load %arg8[%c0_5, %c0_6] : memref<72x512xf32, #tpu.memory_space<vmem>>, vector<72x512xf32>
    tpu.vector_store %arg8[%c0_5, %c0_6], %5 {strides = array<i32>} : memref<72x512xf32, #tpu.memory_space<vmem>>, vector<72x512xf32>,
    %cst_7 = arith.constant 0.000000e+00 : f32
    %7 = vector.broadcast %cst_7 : f32 to vector<8x128xf32>
    %cst_8 = arith.constant 0.000000e+00 : f32
    %8 = vector.broadcast %cst_8 : f32 to vector<8x128xf32>
    %c0_9 = arith.constant 0 : index
    %c0_10 = arith.constant 0 : index
    %9 = vector.load %arg8[%c0_9, %c0_10] : memref<72x512xf32, #tpu.memory_space<vmem>>, vector<8x512xf32>
    %10 = arith.truncf %7 : vector<8x128xf32> to vector<8x128xbf16>
    %c0_11 = arith.constant 0 : index
    %c0_12 = arith.constant 0 : index
    %11 = vector.load %arg3[%c0_11, %c0_12] : memref<128x512xbf16, #tpu.memory_space<vmem>>, vector<128x512xbf16>
    %cst_13 = arith.constant dense<0.000000e+00> : vector<8x512xf32>
    %12 = tpu.matmul %10, %11, %cst_13 {dimension_numbers = #tpu.dot_dimension_numbers<[1], [0], [0], [1], [0, 0, 1, 1], [], []>} : vector<8x128xbf16>, vector<128x512xbf16>, vector<8x512xf32> -> vector<8x512xf32>
    %13 = arith.addf %9, %12 : vector<8x512xf32>
    %14 = vector.extract_strided_slice %13 {offsets = [0, 0], sizes = [8, 128], strides = [1, 1]} : vector<8x512xf32> to vector<8x128xf32>
    %15 = arith.negf %14 : vector<8x128xf32>
    %16 = math.exp %15 : vector<8x128xf32>
    %cst_14 = arith.constant 1.000000e+00 : f32
    %17 = vector.broadcast %cst_14 : f32 to vector<8x128xf32>
    %18 = arith.addf %17, %16 : vector<8x128xf32>
    %19 = arith.divf %17, %18 : vector<8x128xf32>
    %20 = vector.extract_strided_slice %13 {offsets = [0, 128], sizes = [8, 128], strides = [1, 1]} : vector<8x512xf32> to vector<8x128xf32>
    %21 = arith.negf %20 : vector<8x128xf32>
    %22 = math.exp %21 : vector<8x128xf32>
    %cst_15 = arith.constant 1.000000e+00 : f32
    %23 = vector.broadcast %cst_15 : f32 to vector<8x128xf32>
    %24 = arith.addf %23, %22 : vector<8x128xf32>
    %25 = arith.divf %23, %24 : vector<8x128xf32>
    %26 = vector.extract_strided_slice %13 {offsets = [0, 256], sizes = [8, 128], strides = [1, 1]} : vector<8x512xf32> to vector<8x128xf32>
    %27 = math.tanh %26 : vector<8x128xf32>
    %28 = vector.extract_strided_slice %13 {offsets = [0, 384], sizes = [8, 128], strides = [1, 1]} : vector<8x512xf32> to vector<8x128xf32>
    %29 = arith.negf %28 : vector<8x128xf32>
    %30 = math.exp %29 : vector<8x128xf32>
    %cst_16 = arith.constant 1.000000e+00 : f32
    %31 = vector.broadcast %cst_16 : f32 to vector<8x128xf32>
    %32 = arith.addf %31, %30 : vector<8x128xf32>
    %33 = arith.divf %31, %32 : vector<8x128xf32>
    %34 = arith.mulf %25, %8 : vector<8x128xf32>
    %35 = arith.mulf %19, %27 : vector<8x128xf32>
    %36 = arith.addf %34, %35 : vector<8x128xf32>
    %37 = math.tanh %36 : vector<8x128xf32>
    %38 = arith.mulf %33, %37 : vector<8x128xf32>
    %c0_17 = arith.constant 0 : index
    %c0_18 = arith.constant 0 : index
    %39 = vector.load %arg9[%c0_17, %c0_18] : memref<72x128xf32, #tpu.memory_space<vmem>>, vector<8x128xf32>
    tpu.vector_store %arg9[%c0_17, %c0_18], %38 {strides = array<i32>} : memref<72x128xf32, #tpu.memory_space<vmem>>, vector<8x128xf32>,
    %c8 = arith.constant 8 : index
    %c0_19 = arith.constant 0 : index
    %40 = vector.load %arg8[%c8, %c0_19] : memref<72x512xf32, #tpu.memory_space<vmem>>, vector<8x512xf32>
    %41 = arith.truncf %38 : vector<8x128xf32> to vector<8x128xbf16>
    %c0_20 = arith.constant 0 : index
    %c0_21 = arith.constant 0 : index
    %42 = vector.load %arg3[%c0_20, %c0_21] : memref<128x512xbf16, #tpu.memory_space<vmem>>, vector<128x512xbf16>
    %cst_22 = arith.constant dense<0.000000e+00> : vector<8x512xf32>
    %43 = tpu.matmul %41, %42, %cst_22 {dimension_numbers = #tpu.dot_dimension_numbers<[1], [0], [0], [1], [0, 0, 1, 1], [], []>} : vector<8x128xbf16>, vector<128x512xbf16>, vector<8x512xf32> -> vector<8x512xf32>
    %44 = arith.addf %40, %43 : vector<8x512xf32>
    %45 = vector.extract_strided_slice %44 {offsets = [0, 0], sizes = [8, 128], strides = [1, 1]} : vector<8x512xf32> to vector<8x128xf32>
    %46 = arith.negf %45 : vector<8x128xf32>
    %47 = math.exp %46 : vector<8x128xf32>
    %cst_23 = arith.constant 1.000000e+00 : f32
    %48 = vector.broadcast %cst_23 : f32 to vector<8x128xf32>
    %49 = arith.addf %48, %47 : vector<8x128xf32>
    %50 = arith.divf %48, %49 : vector<8x128xf32>
    %51 = vector.extract_strided_slice %44 {offsets = [0, 128], sizes = [8, 128], strides = [1, 1]} : vector<8x512xf32> to vector<8x128xf32>
    %52 = arith.negf %51 : vector<8x128xf32>
    %53 = math.exp %52 : vector<8x128xf32>
    %cst_24 = arith.constant 1.000000e+00 : f32
    %54 = vector.broadcast %cst_24 : f32 to vector<8x128xf32>
    %55 = arith.addf %54, %53 : vector<8x128xf32>
    %56 = arith.divf %54, %55 : vector<8x128xf32>
    %57 = vector.extract_strided_slice %44 {offsets = [0, 256], sizes = [8, 128], strides = [1, 1]} : vector<8x512xf32> to vector<8x128xf32>
    %58 = math.tanh %57 : vector<8x128xf32>
    %59 = vector.extract_strided_slice %44 {offsets = [0, 384], sizes = [8, 128], strides = [1, 1]} : vector<8x512xf32> to vector<8x128xf32>
    %60 = arith.negf %59 : vector<8x128xf32>
    %61 = math.exp %60 : vector<8x128xf32>
    %cst_25 = arith.constant 1.000000e+00 : f32
    %62 = vector.broadcast %cst_25 : f32 to vector<8x128xf32>
    %63 = arith.addf %62, %61 : vector<8x128xf32>
    %64 = arith.divf %62, %63 : vector<8x128xf32>
    %65 = arith.mulf %56, %36 : vector<8x128xf32>
    %66 = arith.mulf %50, %58 : vector<8x128xf32>
    %67 = arith.addf %65, %66 : vector<8x128xf32>
    %68 = math.tanh %67 : vector<8x128xf32>
    %69 = arith.mulf %64, %68 : vector<8x128xf32>
    %c8_26 = arith.constant 8 : index
    %c0_27 = arith.constant 0 : index
    %70 = vector.load %arg9[%c8_26, %c0_27] : memref<72x128xf32, #tpu.memory_space<vmem>>, vector<8x128xf32>
    tpu.vector_store %arg9[%c8_26, %c0_27], %69 {strides = array<i32>} : memref<72x128xf32, #tpu.memory_space<vmem>>, vector<8x128xf32>,
    %c16 = arith.constant 16 : index
    %c0_28 = arith.constant 0 : index
    %71 = vector.load %arg8[%c16, %c0_28] : memref<72x512xf32, #tpu.memory_space<vmem>>, vector<8x512xf32>
    %72 = arith.truncf %69 : vector<8x128xf32> to vector<8x128xbf16>
    %c0_29 = arith.constant 0 : index
    %c0_30 = arith.constant 0 : index
    %73 = vector.load %arg3[%c0_29, %c0_30] : memref<128x512xbf16, #tpu.memory_space<vmem>>, vector<128x512xbf16>
    %cst_31 = arith.constant dense<0.000000e+00> : vector<8x512xf32>
    %74 = tpu.matmul %72, %73, %cst_31 {dimension_numbers = #tpu.dot_dimension_numbers<[1], [0], [0], [1], [0, 0, 1, 1], [], []>} : vector<8x128xbf16>, vector<128x512xbf16>, vector<8x512xf32> -> vector<8x512xf32>
    %75 = arith.addf %71, %74 : vector<8x512xf32>
    %76 = vector.extract_strided_slice %75 {offsets = [0, 0], sizes = [8, 128], strides = [1, 1]} : vector<8x512xf32> to vector<8x128xf32>
    %77 = arith.negf %76 : vector<8x128xf32>
    %78 = math.exp %77 : vector<8x128xf32>
    %cst_32 = arith.constant 1.000000e+00 : f32
    %79 = vector.broadcast %cst_32 : f32 to vector<8x128xf32>
    %80 = arith.addf %79, %78 : vector<8x128xf32>
    %81 = arith.divf %79, %80 : vector<8x128xf32>
    %82 = vector.extract_strided_slice %75 {offsets = [0, 128], sizes = [8, 128], strides = [1, 1]} : vector<8x512xf32> to vector<8x128xf32>
    %83 = arith.negf %82 : vector<8x128xf32>
    %84 = math.exp %83 : vector<8x128xf32>
    %cst_33 = arith.constant 1.000000e+00 : f32
    %85 = vector.broadcast %cst_33 : f32 to vector<8x128xf32>
    %86 = arith.addf %85, %84 : vector<8x128xf32>
    %87 = arith.divf %85, %86 : vector<8x128xf32>
    %88 = vector.extract_strided_slice %75 {offsets = [0, 256], sizes = [8, 128], strides = [1, 1]} : vector<8x512xf32> to vector<8x128xf32>
    %89 = math.tanh %88 : vector<8x128xf32>
    %90 = vector.extract_strided_slice %75 {offsets = [0, 384], sizes = [8, 128], strides = [1, 1]} : vector<8x512xf32> to vector<8x128xf32>
    %91 = arith.negf %90 : vector<8x128xf32>
    %92 = math.exp %91 : vector<8x128xf32>
    %cst_34 = arith.constant 1.000000e+00 : f32
    %93 = vector.broadcast %cst_34 : f32 to vector<8x128xf32>
    %94 = arith.addf %93, %92 : vector<8x128xf32>
    %95 = arith.divf %93, %94 : vector<8x128xf32>
    %96 = arith.mulf %87, %67 : vector<8x128xf32>
    %97 = arith.mulf %81, %89 : vector<8x128xf32>
    %98 = arith.addf %96, %97 : vector<8x128xf32>
    %99 = math.tanh %98 : vector<8x128xf32>
    %100 = arith.mulf %95, %99 : vector<8x128xf32>
    %c16_35 = arith.constant 16 : index
    %c0_36 = arith.constant 0 : index
    %101 = vector.load %arg9[%c16_35, %c0_36] : memref<72x128xf32, #tpu.memory_space<vmem>>, vector<8x128xf32>
    tpu.vector_store %arg9[%c16_35, %c0_36], %100 {strides = array<i32>} : memref<72x128xf32, #tpu.memory_space<vmem>>, vector<8x128xf32>,
    %c24 = arith.constant 24 : index
    %c0_37 = arith.constant 0 : index
    %102 = vector.load %arg8[%c24, %c0_37] : memref<72x512xf32, #tpu.memory_space<vmem>>, vector<8x512xf32>
    %103 = arith.truncf %100 : vector<8x128xf32> to vector<8x128xbf16>
    %c0_38 = arith.constant 0 : index
    %c0_39 = arith.constant 0 : index
    %104 = vector.load %arg3[%c0_38, %c0_39] : memref<128x512xbf16, #tpu.memory_space<vmem>>, vector<128x512xbf16>
    %cst_40 = arith.constant dense<0.000000e+00> : vector<8x512xf32>
    %105 = tpu.matmul %103, %104, %cst_40 {dimension_numbers = #tpu.dot_dimension_numbers<[1], [0], [0], [1], [0, 0, 1, 1], [], []>} : vector<8x128xbf16>, vector<128x512xbf16>, vector<8x512xf32> -> vector<8x512xf32>
    %106 = arith.addf %102, %105 : vector<8x512xf32>
    %107 = vector.extract_strided_slice %106 {offsets = [0, 0], sizes = [8, 128], strides = [1, 1]} : vector<8x512xf32> to vector<8x128xf32>
    %108 = arith.negf %107 : vector<8x128xf32>
    %109 = math.exp %108 : vector<8x128xf32>
    %cst_41 = arith.constant 1.000000e+00 : f32
    %110 = vector.broadcast %cst_41 : f32 to vector<8x128xf32>
    %111 = arith.addf %110, %109 : vector<8x128xf32>
    %112 = arith.divf %110, %111 : vector<8x128xf32>
    %113 = vector.extract_strided_slice %106 {offsets = [0, 128], sizes = [8, 128], strides = [1, 1]} : vector<8x512xf32> to vector<8x128xf32>
    %114 = arith.negf %113 : vector<8x128xf32>
    %115 = math.exp %114 : vector<8x128xf32>
    %cst_42 = arith.constant 1.000000e+00 : f32
    %116 = vector.broadcast %cst_42 : f32 to vector<8x128xf32>
    %117 = arith.addf %116, %115 : vector<8x128xf32>
    %118 = arith.divf %116, %117 : vector<8x128xf32>
    %119 = vector.extract_strided_slice %106 {offsets = [0, 256], sizes = [8, 128], strides = [1, 1]} : vector<8x512xf32> to vector<8x128xf32>
    %120 = math.tanh %119 : vector<8x128xf32>
    %121 = vector.extract_strided_slice %106 {offsets = [0, 384], sizes = [8, 128], strides = [1, 1]} : vector<8x512xf32> to vector<8x128xf32>
    %122 = arith.negf %121 : vector<8x128xf32>
    %123 = math.exp %122 : vector<8x128xf32>
    %cst_43 = arith.constant 1.000000e+00 : f32
    %124 = vector.broadcast %cst_43 : f32 to vector<8x128xf32>
    %125 = arith.addf %124, %123 : vector<8x128xf32>
    %126 = arith.divf %124, %125 : vector<8x128xf32>
    %127 = arith.mulf %118, %98 : vector<8x128xf32>
    %128 = arith.mulf %112, %120 : vector<8x128xf32>
    %129 = arith.addf %127, %128 : vector<8x128xf32>
    %130 = math.tanh %129 : vector<8x128xf32>
    %131 = arith.mulf %126, %130 : vector<8x128xf32>
    %c24_44 = arith.constant 24 : index
    %c0_45 = arith.constant 0 : index
    %132 = vector.load %arg9[%c24_44, %c0_45] : memref<72x128xf32, #tpu.memory_space<vmem>>, vector<8x128xf32>
    tpu.vector_store %arg9[%c24_44, %c0_45], %131 {strides = array<i32>} : memref<72x128xf32, #tpu.memory_space<vmem>>, vector<8x128xf32>,
    %c32 = arith.constant 32 : index
    %c0_46 = arith.constant 0 : index
    %133 = vector.load %arg8[%c32, %c0_46] : memref<72x512xf32, #tpu.memory_space<vmem>>, vector<8x512xf32>
    %134 = arith.truncf %131 : vector<8x128xf32> to vector<8x128xbf16>
    %c0_47 = arith.constant 0 : index
    %c0_48 = arith.constant 0 : index
    %135 = vector.load %arg3[%c0_47, %c0_48] : memref<128x512xbf16, #tpu.memory_space<vmem>>, vector<128x512xbf16>
    %cst_49 = arith.constant dense<0.000000e+00> : vector<8x512xf32>
    %136 = tpu.matmul %134, %135, %cst_49 {dimension_numbers = #tpu.dot_dimension_numbers<[1], [0], [0], [1], [0, 0, 1, 1], [], []>} : vector<8x128xbf16>, vector<128x512xbf16>, vector<8x512xf32> -> vector<8x512xf32>
    %137 = arith.addf %133, %136 : vector<8x512xf32>
    %138 = vector.extract_strided_slice %137 {offsets = [0, 0], sizes = [8, 128], strides = [1, 1]} : vector<8x512xf32> to vector<8x128xf32>
    %139 = arith.negf %138 : vector<8x128xf32>
    %140 = math.exp %139 : vector<8x128xf32>
    %cst_50 = arith.constant 1.000000e+00 : f32
    %141 = vector.broadcast %cst_50 : f32 to vector<8x128xf32>
    %142 = arith.addf %141, %140 : vector<8x128xf32>
    %143 = arith.divf %141, %142 : vector<8x128xf32>
    %144 = vector.extract_strided_slice %137 {offsets = [0, 128], sizes = [8, 128], strides = [1, 1]} : vector<8x512xf32> to vector<8x128xf32>
    %145 = arith.negf %144 : vector<8x128xf32>
    %146 = math.exp %145 : vector<8x128xf32>
    %cst_51 = arith.constant 1.000000e+00 : f32
    %147 = vector.broadcast %cst_51 : f32 to vector<8x128xf32>
    %148 = arith.addf %147, %146 : vector<8x128xf32>
    %149 = arith.divf %147, %148 : vector<8x128xf32>
    %150 = vector.extract_strided_slice %137 {offsets = [0, 256], sizes = [8, 128], strides = [1, 1]} : vector<8x512xf32> to vector<8x128xf32>
    %151 = math.tanh %150 : vector<8x128xf32>
    %152 = vector.extract_strided_slice %137 {offsets = [0, 384], sizes = [8, 128], strides = [1, 1]} : vector<8x512xf32> to vector<8x128xf32>
    %153 = arith.negf %152 : vector<8x128xf32>
    %154 = math.exp %153 : vector<8x128xf32>
    %cst_52 = arith.constant 1.000000e+00 : f32
    %155 = vector.broadcast %cst_52 : f32 to vector<8x128xf32>
    %156 = arith.addf %155, %154 : vector<8x128xf32>
    %157 = arith.divf %155, %156 : vector<8x128xf32>
    %158 = arith.mulf %149, %129 : vector<8x128xf32>
    %159 = arith.mulf %143, %151 : vector<8x128xf32>
    %160 = arith.addf %158, %159 : vector<8x128xf32>
    %161 = math.tanh %160 : vector<8x128xf32>
    %162 = arith.mulf %157, %161 : vector<8x128xf32>
    %c32_53 = arith.constant 32 : index
    %c0_54 = arith.constant 0 : index
    %163 = vector.load %arg9[%c32_53, %c0_54] : memref<72x128xf32, #tpu.memory_space<vmem>>, vector<8x128xf32>
    tpu.vector_store %arg9[%c32_53, %c0_54], %162 {strides = array<i32>} : memref<72x128xf32, #tpu.memory_space<vmem>>, vector<8x128xf32>,
    %c40 = arith.constant 40 : index
    %c0_55 = arith.constant 0 : index
    %164 = vector.load %arg8[%c40, %c0_55] : memref<72x512xf32, #tpu.memory_space<vmem>>, vector<8x512xf32>
    %165 = arith.truncf %162 : vector<8x128xf32> to vector<8x128xbf16>
    %c0_56 = arith.constant 0 : index
    %c0_57 = arith.constant 0 : index
    %166 = vector.load %arg3[%c0_56, %c0_57] : memref<128x512xbf16, #tpu.memory_space<vmem>>, vector<128x512xbf16>
    %cst_58 = arith.constant dense<0.000000e+00> : vector<8x512xf32>
    %167 = tpu.matmul %165, %166, %cst_58 {dimension_numbers = #tpu.dot_dimension_numbers<[1], [0], [0], [1], [0, 0, 1, 1], [], []>} : vector<8x128xbf16>, vector<128x512xbf16>, vector<8x512xf32> -> vector<8x512xf32>
    %168 = arith.addf %164, %167 : vector<8x512xf32>
    %169 = vector.extract_strided_slice %168 {offsets = [0, 0], sizes = [8, 128], strides = [1, 1]} : vector<8x512xf32> to vector<8x128xf32>
    %170 = arith.negf %169 : vector<8x128xf32>
    %171 = math.exp %170 : vector<8x128xf32>
    %cst_59 = arith.constant 1.000000e+00 : f32
    %172 = vector.broadcast %cst_59 : f32 to vector<8x128xf32>
    %173 = arith.addf %172, %171 : vector<8x128xf32>
    %174 = arith.divf %172, %173 : vector<8x128xf32>
    %175 = vector.extract_strided_slice %168 {offsets = [0, 128], sizes = [8, 128], strides = [1, 1]} : vector<8x512xf32> to vector<8x128xf32>
    %176 = arith.negf %175 : vector<8x128xf32>
    %177 = math.exp %176 : vector<8x128xf32>
    %cst_60 = arith.constant 1.000000e+00 : f32
    %178 = vector.broadcast %cst_60 : f32 to vector<8x128xf32>
    %179 = arith.addf %178, %177 : vector<8x128xf32>
    %180 = arith.divf %178, %179 : vector<8x128xf32>
    %181 = vector.extract_strided_slice %168 {offsets = [0, 256], sizes = [8, 128], strides = [1, 1]} : vector<8x512xf32> to vector<8x128xf32>
    %182 = math.tanh %181 : vector<8x128xf32>
    %183 = vector.extract_strided_slice %168 {offsets = [0, 384], sizes = [8, 128], strides = [1, 1]} : vector<8x512xf32> to vector<8x128xf32>
    %184 = arith.negf %183 : vector<8x128xf32>
    %185 = math.exp %184 : vector<8x128xf32>
    %cst_61 = arith.constant 1.000000e+00 : f32
    %186 = vector.broadcast %cst_61 : f32 to vector<8x128xf32>
    %187 = arith.addf %186, %185 : vector<8x128xf32>
    %188 = arith.divf %186, %187 : vector<8x128xf32>
    %189 = arith.mulf %180, %160 : vector<8x128xf32>
    %190 = arith.mulf %174, %182 : vector<8x128xf32>
    %191 = arith.addf %189, %190 : vector<8x128xf32>
    %192 = math.tanh %191 : vector<8x128xf32>
    %193 = arith.mulf %188, %192 : vector<8x128xf32>
    %c40_62 = arith.constant 40 : index
    %c0_63 = arith.constant 0 : index
    %194 = vector.load %arg9[%c40_62, %c0_63] : memref<72x128xf32, #tpu.memory_space<vmem>>, vector<8x128xf32>
    tpu.vector_store %arg9[%c40_62, %c0_63], %193 {strides = array<i32>} : memref<72x128xf32, #tpu.memory_space<vmem>>, vector<8x128xf32>,
    %c48 = arith.constant 48 : index
    %c0_64 = arith.constant 0 : index
    %195 = vector.load %arg8[%c48, %c0_64] : memref<72x512xf32, #tpu.memory_space<vmem>>, vector<8x512xf32>
    %196 = arith.truncf %193 : vector<8x128xf32> to vector<8x128xbf16>
    %c0_65 = arith.constant 0 : index
    %c0_66 = arith.constant 0 : index
    %197 = vector.load %arg3[%c0_65, %c0_66] : memref<128x512xbf16, #tpu.memory_space<vmem>>, vector<128x512xbf16>
    %cst_67 = arith.constant dense<0.000000e+00> : vector<8x512xf32>
    %198 = tpu.matmul %196, %197, %cst_67 {dimension_numbers = #tpu.dot_dimension_numbers<[1], [0], [0], [1], [0, 0, 1, 1], [], []>} : vector<8x128xbf16>, vector<128x512xbf16>, vector<8x512xf32> -> vector<8x512xf32>
    %199 = arith.addf %195, %198 : vector<8x512xf32>
    %200 = vector.extract_strided_slice %199 {offsets = [0, 0], sizes = [8, 128], strides = [1, 1]} : vector<8x512xf32> to vector<8x128xf32>
    %201 = arith.negf %200 : vector<8x128xf32>
    %202 = math.exp %201 : vector<8x128xf32>
    %cst_68 = arith.constant 1.000000e+00 : f32
    %203 = vector.broadcast %cst_68 : f32 to vector<8x128xf32>
    %204 = arith.addf %203, %202 : vector<8x128xf32>
    %205 = arith.divf %203, %204 : vector<8x128xf32>
    %206 = vector.extract_strided_slice %199 {offsets = [0, 128], sizes = [8, 128], strides = [1, 1]} : vector<8x512xf32> to vector<8x128xf32>
    %207 = arith.negf %206 : vector<8x128xf32>
    %208 = math.exp %207 : vector<8x128xf32>
    %cst_69 = arith.constant 1.000000e+00 : f32
    %209 = vector.broadcast %cst_69 : f32 to vector<8x128xf32>
    %210 = arith.addf %209, %208 : vector<8x128xf32>
    %211 = arith.divf %209, %210 : vector<8x128xf32>
    %212 = vector.extract_strided_slice %199 {offsets = [0, 256], sizes = [8, 128], strides = [1, 1]} : vector<8x512xf32> to vector<8x128xf32>
    %213 = math.tanh %212 : vector<8x128xf32>
    %214 = vector.extract_strided_slice %199 {offsets = [0, 384], sizes = [8, 128], strides = [1, 1]} : vector<8x512xf32> to vector<8x128xf32>
    %215 = arith.negf %214 : vector<8x128xf32>
    %216 = math.exp %215 : vector<8x128xf32>
    %cst_70 = arith.constant 1.000000e+00 : f32
    %217 = vector.broadcast %cst_70 : f32 to vector<8x128xf32>
    %218 = arith.addf %217, %216 : vector<8x128xf32>
    %219 = arith.divf %217, %218 : vector<8x128xf32>
    %220 = arith.mulf %211, %191 : vector<8x128xf32>
    %221 = arith.mulf %205, %213 : vector<8x128xf32>
    %222 = arith.addf %220, %221 : vector<8x128xf32>
    %223 = math.tanh %222 : vector<8x128xf32>
    %224 = arith.mulf %219, %223 : vector<8x128xf32>
    %c48_71 = arith.constant 48 : index
    %c0_72 = arith.constant 0 : index
    %225 = vector.load %arg9[%c48_71, %c0_72] : memref<72x128xf32, #tpu.memory_space<vmem>>, vector<8x128xf32>
    tpu.vector_store %arg9[%c48_71, %c0_72], %224 {strides = array<i32>} : memref<72x128xf32, #tpu.memory_space<vmem>>, vector<8x128xf32>,
    %c56 = arith.constant 56 : index
    %c0_73 = arith.constant 0 : index
    %226 = vector.load %arg8[%c56, %c0_73] : memref<72x512xf32, #tpu.memory_space<vmem>>, vector<8x512xf32>
    %227 = arith.truncf %224 : vector<8x128xf32> to vector<8x128xbf16>
    %c0_74 = arith.constant 0 : index
    %c0_75 = arith.constant 0 : index
    %228 = vector.load %arg3[%c0_74, %c0_75] : memref<128x512xbf16, #tpu.memory_space<vmem>>, vector<128x512xbf16>
    %cst_76 = arith.constant dense<0.000000e+00> : vector<8x512xf32>
    %229 = tpu.matmul %227, %228, %cst_76 {dimension_numbers = #tpu.dot_dimension_numbers<[1], [0], [0], [1], [0, 0, 1, 1], [], []>} : vector<8x128xbf16>, vector<128x512xbf16>, vector<8x512xf32> -> vector<8x512xf32>
    %230 = arith.addf %226, %229 : vector<8x512xf32>
    %231 = vector.extract_strided_slice %230 {offsets = [0, 0], sizes = [8, 128], strides = [1, 1]} : vector<8x512xf32> to vector<8x128xf32>
    %232 = arith.negf %231 : vector<8x128xf32>
    %233 = math.exp %232 : vector<8x128xf32>
    %cst_77 = arith.constant 1.000000e+00 : f32
    %234 = vector.broadcast %cst_77 : f32 to vector<8x128xf32>
    %235 = arith.addf %234, %233 : vector<8x128xf32>
    %236 = arith.divf %234, %235 : vector<8x128xf32>
    %237 = vector.extract_strided_slice %230 {offsets = [0, 128], sizes = [8, 128], strides = [1, 1]} : vector<8x512xf32> to vector<8x128xf32>
    %238 = arith.negf %237 : vector<8x128xf32>
    %239 = math.exp %238 : vector<8x128xf32>
    %cst_78 = arith.constant 1.000000e+00 : f32
    %240 = vector.broadcast %cst_78 : f32 to vector<8x128xf32>
    %241 = arith.addf %240, %239 : vector<8x128xf32>
    %242 = arith.divf %240, %241 : vector<8x128xf32>
    %243 = vector.extract_strided_slice %230 {offsets = [0, 256], sizes = [8, 128], strides = [1, 1]} : vector<8x512xf32> to vector<8x128xf32>
    %244 = math.tanh %243 : vector<8x128xf32>
    %245 = vector.extract_strided_slice %230 {offsets = [0, 384], sizes = [8, 128], strides = [1, 1]} : vector<8x512xf32> to vector<8x128xf32>
    %246 = arith.negf %245 : vector<8x128xf32>
    %247 = math.exp %246 : vector<8x128xf32>
    %cst_79 = arith.constant 1.000000e+00 : f32
    %248 = vector.broadcast %cst_79 : f32 to vector<8x128xf32>
    %249 = arith.addf %248, %247 : vector<8x128xf32>
    %250 = arith.divf %248, %249 : vector<8x128xf32>
    %251 = arith.mulf %242, %222 : vector<8x128xf32>
    %252 = arith.mulf %236, %244 : vector<8x128xf32>
    %253 = arith.addf %251, %252 : vector<8x128xf32>
    %254 = math.tanh %253 : vector<8x128xf32>
    %255 = arith.mulf %250, %254 : vector<8x128xf32>
    %c56_80 = arith.constant 56 : index
    %c0_81 = arith.constant 0 : index
    %256 = vector.load %arg9[%c56_80, %c0_81] : memref<72x128xf32, #tpu.memory_space<vmem>>, vector<8x128xf32>
    tpu.vector_store %arg9[%c56_80, %c0_81], %255 {strides = array<i32>} : memref<72x128xf32, #tpu.memory_space<vmem>>, vector<8x128xf32>,
    %c64 = arith.constant 64 : index
    %c0_82 = arith.constant 0 : index
    %257 = vector.load %arg8[%c64, %c0_82] : memref<72x512xf32, #tpu.memory_space<vmem>>, vector<8x512xf32>
    %258 = arith.truncf %255 : vector<8x128xf32> to vector<8x128xbf16>
    %c0_83 = arith.constant 0 : index
    %c0_84 = arith.constant 0 : index
    %259 = vector.load %arg3[%c0_83, %c0_84] : memref<128x512xbf16, #tpu.memory_space<vmem>>, vector<128x512xbf16>
    %cst_85 = arith.constant dense<0.000000e+00> : vector<8x512xf32>
    %260 = tpu.matmul %258, %259, %cst_85 {dimension_numbers = #tpu.dot_dimension_numbers<[1], [0], [0], [1], [0, 0, 1, 1], [], []>} : vector<8x128xbf16>, vector<128x512xbf16>, vector<8x512xf32> -> vector<8x512xf32>
    %261 = arith.addf %257, %260 : vector<8x512xf32>
    %262 = vector.extract_strided_slice %261 {offsets = [0, 0], sizes = [8, 128], strides = [1, 1]} : vector<8x512xf32> to vector<8x128xf32>
    %263 = arith.negf %262 : vector<8x128xf32>
    %264 = math.exp %263 : vector<8x128xf32>
    %cst_86 = arith.constant 1.000000e+00 : f32
    %265 = vector.broadcast %cst_86 : f32 to vector<8x128xf32>
    %266 = arith.addf %265, %264 : vector<8x128xf32>
    %267 = arith.divf %265, %266 : vector<8x128xf32>
    %268 = vector.extract_strided_slice %261 {offsets = [0, 128], sizes = [8, 128], strides = [1, 1]} : vector<8x512xf32> to vector<8x128xf32>
    %269 = arith.negf %268 : vector<8x128xf32>
    %270 = math.exp %269 : vector<8x128xf32>
    %cst_87 = arith.constant 1.000000e+00 : f32
    %271 = vector.broadcast %cst_87 : f32 to vector<8x128xf32>
    %272 = arith.addf %271, %270 : vector<8x128xf32>
    %273 = arith.divf %271, %272 : vector<8x128xf32>
    %274 = vector.extract_strided_slice %261 {offsets = [0, 256], sizes = [8, 128], strides = [1, 1]} : vector<8x512xf32> to vector<8x128xf32>
    %275 = math.tanh %274 : vector<8x128xf32>
    %276 = vector.extract_strided_slice %261 {offsets = [0, 384], sizes = [8, 128], strides = [1, 1]} : vector<8x512xf32> to vector<8x128xf32>
    %277 = arith.negf %276 : vector<8x128xf32>
    %278 = math.exp %277 : vector<8x128xf32>
    %cst_88 = arith.constant 1.000000e+00 : f32
    %279 = vector.broadcast %cst_88 : f32 to vector<8x128xf32>
    %280 = arith.addf %279, %278 : vector<8x128xf32>
    %281 = arith.divf %279, %280 : vector<8x128xf32>
    %282 = arith.mulf %273, %253 : vector<8x128xf32>
    %283 = arith.mulf %267, %275 : vector<8x128xf32>
    %284 = arith.addf %282, %283 : vector<8x128xf32>
    %285 = math.tanh %284 : vector<8x128xf32>
    %286 = arith.mulf %281, %285 : vector<8x128xf32>
    %c64_89 = arith.constant 64 : index
    %c0_90 = arith.constant 0 : index
    %287 = vector.load %arg9[%c64_89, %c0_90] : memref<72x128xf32, #tpu.memory_space<vmem>>, vector<8x128xf32>
    tpu.vector_store %arg9[%c64_89, %c0_90], %286 {strides = array<i32>} : memref<72x128xf32, #tpu.memory_space<vmem>>, vector<8x128xf32>,
    %c0_91 = arith.constant 0 : index
    %c0_92 = arith.constant 0 : index
    %288 = vector.load %arg9[%c0_91, %c0_92] : memref<72x128xf32, #tpu.memory_space<vmem>>, vector<72x128xf32>
    %289 = arith.truncf %288 : vector<72x128xf32> to vector<72x128xbf16>
    %c0_93 = arith.constant 0 : index
    %c0_94 = arith.constant 0 : index
    %290 = vector.load %arg5[%c0_93, %c0_94] : memref<128x256xbf16, #tpu.memory_space<vmem>>, vector<128x256xbf16>
    %cst_95 = arith.constant dense<0.000000e+00> : vector<72x256xf32>
    %291 = tpu.matmul %289, %290, %cst_95 {dimension_numbers = #tpu.dot_dimension_numbers<[1], [0], [0], [1], [0, 0, 1, 1], [], []>} : vector<72x128xbf16>, vector<128x256xbf16>, vector<72x256xf32> -> vector<72x256xf32>
    %c0_96 = arith.constant 0 : index
    %c0_97 = arith.constant 0 : index
    %292 = vector.load %arg6[%c0_96, %c0_97] : memref<1x256xf32, #tpu.memory_space<vmem>>, vector<1x256xf32>
    %293 = vector.broadcast %292 : vector<1x256xf32> to vector<72x256xf32>
    %294 = arith.addf %291, %293 : vector<72x256xf32>
    %c0_98 = arith.constant 0 : index
    %c0_99 = arith.constant 0 : index
    %295 = vector.load %arg7[%c0_98, %c0_99] : memref<72x256xf32, #tpu.memory_space<vmem>>, vector<72x256xf32>
    tpu.vector_store %arg7[%c0_98, %c0_99], %294 {strides = array<i32>} : memref<72x256xf32, #tpu.memory_space<vmem>>, vector<72x256xf32>,
    return
  }
  func.func @transform_0(%arg0: i32) -> (i32, i32) {
    %c0_i32 = arith.constant 0 : i32
    %c0_i32_0 = arith.constant 0 : i32
    %c0_i32_1 = arith.constant 0 : i32
    return %c0_i32, %c0_i32_0 : i32, i32
  }
  func.func @transform_1(%arg0: i32) -> (i32, i32) {
    %c0_i32 = arith.constant 0 : i32
    %c0_i32_0 = arith.constant 0 : i32
    %c0_i32_1 = arith.constant 0 : i32
    return %c0_i32, %c0_i32_0 : i32, i32
  }
  func.func @transform_2(%arg0: i32) -> (i32, i32) {
    %c0_i32 = arith.constant 0 : i32
    %c0_i32_0 = arith.constant 0 : i32
    %c0_i32_1 = arith.constant 0 : i32
    return %c0_i32, %c0_i32_0 : i32, i32
  }
  func.func @transform_3(%arg0: i32) -> (i32, i32) {
    %c0_i32 = arith.constant 0 : i32
    %c0_i32_0 = arith.constant 0 : i32
    %c0_i32_1 = arith.constant 0 : i32
    return %c0_i32, %c0_i32_0 : i32, i32
  }
  func.func @transform_4(%arg0: i32) -> (i32, i32) {
    %c0_i32 = arith.constant 0 : i32
    %c0_i32_0 = arith.constant 0 : i32
    %c0_i32_1 = arith.constant 0 : i32
    return %c0_i32, %c0_i32_0 : i32, i32
  }
  func.func @transform_5(%arg0: i32) -> (i32, i32) {
    %c0_i32 = arith.constant 0 : i32
    %c0_i32_0 = arith.constant 0 : i32
    %c0_i32_1 = arith.constant 0 : i32
    return %c0_i32, %c0_i32_0 : i32, i32
  }
  func.func @transform_6(%arg0: i32) -> (i32, i32) {
    %c0_i32 = arith.constant 0 : i32
    %c0_i32_0 = arith.constant 0 : i32
    %c0_i32_1 = arith.constant 0 : i32
    return %c0_i32, %c0_i32_0 : i32, i32
  }
}

</mosaic_0001>

<bundles_post_ra>
// kernel: decoder_rnn_forward.1
= control target key start
LH: loop header
LB: loop body
LE: loop exit
PB: predicated region body
PF: predicated region fallthrough
CT: control target
= control target key end

     0   :  { %s7833_s0 = inlined_call_operand.vmem [shape: bf16[72,128], index: 0, kind: input, shape index: {}]   ;;  %s7834_s1 = inlined_call_operand.vmem [shape: bf16[128,512], index: 1, kind: input, shape index: {}]   ;;  %s7835_s2 = inlined_call_operand.vmem [shape: bf16[128,512], index: 2, kind: input, shape index: {}]   ;;  %s7836_s3 = inlined_call_operand.vmem [shape: f32[1,512], index: 3, kind: input, shape index: {}]   ;;  %s7837_s4 = inlined_call_operand.vmem [shape: bf16[128,256], index: 4, kind: input, shape index: {}]   ;;  %s7838_s5 = inlined_call_operand.vmem [shape: f32[1,256], index: 5, kind: input, shape index: {}]   ;;  %s7839_s6 = inlined_call_operand.hbm [shape: f32[72,256], index: 6, kind: output, shape index: {}]  }
   0x1   :  { %v3632_v0 = vld [vmem:[%s7834_s1 + $0xe0] sm:$0xf]  ;;  %v4923_v1 = vld [vmem:[%s7834_s1 + $0xec] sm:$0xf0]  ;;  %v4921_v2 = vld [vmem:[%s7834_s1 + $0xe4] sm:$0xf] }
   0x2   :  { %v3633_v3 = vor.u32 %v4923_v1, %v3632_v0  ;;  %v3634_v4 = vld [vmem:[%s7834_s1 + $0xf0] sm:$0xf0]  ;;  %v3616_v5 = vld [vmem:[%s7834_s1 + $0xc0] sm:$0xf]  ;;  %v4919_v6 = vld [vmem:[%s7834_s1 + $0xcc] sm:$0xf0] }
   0x3   :  { %v3637_v7 = vor.u32 %v4921_v2, %v3634_v4  ;;  %v4917_v8 = vld [vmem:[%s7834_s1 + $0xc4] sm:$0xf]  ;;  %v3618_v9 = vld [vmem:[%s7834_s1 + $0xd0] sm:$0xf0]  ;;  %v3617_v10 = vor.u32 %v4919_v6, %v3616_v5  ;;  %v3600_v12 = vld [vmem:[%s7834_s1 + $0xa0] sm:$0xf] }
   0x4   :  { %5229 = vmatpush.bf16.msra.mxu2 %v3633_v3  ;;  %264 = vmatpush.bf16.msra.mxu0 %v3633_v3  ;;  %v3621_v11 = vor.u32 %v4917_v8, %v3618_v9  ;;  %v4915_v13 = vld [vmem:[%s7834_s1 + $0xac] sm:$0xf0]  ;;  %v4913_v14 = vld [vmem:[%s7834_s1 + $0xa4] sm:$0xf]  ;;  %v3602_v15 = vld [vmem:[%s7834_s1 + $0xb0] sm:$0xf0] }
   0x5   :  { %5237 = vmatpush.bf16.msra.mxu3 %v3637_v7  ;;  %297 = vmatpush.bf16.msra.mxu1 %v3637_v7  ;;  %v3601_v16 = vor.u32 %v4915_v13, %v3600_v12  ;;  %v3605_v17 = vor.u32 %v4913_v14, %v3602_v15  ;;  %v3584_v18 = vld [vmem:[%s7834_s1 + $0x80] sm:$0xf]  ;;  %v4911_v19 = vld [vmem:[%s7834_s1 + $0x8c] sm:$0xf0]  ;;  %v4909_v20 = vld [vmem:[%s7834_s1 + $0x84] sm:$0xf] }
   0x6   :  { %v3586_v21 = vld [vmem:[%s7834_s1 + $0x90] sm:$0xf0]  ;;  %v3585_v22 = vor.u32 %v4911_v19, %v3584_v18  ;;  %v3568_v24 = vld [vmem:[%s7834_s1 + $0x60] sm:$0xf]  ;;  %v4907_v25 = vld [vmem:[%s7834_s1 + $0x6c] sm:$0xf0] }
   0x7   :  { %v3589_v23 = vor.u32 %v4909_v20, %v3586_v21  ;;  %v4905_v26 = vld [vmem:[%s7834_s1 + $0x64] sm:$0xf]  ;;  %v3570_v27 = vld [vmem:[%s7834_s1 + $0x70] sm:$0xf0] }
   0x8   :  { %5230 = vmatpush.bf16.msra.mxu2 %v3617_v10  ;;  %265 = vmatpush.bf16.msra.mxu0 %v3617_v10 }
   0x9   :  { %5238 = vmatpush.bf16.msra.mxu3 %v3621_v11  ;;  %298 = vmatpush.bf16.msra.mxu1 %v3621_v11 }
   0xc   :  { %5231 = vmatpush.bf16.msra.mxu2 %v3601_v16  ;;  %266 = vmatpush.bf16.msra.mxu0 %v3601_v16 }
   0xd   :  { %5239 = vmatpush.bf16.msra.mxu3 %v3605_v17  ;;  %299 = vmatpush.bf16.msra.mxu1 %v3605_v17 }
   0xe   :  { %11 = vsyncpa [#allocation5], 0  ;;  %v3569_v28 = vor.u32 %v4907_v25, %v3568_v24  ;;  %v3573_v29 = vor.u32 %v4905_v26, %v3570_v27  ;;  %v3552_v30 = vld [vmem:[%s7834_s1 + $0x40] sm:$0xf]  ;;  %v4903_v31 = vld [vmem:[%s7834_s1 + $0x4c] sm:$0xf0] }
   0xf   :  { %v4901_v32 = vld [vmem:[%s7834_s1 + $0x44] sm:$0xf]  ;;  %v3554_v33 = vld [vmem:[%s7834_s1 + $0x50] sm:$0xf0]  ;;  %v3553_v34 = vor.u32 %v4903_v31, %v3552_v30  ;;  %v3536_v36 = vld [vmem:[%s7834_s1 + $0x20] sm:$0xf] }
  0x10   :  { %5232 = vmatpush.bf16.msra.mxu2 %v3585_v22  ;;  %267 = vmatpush.bf16.msra.mxu0 %v3585_v22  ;;  %v3557_v35 = vor.u32 %v4901_v32, %v3554_v33  ;;  %v4899_v37 = vld [vmem:[%s7834_s1 + $0x2c] sm:$0xf0]  ;;  %v4897_v38 = vld [vmem:[%s7834_s1 + $0x24] sm:$0xf]  ;;  %v3538_v39 = vld [vmem:[%s7834_s1 + $0x30] sm:$0xf0] }
  0x11   :  { %5240 = vmatpush.bf16.msra.mxu3 %v3589_v23  ;;  %300 = vmatpush.bf16.msra.mxu1 %v3589_v23  ;;  %v3537_v40 = vor.u32 %v4899_v37, %v3536_v36  ;;  %v3541_v41 = vor.u32 %v4897_v38, %v3538_v39  ;;  %v3520_v42 = vld [vmem:[%s7834_s1] sm:$0xf]  ;;  %v4895_v43 = vld [vmem:[%s7834_s1 + $0xc] sm:$0xf0]  ;;  %v4893_v44 = vld [vmem:[%s7834_s1 + $0x4] sm:$0xf] }
  0x12   :  { %v3522_v45 = vld [vmem:[%s7834_s1 + $0x10] sm:$0xf0]  ;;  %v3640_v46 = vld [vmem:[%s7834_s1 + $0xe8] sm:$0xf]  ;;  %v4924_v47 = vld [vmem:[%s7834_s1 + $0xf4] sm:$0xf0]  ;;  %v3521_v50 = vor.u32 %v4895_v43, %v3520_v42 }
  0x13   :  { %v4922_v48 = vld [vmem:[%s7834_s1 + $0xec] sm:$0xf]  ;;  %v3642_v49 = vld [vmem:[%s7834_s1 + $0xf8] sm:$0xf0]  ;;  %v3525_v51 = vor.u32 %v4893_v44, %v3522_v45  ;;  %v3641_v52 = vor.u32 %v4924_v47, %v3640_v46  ;;  %v3624_v54 = vld [vmem:[%s7834_s1 + $0xc8] sm:$0xf] }
  0x14   :  { %5233 = vmatpush.bf16.msra.mxu2 %v3569_v28  ;;  %268 = vmatpush.bf16.msra.mxu0 %v3569_v28  ;;  %v3645_v53 = vor.u32 %v4922_v48, %v3642_v49  ;;  %v4920_v55 = vld [vmem:[%s7834_s1 + $0xd4] sm:$0xf0]  ;;  %v5575_v56 = vld [vmem:[%s7833_s0 + $0x10] sm:$0xff]  ;;  %v4918_v57 = vld [vmem:[%s7834_s1 + $0xcc] sm:$0xf]  ;;  %s3490_s25 = sshll.u32 %s7839_s6, 4  ;;  %s3491_s25 = int_to_ptr.hbm [resolvable:$true] %s3490_s25 }
  0x15   :  { %5241 = vmatpush.bf16.msra.mxu3 %v3573_v29  ;;  %301 = vmatpush.bf16.msra.mxu1 %v3573_v29  ;;  %v3626_v58 = vld [vmem:[%s7834_s1 + $0xd8] sm:$0xf0]  ;;  %v3625_v59 = vor.u32 %v4920_v55, %v3624_v54  ;;  %v3608_v61 = vld [vmem:[%s7834_s1 + $0xa8] sm:$0xf]  ;;  %v4916_v62 = vld [vmem:[%s7834_s1 + $0xb4] sm:$0xf0] }
  0x16   :  { %v3629_v60 = vor.u32 %v4918_v57, %v3626_v58  ;;  %v4914_v63 = vld [vmem:[%s7834_s1 + $0xac] sm:$0xf]  ;;  %v3610_v0 = vld [vmem:[%s7834_s1 + $0xb8] sm:$0xf0]  ;;  %v3609_v1 = vor.u32 %v4916_v62, %v3608_v61  ;;  %v3592_v3 = vld [vmem:[%s7834_s1 + $0x88] sm:$0xf] }
  0x17   :  { %v3613_v2 = vor.u32 %v4914_v63, %v3610_v0  ;;  %v4912_v4 = vld [vmem:[%s7834_s1 + $0x94] sm:$0xf0]  ;;  %v4910_v5 = vld [vmem:[%s7834_s1 + $0x8c] sm:$0xf]  ;;  %v3594_v6 = vld [vmem:[%s7834_s1 + $0x98] sm:$0xf0] }
  0x18   :  { %5234 = vmatpush.bf16.msra.mxu2 %v3553_v34  ;;  %269 = vmatpush.bf16.msra.mxu0 %v3553_v34  ;;  %v5612_v7 = vld [vmem:[%s7833_s0] sm:$0xff]  ;;  %v3593_v8 = vor.u32 %v4912_v4, %v3592_v3  ;;  %v3597_v9 = vor.u32 %v4910_v5, %v3594_v6  ;;  %v3576_v10 = vld [vmem:[%s7834_s1 + $0x68] sm:$0xf]  ;;  %v4908_v11 = vld [vmem:[%s7834_s1 + $0x74] sm:$0xf0]  ;;  %s5421_s26 = smov 256  }
  0x19   :  { %5242 = vmatpush.bf16.msra.mxu3 %v3557_v35  ;;  %302 = vmatpush.bf16.msra.mxu1 %v3557_v35  ;;  %v4906_v12 = vld [vmem:[%s7834_s1 + $0x6c] sm:$0xf]  ;;  %v3578_v13 = vld [vmem:[%s7834_s1 + $0x78] sm:$0xf0]  ;;  %v3577_v14 = vor.u32 %v4908_v11, %v3576_v10  ;;  %v3560_v16 = vld [vmem:[%s7834_s1 + $0x48] sm:$0xf] }
  0x1a   :  { %v3581_v15 = vor.u32 %v4906_v12, %v3578_v13  ;;  %v4904_v17 = vld [vmem:[%s7834_s1 + $0x54] sm:$0xf0]  ;;  %v4902_v19 = vld [vmem:[%s7834_s1 + $0x4c] sm:$0xf]  ;;  %v3562_v20 = vld [vmem:[%s7834_s1 + $0x58] sm:$0xf0] }
  0x1b   :  { %v5637_v18 = vld [vmem:[%s7833_s0 + $0x18] sm:$0xff]  ;;  %v3561_v21 = vor.u32 %v4904_v17, %v3560_v16  ;;  %v3544_v22 = vld [vmem:[%s7834_s1 + $0x28] sm:$0xf]  ;;  %v3565_v24 = vor.u32 %v4902_v19, %v3562_v20  ;;  %v3760_v25 = vld [vmem:[%s7835_s2 + $0xe0] sm:$0xf]  ;;  %s5422_s27 = smov 16  }
  0x1c   :  { %5235 = vmatpush.bf16.msra.mxu2 %v3537_v40  ;;  %270 = vmatpush.bf16.msra.mxu0 %v3537_v40  ;;  %v4900_v23 = vld [vmem:[%s7834_s1 + $0x34] sm:$0xf0]  ;;  %v4955_v26 = vld [vmem:[%s7835_s2 + $0xec] sm:$0xf0]  ;;  %v4953_v27 = vld [vmem:[%s7835_s2 + $0xe4] sm:$0xf] }
  0x1d   :  { %5243 = vmatpush.bf16.msra.mxu3 %v3541_v41  ;;  %303 = vmatpush.bf16.msra.mxu1 %v3541_v41  ;;  %v4898_v28 = vld [vmem:[%s7834_s1 + $0x2c] sm:$0xf]  ;;  %v3546_v29 = vld [vmem:[%s7834_s1 + $0x38] sm:$0xf0]  ;;  %v3761_v30 = vor.u32 %v4955_v26, %v3760_v25  ;;  %v3762_v31 = vld [vmem:[%s7835_s2 + $0xf0] sm:$0xf0]  ;;  %v3545_v35 = vor.u32 %v4900_v23, %v3544_v22 }
  0x1e   :  { %v3528_v32 = vld [vmem:[%s7834_s1 + $0x8] sm:$0xf]  ;;  %v3765_v33 = vor.u32 %v4953_v27, %v3762_v31  ;;  %v3744_v34 = vld [vmem:[%s7835_s2 + $0xc0] sm:$0xf]  ;;  %v4894_v36 = vld [vmem:[%s7834_s1 + $0xc] sm:$0xf]  ;;  %v3549_v42 = vor.u32 %v4898_v28, %v3546_v29 }
  0x1f   :  { %v3530_v37 = vld [vmem:[%s7834_s1 + $0x18] sm:$0xf0]  ;;  %v4951_v38 = vld [vmem:[%s7835_s2 + $0xcc] sm:$0xf0]  ;;  %v4949_v39 = vld [vmem:[%s7835_s2 + $0xc4] sm:$0xf] }
  0x20   :  { %5236 = vmatpush.bf16.msra.mxu2 %v3521_v50  ;;  %271 = vmatpush.bf16.msra.mxu0 %v3521_v50  ;;  %v3746_v40 = vld [vmem:[%s7835_s2 + $0xd0] sm:$0xf0]  ;;  %v33_v41 = vld [vmem:[%s7833_s0 + $0x20] sm:$0xf]  ;;  %v4896_v43 = vld [vmem:[%s7834_s1 + $0x14] sm:$0xf0]  ;;  %v3745_v44 = vor.u32 %v4951_v38, %v3744_v34  ;;  %v3533_v57 = vor.u32 %v4894_v36, %v3530_v37 }
  0x21   :  { %5244 = vmatpush.bf16.msra.mxu3 %v3525_v51  ;;  %304 = vmatpush.bf16.msra.mxu1 %v3525_v51  ;;  %v3749_v45 = vor.u32 %v4949_v39, %v3746_v40  ;;  %v3728_v46 = vld [vmem:[%s7835_s2 + $0xa0] sm:$0xf]  ;;  %v4947_v47 = vld [vmem:[%s7835_s2 + $0xac] sm:$0xf0]  ;;  %v4954_v48 = vld [vmem:[%s7835_s2 + $0xec] sm:$0xf]  ;;  %v3529_v54 = vor.u32 %v4896_v43, %v3528_v32  ;;  %v93_v62 = vunpack.c.l.b16 %v33_v41 }
  0x22   :  { %v4945_v49 = vld [vmem:[%s7835_s2 + $0xa4] sm:$0xf]  ;;  %v3730_v50 = vld [vmem:[%s7835_s2 + $0xb0] sm:$0xf0]  ;;  %v3770_v51 = vld [vmem:[%s7835_s2 + $0xf8] sm:$0xf0]  ;;  %v3729_v55 = vor.u32 %v4947_v47, %v3728_v46 }
  0x23   :  { %282 = vmatmul.bf16.vlgmr.msra.gmra.mxu2 %v5575_v56  ;;  %272 = vmatmul.bf16.vlgmr.msra.gmra.mxu0 %v5612_v7  ;;  %v3733_v58 = vor.u32 %v4945_v49, %v3730_v50  ;;  %v5731_v61 = vld [vmem:[%s7833_s0 + $0x8] sm:$0xff]  ;;  %v3773_v63 = vor.u32 %v4954_v48, %v3770_v51  ;;  %v3754_v4 = vld [vmem:[%s7835_s2 + $0xd8] sm:$0xf0]  ;;  %v3696_v10 = vld [vmem:[%s7835_s2 + $0x60] sm:$0xf]  ;;  %v5419_v47 = vmov 0  }
  0x24   :  { %330 = vmatpush.bf16.msrb.mxu2 %v3641_v52  ;;  %315 = vmatmul.bf16.vlgmr.msra.gmra.mxu3 %v5575_v56  ;;  %v3768_v52 = vld [vmem:[%s7835_s2 + $0xe8] sm:$0xf]  ;;  %v4950_v3 = vld [vmem:[%s7835_s2 + $0xcc] sm:$0xf]  ;;  %v4939_v11 = vld [vmem:[%s7835_s2 + $0x6c] sm:$0xf0] }
  0x25   :  { %363 = vmatpush.bf16.msrb.mxu3 %v3645_v53  ;;  %305 = vmatmul.bf16.vlgmr.msra.gmra.mxu1 %v5612_v7  ;;  %v4956_v53 = vld [vmem:[%s7835_s2 + $0xf4] sm:$0xf0]  ;;  %v4937_v12 = vld [vmem:[%s7835_s2 + $0x64] sm:$0xf]  ;;  %v3697_v13 = vor.u32 %v4939_v11, %v3696_v10  ;;  %v3752_v16 = vld [vmem:[%s7835_s2 + $0xc8] sm:$0xf] }
  0x26   :  { %628 = vmatpush.bf16.msrb.mxu0 %v3761_v30  ;;  %641 = vmatpush.bf16.msrb.mxu1 %v3765_v33  ;;  %v3769_v0 = vor.u32 %v4956_v53, %v3768_v52  ;;  %v4952_v17 = vld [vmem:[%s7835_s2 + $0xd4] sm:$0xf0]  ;;  %v4946_v19 = vld [vmem:[%s7835_s2 + $0xac] sm:$0xf]  ;;  %v3680_v22 = vld [vmem:[%s7835_s2 + $0x40] sm:$0xf] }
  0x27   :  { %v3753_v20 = vor.u32 %v4952_v17, %v3752_v16  ;;  %v4935_v23 = vld [vmem:[%s7835_s2 + $0x4c] sm:$0xf0]  ;;  %v4933_v26 = vld [vmem:[%s7835_s2 + $0x44] sm:$0xf]  ;;  %v3682_v27 = vld [vmem:[%s7835_s2 + $0x50] sm:$0xf0] }
  0x28   :  { %331 = vmatpush.bf16.msrb.mxu2 %v3625_v59  ;;  %v3712_v59 = vld [vmem:[%s7835_s2 + $0x80] sm:$0xf]  ;;  %v3681_v25 = vor.u32 %v4935_v23, %v3680_v22  ;;  %v3685_v29 = vor.u32 %v4933_v26, %v3682_v27  ;;  %v4931_v30 = vld [vmem:[%s7835_s2 + $0x2c] sm:$0xf0]  ;;  %v4929_v31 = vld [vmem:[%s7835_s2 + $0x24] sm:$0xf] }
  0x29   :  { %364 = vmatpush.bf16.msrb.mxu3 %v3629_v60  ;;  %v4943_v60 = vld [vmem:[%s7835_s2 + $0x8c] sm:$0xf0]  ;;  %v3664_v28 = vld [vmem:[%s7835_s2 + $0x20] sm:$0xf]  ;;  %v3666_v32 = vld [vmem:[%s7835_s2 + $0x30] sm:$0xf0] }
  0x2a   :  { %629 = vmatpush.bf16.msrb.mxu0 %v3745_v44  ;;  %642 = vmatpush.bf16.msrb.mxu1 %v3749_v45  ;;  %v3713_v5 = vor.u32 %v4943_v60, %v3712_v59  ;;  %v3665_v33 = vor.u32 %v4931_v30, %v3664_v28  ;;  %v3648_v34 = vld [vmem:[%s7835_s2] sm:$0xf]  ;;  %v4948_v36 = vld [vmem:[%s7835_s2 + $0xb4] sm:$0xf0]  ;;  %v3669_v37 = vor.u32 %v4929_v31, %v3666_v32  ;;  %v4927_v38 = vld [vmem:[%s7835_s2 + $0xc] sm:$0xf0] }
  0x2b   :  { %v4942_v40 = vld [vmem:[%s7835_s2 + $0x8c] sm:$0xf]  ;;  %v3722_v41 = vld [vmem:[%s7835_s2 + $0x98] sm:$0xf0]  ;;  %v3650_v43 = vld [vmem:[%s7835_s2 + $0x10] sm:$0xf0]  ;;  %v3649_v45 = vor.u32 %v4927_v38, %v3648_v34 }
  0x2c   :  { %332 = vmatpush.bf16.msrb.mxu2 %v3609_v1  ;;  %v4941_v1 = vld [vmem:[%s7835_s2 + $0x84] sm:$0xf]  ;;  %v3725_v44 = vor.u32 %v4942_v40, %v3722_v41  ;;  %v3720_v48 = vld [vmem:[%s7835_s2 + $0x88] sm:$0xf]  ;;  %v4944_v49 = vld [vmem:[%s7835_s2 + $0x94] sm:$0xf0] }
  0x2d   :  { %365 = vmatpush.bf16.msrb.mxu3 %v3613_v2  ;;  %v3714_v2 = vld [vmem:[%s7835_s2 + $0x90] sm:$0xf0]  ;;  %v4938_v50 = vld [vmem:[%s7835_s2 + $0x6c] sm:$0xf]  ;;  %v3721_v51 = vor.u32 %v4944_v49, %v3720_v48  ;;  %v3704_v53 = vld [vmem:[%s7835_s2 + $0x68] sm:$0xf] }
  0x2e   :  { %630 = vmatpush.bf16.msrb.mxu0 %v3729_v55  ;;  %643 = vmatpush.bf16.msrb.mxu1 %v3733_v58  ;;  %v3717_v6 = vor.u32 %v4941_v1, %v3714_v2  ;;  %v4934_v55 = vld [vmem:[%s7835_s2 + $0x4c] sm:$0xf]  ;;  %v3690_v58 = vld [vmem:[%s7835_s2 + $0x58] sm:$0xf0]  ;;  %v3688_v59 = vld [vmem:[%s7835_s2 + $0x48] sm:$0xf] }
  0x2f   :  { %v4936_v60 = vld [vmem:[%s7835_s2 + $0x54] sm:$0xf0]  ;;  %v3672_v2 = vld [vmem:[%s7835_s2 + $0x28] sm:$0xf] }
  0x30   :  { %333 = vmatpush.bf16.msrb.mxu2 %v3593_v8  ;;  %v5747_v8 = vpack.c.b16 %v93_v62, %v93_v62  ;;  %v4930_v62 = vld [vmem:[%s7835_s2 + $0x2c] sm:$0xf] }
  0x31   :  { %366 = vmatpush.bf16.msrb.mxu3 %v3597_v9  ;;  %v3757_v9 = vor.u32 %v4950_v3, %v3754_v4  ;;  %v4932_v3 = vld [vmem:[%s7835_s2 + $0x34] sm:$0xf0]  ;;  %v4926_v4 = vld [vmem:[%s7835_s2 + $0xc] sm:$0xf] }
  0x32   :  { %631 = vmatpush.bf16.msrb.mxu0 %v3713_v5  ;;  %644 = vmatpush.bf16.msrb.mxu1 %v3717_v6  ;;  %v3673_v5 = vor.u32 %v4932_v3, %v3672_v2  ;;  %v3658_v6 = vld [vmem:[%s7835_s2 + $0x18] sm:$0xf0] }
  0x33   :  { %287 = vmatmul.bf16.gmra.mxu2 %v5637_v18  ;;  %277 = vmatmul.bf16.gmra.mxu0 %v5731_v61  ;;  %v3661_v10 = vor.u32 %v4926_v4, %v3658_v6 }
  0x34   :  { %334 = vmatpush.bf16.msrb.mxu2 %v3577_v14  ;;  %320 = vmatmul.bf16.gmra.mxu3 %v5637_v18  ;;  %v3698_v14 = vld [vmem:[%s7835_s2 + $0x70] sm:$0xf0] }
  0x35   :  { %367 = vmatpush.bf16.msrb.mxu3 %v3581_v15  ;;  %310 = vmatmul.bf16.gmra.mxu1 %v5731_v61  ;;  %v3701_v15 = vor.u32 %v4937_v12, %v3698_v14  ;;  %v66_v12 = vld [vmem:[%s7836_s3] sm:$0xf] }
  0x36   :  { %632 = vmatpush.bf16.msrb.mxu0 %v3697_v13  ;;  %v5890_v13 = vperm.slane %v66_v12, 0  ;;  %v5892_v14 = vperm.slane %v66_v12, 1 }
  0x37   :  { %645 = vmatpush.bf16.msrb.mxu1 %v3701_v15 }
  0x38   :  { %335 = vmatpush.bf16.msrb.mxu2 %v3561_v21  ;;  %v3738_v21 = vld [vmem:[%s7835_s2 + $0xb8] sm:$0xf0] }
  0x39   :  { %368 = vmatpush.bf16.msrb.mxu3 %v3565_v24  ;;  %v3741_v24 = vor.u32 %v4946_v19, %v3738_v21 }
  0x3a   :  { %633 = vmatpush.bf16.msrb.mxu0 %v3681_v25 }
  0x3b   :  { %646 = vmatpush.bf16.msrb.mxu1 %v3685_v29 }
  0x3c   :  { %336 = vmatpush.bf16.msrb.mxu2 %v3545_v35  ;;  %v3736_v35 = vld [vmem:[%s7835_s2 + $0xa8] sm:$0xf] }
  0x3d   :  { %369 = vmatpush.bf16.msrb.mxu3 %v3549_v42  ;;  %v3737_v39 = vor.u32 %v4948_v36, %v3736_v35  ;;  %v4925_v42 = vld [vmem:[%s7835_s2 + $0x4] sm:$0xf] }
  0x3e   :  { %634 = vmatpush.bf16.msrb.mxu0 %v3665_v33  ;;  %v3653_v46 = vor.u32 %v4925_v42, %v3650_v43 }
  0x3f   :  { %647 = vmatpush.bf16.msrb.mxu1 %v3669_v37 }
  0x40   :  { %337 = vmatpush.bf16.msrb.mxu2 %v3529_v54  ;;  %v4940_v54 = vld [vmem:[%s7835_s2 + $0x74] sm:$0xf0] }
  0x41   :  { %370 = vmatpush.bf16.msrb.mxu3 %v3533_v57  ;;  %v3705_v57 = vor.u32 %v4940_v54, %v3704_v53  ;;  %v5944_v53 = vperm.slane %v66_v12, 2  ;;  %v5946_v54 = vperm.slane %v66_v12, 3 }
  0x42   :  { %635 = vmatpush.bf16.msrb.mxu0 %v3649_v45 }
  0x43   :  { %292 = vmatmul.bf16.gmra.mxu2 %v5747_v8  ;;  %648 = vmatpush.bf16.msrb.mxu1 %v3653_v46 }
  0x44   :  { %654 = vmatpush.bf16.msra.mxu2 %v3769_v0  ;;  %325 = vmatmul.bf16.gmra.mxu3 %v5747_v8  ;;  %v3689_v0 = vor.u32 %v4936_v60, %v3688_v59 }
  0x45   :  { %667 = vmatpush.bf16.msra.mxu3 %v3773_v63  ;;  %636 = vmatmul.bf16.vlgmr.msrb.gmra.mxu0 %v5419_v47  ;;  %v3674_v63 = vld [vmem:[%s7835_s2 + $0x38] sm:$0xf0] }
  0x46   :  { %649 = vmatmul.bf16.vlgmr.msrb.gmra.mxu1 %v5419_v47  ;;  %v3677_v1 = vor.u32 %v4930_v62, %v3674_v63 }
  0x48   :  { %655 = vmatpush.bf16.msra.mxu2 %v3753_v20 }
  0x49   :  { %668 = vmatpush.bf16.msra.mxu3 %v3757_v9  ;;  %v4928_v9 = vld [vmem:[%s7835_s2 + $0x14] sm:$0xf0] }
  0x4c   :  { %656 = vmatpush.bf16.msra.mxu2 %v3737_v39 }
  0x4d   :  { %669 = vmatpush.bf16.msra.mxu3 %v3741_v24 }
  0x50   :  { %657 = vmatpush.bf16.msra.mxu2 %v3721_v51 }
  0x51   :  { %670 = vmatpush.bf16.msra.mxu3 %v3725_v44 }
  0x53   :  { %338 = vmatmul.bf16.vlgmr.msrb.gmra.mxu2 %v5612_v7 }
  0x54   :  { %371 = vmatmul.bf16.vlgmr.msrb.gmra.mxu3 %v5612_v7  ;;  %v3706_v7 = vld [vmem:[%s7835_s2 + $0x78] sm:$0xf0]  ;;  %658 = vmatpush.bf16.msra.mxu2 %v3705_v57 }
  0x55   :  { %v3709_v52 = vor.u32 %v4938_v50, %v3706_v7 }
  0x57   :  { %671 = vmatpush.bf16.msra.mxu3 %v3709_v52 }
  0x58   :  { %659 = vmatpush.bf16.msra.mxu2 %v3689_v0 }
  0x5c   :  { %660 = vmatpush.bf16.msra.mxu2 %v3673_v5 }
  0x63   :  { %343 = vmatmul.bf16.gmra.mxu2 %v5731_v61 }
  0x64   :  { %376 = vmatmul.bf16.gmra.mxu3 %v5731_v61  ;;  %v3693_v61 = vor.u32 %v4934_v55, %v3690_v58 }
  0x66   :  { %672 = vmatpush.bf16.msra.mxu3 %v3693_v61 }
  0x6a   :  { %673 = vmatpush.bf16.msra.mxu3 %v3677_v1 }
  0x6e   :  { %674 = vmatpush.bf16.msra.mxu3 %v3661_v10 }
  0x73   :  { %348 = vmatmul.bf16.gmra.mxu2 %v5575_v56 }
  0x74   :  { %381 = vmatmul.bf16.gmra.mxu3 %v5575_v56  ;;  %v3656_v56 = vld [vmem:[%s7835_s2 + $0x8] sm:$0xf] }
  0x75   :  { %v3657_v11 = vor.u32 %v4928_v9, %v3656_v56 }
  0x77   :  { %661 = vmatpush.bf16.msra.mxu2 %v3657_v11 }
  0x83   :  { %353 = vmatmul.bf16.gmra.mxu2 %v5637_v18 }
  0x84   :  { %386 = vmatmul.bf16.gmra.mxu3 %v5637_v18 }
  0x93   :  { %358 = vmatmul.bf16.gmra.mxu2 %v5747_v8 }
  0x94   :  { %391 = vmatmul.bf16.gmra.mxu3 %v5747_v8 }
  0xa0   :  { %v273_v20 = vpop.f32.mrf.mxu0 }
  0xa1   :  { %v274_v41 = vadd.f32 %v273_v20, %v5890_v13  ;;  %v4987_v20 = vld [vmem:[%s7835_s2 + $0xec] sm:$0xf0] }
  0xa2   :  { %v306_v21 = vpop.f32.mrf.mxu1 }
  0xa3   :  { %662 = vmatmul.bf16.vlgmr.msra.gmra.mxu2 %v5419_v47  ;;  %v307_v43 = vadd.f32 %v306_v21, %v5892_v14  ;;  %v4985_v21 = vld [vmem:[%s7835_s2 + $0xe4] sm:$0xf] }
  0xa4   :  { %675 = vmatmul.bf16.vlgmr.msra.gmra.mxu3 %v5419_v47 }
  0xa6   :  { %v283_v15 = vpop.f32.mrf.mxu2 }
  0xa7   :  { %v5895_v16 = vadd.f32 %v283_v15, %v5890_v13  ;;  %v316_v17 = vpop.f32.mrf.mxu3 }
  0xa8   :  { %v5898_v18 = vadd.f32 %v316_v17, %v5892_v14  ;;  %v5910_v26 = vpop.f32.mrf.mxu0  ;;  %v3891_v17 = vld [vmem:[%s7835_s2 + $0xe0] sm:$0xf] }
  0xaa   :  { %v5912_v27 = vpop.f32.mrf.mxu1 }
  0xae   :  { %v5900_v19 = vpop.f32.mrf.mxu2 }
  0xaf   :  { %v5902_v8 = vpop.f32.mrf.mxu3 }
  0xb0   :  { %v278_v30 = vpop.f32.mrf.mxu0 }
  0xb1   :  { %v5919_v32 = vadd.f32 %v278_v30, %v5890_v13  ;;  %v3899_v30 = vld [vmem:[%s7835_s2 + $0xe8] sm:$0xf] }
  0xb2   :  { %v311_v31 = vpop.f32.mrf.mxu1 }
  0xb3   :  { %v5922_v33 = vadd.f32 %v311_v31, %v5892_v14  ;;  %v4988_v31 = vld [vmem:[%s7835_s2 + $0xf4] sm:$0xf0] }
  0xb6   :  { %v288_v22 = vpop.f32.mrf.mxu2 }
  0xb7   :  { %v5905_v23 = vadd.f32 %v288_v22, %v5890_v13  ;;  %v321_v24 = vpop.f32.mrf.mxu3  ;;  %v3892_v22 = vor.u32 %v4987_v20, %v3891_v17  ;;  %v3859_v20 = vld [vmem:[%s7835_s2 + $0xa0] sm:$0xf] }
  0xb8   :  { %v5908_v25 = vadd.f32 %v321_v24, %v5892_v14  ;;  %v5930_v38 = vpop.f32.mrf.mxu0  ;;  %v3893_v24 = vld [vmem:[%s7835_s2 + $0xf0] sm:$0xf0] }
  0xb9   :  { %945 = vmatpush.bf16.msra.mxu0 %v3892_v22  ;;  %v4977_v22 = vld [vmem:[%s7835_s2 + $0xa4] sm:$0xf] }
  0xba   :  { %v5932_v39 = vpop.f32.mrf.mxu1 }
  0xbe   :  { %v5914_v28 = vpop.f32.mrf.mxu2 }
  0xbf   :  { %v5916_v29 = vpop.f32.mrf.mxu3 }
  0xc2   :  { %v637_v44 = vpop.f32.mrf.mxu0 }
  0xc3   :  { %v680_v45 = vadd.f32 %v637_v44, %v274_v41  ;;  %v650_v46 = vpop.f32.mrf.mxu1  ;;  %v3901_v41 = vld [vmem:[%s7835_s2 + $0xf8] sm:$0xf0] }
  0xc4   :  { %v681_v47 = vadd.f32 %v650_v46, %v307_v43  ;;  %v4983_v46 = vld [vmem:[%s7835_s2 + $0xcc] sm:$0xf0] }
  0xc5   :  { %v3774_v56 = vmul.f32 -1.442695, %v680_v45  ;;  %v3875_v45 = vld [vmem:[%s7835_s2 + $0xc0] sm:$0xf] }
  0xc6   :  { %v293_v34 = vpop.f32.mrf.mxu2  ;;  %v3775_v2 = vmul.f32 -1.442695, %v681_v47  ;;  %v4981_v47 = vld [vmem:[%s7835_s2 + $0xc4] sm:$0xf] }
  0xc7   :  { %v5925_v35 = vadd.f32 %v293_v34, %v5890_v13  ;;  %v326_v36 = vpop.f32.mrf.mxu3  ;;  %v3896_v34 = vor.u32 %v4985_v21, %v3893_v24  ;;  %v4979_v21 = vld [vmem:[%s7835_s2 + $0xac] sm:$0xf0] }
  0xc8   :  { %v5928_v37 = vadd.f32 %v326_v36, %v5892_v14  ;;  %5249 = vpow2.f32 %v3775_v2  ;;  %v3900_v36 = vor.u32 %v4988_v31, %v3899_v30  ;;  %v3860_v24 = vor.u32 %v4979_v21, %v3859_v20  ;;  %v3861_v30 = vld [vmem:[%s7835_s2 + $0xb0] sm:$0xf0]  ;;  %v3867_v31 = vld [vmem:[%s7835_s2 + $0xa8] sm:$0xf] }
  0xc9   :  { %5251 = vpow2.f32 %v3774_v56  ;;  %958 = vmatpush.bf16.msra.mxu1 %v3896_v34  ;;  %v3885_v56 = vld [vmem:[%s7835_s2 + $0xd8] sm:$0xf0]  ;;  %v4980_v34 = vld [vmem:[%s7835_s2 + $0xb4] sm:$0xf0] }
  0xca   :  { %v639_v50 = vpop.f32.mrf.mxu0  ;;  %971 = vmatpush.bf16.msrb.mxu2 %v3900_v36  ;;  %v3864_v36 = vor.u32 %v4977_v22, %v3861_v30  ;;  %v3827_v30 = vld [vmem:[%s7835_s2 + $0x60] sm:$0xf] }
  0xcb   :  { %v652_v51 = vpop.f32.mrf.mxu1  ;;  %v3876_v50 = vor.u32 %v4983_v46, %v3875_v45  ;;  %v3843_v45 = vld [vmem:[%s7835_s2 + $0x80] sm:$0xf]  ;;  %v4975_v46 = vld [vmem:[%s7835_s2 + $0x8c] sm:$0xf0] }
  0xcc   :  { %v3877_v51 = vld [vmem:[%s7835_s2 + $0xd0] sm:$0xf0] }
  0xcd   :  { %v3880_v2 = vor.u32 %v4981_v47, %v3877_v51  ;;  %946 = vmatpush.bf16.msra.mxu0 %v3876_v50  ;;  %v4973_v47 = vld [vmem:[%s7835_s2 + $0x84] sm:$0xf]  ;;  %v3844_v50 = vor.u32 %v4975_v46, %v3843_v45  ;;  %v3845_v51 = vld [vmem:[%s7835_s2 + $0x90] sm:$0xf0] }
  0xce   :  { %v295_v40 = vpop.f32.mrf.mxu2  ;;  %v5250_v12 = vpop.eup %5249 }
  0xcf   :  { %v328_v42 = vpop.f32.mrf.mxu3  ;;  %v4986_v40 = vld [vmem:[%s7835_s2 + $0xec] sm:$0xf]  ;;  %v6000_v43 = vadd.f32 1.0, %v5250_v12  ;;  %959 = vmatpush.bf16.msra.mxu1 %v3880_v2  ;;  %v3848_v2 = vor.u32 %v4973_v47, %v3845_v51 }
  0xd0   :  { %v5252_v42 = vpop.eup %5251  ;;  %v3904_v44 = vor.u32 %v4986_v40, %v3901_v41  ;;  %v3868_v40 = vor.u32 %v4980_v34, %v3867_v31  ;;  %v4978_v41 = vld [vmem:[%s7835_s2 + $0xac] sm:$0xf]  ;;  %v4971_v31 = vld [vmem:[%s7835_s2 + $0x6c] sm:$0xf0]  ;;  %v4969_v34 = vld [vmem:[%s7835_s2 + $0x64] sm:$0xf] }
  0xd1   :  { %5253 = vrcp.f32 %v6000_v43  ;;  %947 = vmatpush.bf16.msra.mxu0 %v3860_v24  ;;  %v4970_v47 = vld [vmem:[%s7835_s2 + $0x6c] sm:$0xf]  ;;  %vm712_vm0 = vweird.f32 %v6000_v43 }
  0xd2   :  { %984 = vmatpush.bf16.msrb.mxu3 %v3904_v44 }
  0xd3   :  { %960 = vmatpush.bf16.msra.mxu1 %v3864_v36  ;;  %v3828_v36 = vor.u32 %v4971_v31, %v3827_v30 }
  0xd5   :  { %948 = vmatpush.bf16.msra.mxu0 %v3844_v50  ;;  %v3837_v50 = vld [vmem:[%s7835_s2 + $0x78] sm:$0xf0] }
  0xd6   :  { %v5936_v48 = vpop.f32.mrf.mxu2 }
  0xd7   :  { %v5938_v49 = vpop.f32.mrf.mxu3  ;;  %961 = vmatpush.bf16.msra.mxu1 %v3848_v2  ;;  %v4965_v2 = vld [vmem:[%s7835_s2 + $0x44] sm:$0xf] }
  0xd9   :  { %949 = vmatpush.bf16.msra.mxu0 %v3828_v36  ;;  %v4966_v36 = vld [vmem:[%s7835_s2 + $0x4c] sm:$0xf] }
  0xde   :  { %v5940_v7 = vpop.f32.mrf.mxu2 }
  0xdf   :  { %v5942_v52 = vpop.f32.mrf.mxu3 }
  0xe6   :  { %v344_v55 = vpop.f32.mrf.mxu2 }
  0xe7   :  { %v5949_v57 = vadd.f32 %v344_v55, %v5944_v53  ;;  %v377_v58 = vpop.f32.mrf.mxu3  ;;  %v3883_v55 = vld [vmem:[%s7835_s2 + $0xc8] sm:$0xf] }
  0xe8   :  { %v5952_v59 = vadd.f32 %v377_v58, %v5946_v54  ;;  %v4984_v58 = vld [vmem:[%s7835_s2 + $0xd4] sm:$0xf0] }
  0xee   :  { %v5954_v60 = vpop.f32.mrf.mxu2 }
  0xef   :  { %v5956_v61 = vpop.f32.mrf.mxu3 }
  0xf6   :  { %v349_v62 = vpop.f32.mrf.mxu2 }
  0xf7   :  { %v5959_v63 = vadd.f32 %v349_v62, %v5944_v53  ;;  %v382_v0 = vpop.f32.mrf.mxu3  ;;  %v6020_v62 = vadd.f32 1.0, %v5252_v42  ;;  %v3869_v42 = vld [vmem:[%s7835_s2 + $0xb8] sm:$0xf0] }
  0xf8   :  { %v5962_v1 = vadd.f32 %v382_v0, %v5946_v54  ;;  %v3872_v44 = vor.u32 %v4978_v41, %v3869_v42  ;;  %v3835_v41 = vld [vmem:[%s7835_s2 + $0x68] sm:$0xf]  ;;  %v4972_v42 = vld [vmem:[%s7835_s2 + $0x74] sm:$0xf0] }
  0xf9   :  { %5255 = vrcp.f32 %v6020_v62  ;;  %v3836_v46 = vor.u32 %v4972_v42, %v3835_v41  ;;  %vm693_vm2 = vweird.f32 %v6020_v62 }
  0xfe   :  { %v351_v3 = vpop.f32.mrf.mxu2 }
  0xff   :  { %v5965_v4 = vadd.f32 %v351_v3, %v5944_v53  ;;  %v384_v5 = vpop.f32.mrf.mxu3  ;;  %v3884_v3 = vor.u32 %v4984_v58, %v3883_v55  ;;  %v3851_v55 = vld [vmem:[%s7835_s2 + $0x88] sm:$0xf]  ;;  %v4976_v58 = vld [vmem:[%s7835_s2 + $0x94] sm:$0xf0] }
 0x100   :  { %v5968_v6 = vadd.f32 %v384_v5, %v5946_v54  ;;  %v4982_v5 = vld [vmem:[%s7835_s2 + $0xcc] sm:$0xf] }
 0x101   :  { %v3888_v12 = vor.u32 %v4982_v5, %v3885_v56  ;;  %972 = vmatpush.bf16.msrb.mxu2 %v3884_v3  ;;  %v3852_v3 = vor.u32 %v4976_v58, %v3851_v55  ;;  %v4974_v5 = vld [vmem:[%s7835_s2 + $0x8c] sm:$0xf]  ;;  %v3853_v56 = vld [vmem:[%s7835_s2 + $0x98] sm:$0xf0]  ;;  %v3840_v55 = vor.u32 %v4970_v47, %v3837_v50  ;;  %v3811_v58 = vld [vmem:[%s7835_s2 + $0x40] sm:$0xf] }
 0x102   :  { %v3856_v21 = vor.u32 %v4974_v5, %v3853_v56  ;;  %v3813_v5 = vld [vmem:[%s7835_s2 + $0x50] sm:$0xf0]  ;;  %v3819_v56 = vld [vmem:[%s7835_s2 + $0x48] sm:$0xf]  ;;  %v4961_v47 = vld [vmem:[%s7835_s2 + $0x24] sm:$0xf] }
 0x103   :  { %985 = vmatpush.bf16.msrb.mxu3 %v3888_v12  ;;  %v3816_v31 = vor.u32 %v4965_v2, %v3813_v5  ;;  %v4962_v5 = vld [vmem:[%s7835_s2 + $0x2c] sm:$0xf] }
 0x105   :  { %973 = vmatpush.bf16.msrb.mxu2 %v3868_v40  ;;  %v3829_v40 = vld [vmem:[%s7835_s2 + $0x70] sm:$0xf0] }
 0x106   :  { %v354_v9 = vpop.f32.mrf.mxu2  ;;  %v3832_v45 = vor.u32 %v4969_v34, %v3829_v40  ;;  %v3821_v40 = vld [vmem:[%s7835_s2 + $0x58] sm:$0xf0] }
 0x107   :  { %v5971_v10 = vadd.f32 %v354_v9, %v5944_v53  ;;  %v387_v11 = vpop.f32.mrf.mxu3  ;;  %986 = vmatpush.bf16.msrb.mxu3 %v3872_v44 }
 0x108   :  { %v5974_v15 = vadd.f32 %v387_v11, %v5946_v54  ;;  %962 = vmatpush.bf16.msra.mxu1 %v3832_v45  ;;  %v3824_v45 = vor.u32 %v4966_v36, %v3821_v40  ;;  %v3781_v36 = vld [vmem:[%s7835_s2 + $0x10] sm:$0xf0] }
 0x109   :  { %974 = vmatpush.bf16.msrb.mxu2 %v3852_v3 }
 0x10b   :  { %987 = vmatpush.bf16.msrb.mxu3 %v3856_v21 }
 0x10c   :  { %963 = vmatpush.bf16.msra.mxu1 %v3816_v31  ;;  %v4959_v31 = vld [vmem:[%s7835_s2 + $0xc] sm:$0xf0] }
 0x10d   :  { %975 = vmatpush.bf16.msrb.mxu2 %v3836_v46  ;;  %v4963_v46 = vld [vmem:[%s7835_s2 + $0x2c] sm:$0xf0] }
 0x10e   :  { %v356_v0 = vpop.f32.mrf.mxu2 }
 0x10f   :  { %v6029_v9 = vadd.f32 %v356_v0, %v5944_v53  ;;  %v389_v11 = vpop.f32.mrf.mxu3  ;;  %988 = vmatpush.bf16.msrb.mxu3 %v3840_v55  ;;  %v3803_v55 = vld [vmem:[%s7835_s2 + $0x28] sm:$0xf] }
 0x110   :  { %v6032_v17 = vadd.f32 %v389_v11, %v5946_v54  ;;  %v6084_v11 = vpop.eup %5253 }
 0x111   :  { %v6089_v22 = vpop.eup %5255  ;;  %v708_v44 = vmul.f32 %v6084_v11, %v6000_v43  ;;  %vm713_vm1 = vweird.f32 %v6084_v11 }
 0x112   :  { %v689_v51 = vmul.f32 %v6089_v22, %v6020_v62  ;;  %vm694_vm3 = vweird.f32 %v6089_v22  ;;  %vm6212_vm4 = vmor %vm712_vm0, %vm713_vm1 }
 0x113   :  { %v709_v21 = vsub.f32 1.0, %v708_v44  ;;  %v3795_v44 = vld [vmem:[%s7835_s2 + $0x20] sm:$0xf]  ;;  %989 = vmatpush.bf16.msrb.mxu3 %v3824_v45  ;;  %v3787_v45 = vld [vmem:[%s7835_s2 + $0x8] sm:$0xf]  ;;  %vm695_vm5 = vmor %vm693_vm2, %vm694_vm3 }
 0x114   :  { %v690_v41 = vsub.f32 1.0, %v689_v51  ;;  %v3796_v50 = vor.u32 %v4963_v46, %v3795_v44  ;;  %v3797_v51 = vld [vmem:[%s7835_s2 + $0x30] sm:$0xf0]  ;;  %v4960_v44 = vld [vmem:[%s7835_s2 + $0x14] sm:$0xf0] }
 0x115   :  { %v3800_v2 = vor.u32 %v4961_v47, %v3797_v51  ;;  %v4958_v46 = vld [vmem:[%s7835_s2 + $0xc] sm:$0xf]  ;;  %v718_v47 = vand.u32 2147483648, %v6000_v43  ;;  %v3789_v51 = vld [vmem:[%s7835_s2 + $0x18] sm:$0xf0] }
 0x116   :  { %v359_v0 = vpop.f32.mrf.mxu2  ;;  %v691_v40 = vmul.f32 %v6089_v22, %v690_v41  ;;  %v373_v41 = vadd.f32 %v5938_v49, %v5946_v54  ;;  %v699_v49 = vand.u32 2147483648, %v6020_v62 }
 0x117   :  { %v6087_v12 = vadd.f32 %v359_v0, %v5944_v53  ;;  %v392_v20 = vpop.f32.mrf.mxu3  ;;  %v4967_v0 = vld [vmem:[%s7835_s2 + $0x4c] sm:$0xf0]  ;;  %964 = vmatpush.bf16.msra.mxu1 %v3800_v2  ;;  %v716_v2 = vand.u32 2147483647, %v6000_v43 }
 0x118   :  { %v6092_v24 = vadd.f32 %v392_v20, %v5946_v54  ;;  %v3812_v3 = vor.u32 %v4967_v0, %v3811_v58  ;;  %v4968_v20 = vld [vmem:[%s7835_s2 + $0x54] sm:$0xf0]  ;;  %v710_v0 = vmul.f32 %v6084_v11, %v709_v21 }
 0x119   :  { %v3820_v34 = vor.u32 %v4968_v20, %v3819_v56  ;;  %v4964_v58 = vld [vmem:[%s7835_s2 + $0x34] sm:$0xf0]  ;;  %v3805_v56 = vld [vmem:[%s7835_s2 + $0x38] sm:$0xf0]  ;;  %v3779_v20 = vld [vmem:[%s7835_s2] sm:$0xf] }
 0x11a   :  { %950 = vmatpush.bf16.msra.mxu0 %v3812_v3  ;;  %v3804_v3 = vor.u32 %v4964_v58, %v3803_v55  ;;  %v3808_v21 = vor.u32 %v4962_v5, %v3805_v56  ;;  %v711_v58 = vadd.f32 %v6084_v11, %v710_v0  ;;  %v697_v0 = vand.u32 2147483647, %v6020_v62 }
 0x11b   :  { %976 = vmatpush.bf16.msrb.mxu2 %v3820_v34  ;;  %v4957_v34 = vld [vmem:[%s7835_s2 + $0x4] sm:$0xf]  ;;  %vm717_vm6 = vcmp.eq.f32.partialorder %v716_v2, 8.507059e+37 }
 0x11c   :  { %990 = vmatpush.bf16.msrb.mxu3 %v3808_v21  ;;  %v692_v21 = vadd.f32 %v6089_v22, %v691_v40  ;;  %v715_v43 = vsel %vm6212_vm4, %v6084_v11, %v711_v58  ;;  %vm698_vm7 = vcmp.eq.f32.partialorder %v697_v0, 8.507059e+37 }
 0x11e   :  { %v361_v30 = vpop.f32.mrf.mxu2  ;;  %951 = vmatpush.bf16.msra.mxu0 %v3796_v50  ;;  %v3788_v50 = vor.u32 %v4960_v44, %v3787_v45  ;;  %v696_v40 = vsel %vm695_vm5, %v6089_v22, %v692_v21 }
 0x11f   :  { %v394_v42 = vpop.f32.mrf.mxu3  ;;  %v340_v30 = vadd.f32 %v5936_v48, %v5944_v53  ;;  %977 = vmatpush.bf16.msrb.mxu2 %v3804_v3  ;;  %v3780_v48 = vor.u32 %v4959_v31, %v3779_v20  ;;  %v3792_v3 = vor.u32 %v4958_v46, %v3789_v51 }
 0x120   :  { %v3784_v42 = vor.u32 %v4957_v34, %v3781_v36  ;;  %v700_v36 = vor.u32 1.1754944e-38, %v699_v49 }
 0x121   :  { %991 = vmatpush.bf16.msrb.mxu3 %v3792_v3 }
 0x122   :  { %952 = vmatpush.bf16.msra.mxu0 %v3780_v48  ;;  %965 = vmatpush.bf16.msra.mxu1 %v3784_v42  ;;  %v701_v44 = vsel %vm698_vm7, %v700_v36, %v696_v40  ;;  %v4024_v40 = vld [vmem:[%s7835_s2 + $0xf0] sm:$0xf0] }
 0x123   :  { %978 = vmatpush.bf16.msrb.mxu2 %v3788_v50 }
 0x126   :  { %v663_v55 = vpop.f32.mrf.mxu2 }
 0x127   :  { %v682_v5 = vadd.f32 %v663_v55, %v340_v30  ;;  %v676_v20 = vpop.f32.mrf.mxu3  ;;  %v719_v30 = vor.u32 1.1754944e-38, %v718_v47 }
 0x128   :  { %v683_v31 = vadd.f32 %v676_v20, %v373_v41 }
 0x129   :  { %5257 = vtanh.f32 %v682_v5  ;;  %v720_v48 = vsel %vm717_vm6, %v719_v30, %v715_v43  ;;  %v4022_v30 = vld [vmem:[%s7835_s2 + $0xe0] sm:$0xf]  ;;  %v5019_v43 = vld [vmem:[%s7835_s2 + $0xec] sm:$0xf0] }
 0x12a   :  { %v3776_v34 = vmul.f32 -1.442695, %v683_v31  ;;  %v742_v62 = vmul.f32 0.0, %v720_v48  ;;  %v4023_v36 = vor.u32 %v5019_v43, %v4022_v30  ;;  %v4030_v48 = vld [vmem:[%s7835_s2 + $0xe8] sm:$0xf] }
 0x12b   :  { %v5009_v30 = vld [vmem:[%s7835_s2 + $0xa4] sm:$0xf] }
 0x12c   :  { %5259 = vpow2.f32 %v3776_v34  ;;  %v5017_v34 = vld [vmem:[%s7835_s2 + $0xe4] sm:$0xf]  ;;  %1262 = vmatpush.bf16.msrb.mxu0 %v4023_v36  ;;  %v3998_v36 = vld [vmem:[%s7835_s2 + $0xa8] sm:$0xf] }
 0x12e   :  { %v665_v42 = vpop.f32.mrf.mxu2 }
 0x12f   :  { %v5258_v45 = vpop.eup %5257  ;;  %v678_v46 = vpop.f32.mrf.mxu3  ;;  %v5020_v42 = vld [vmem:[%s7835_s2 + $0xf4] sm:$0xf0] }
 0x130   :  { %v743_v41 = vmul.f32 %v5258_v45, %v701_v44  ;;  %v4027_v45 = vor.u32 %v5017_v34, %v4024_v40  ;;  %v4031_v44 = vor.u32 %v5020_v42, %v4030_v48  ;;  %v5018_v46 = vld [vmem:[%s7835_s2 + $0xec] sm:$0xf]  ;;  %v3992_v34 = vld [vmem:[%s7835_s2 + $0xb0] sm:$0xf0]  ;;  %v5012_v40 = vld [vmem:[%s7835_s2 + $0xb4] sm:$0xf0] }
 0x131   :  { %v3995_v48 = vor.u32 %v5009_v30, %v3992_v34  ;;  %v3999_v42 = vor.u32 %v5012_v40, %v3998_v36  ;;  %v3960_v30 = vld [vmem:[%s7835_s2 + $0x70] sm:$0xf0]  ;;  %v5004_v34 = vld [vmem:[%s7835_s2 + $0x74] sm:$0xf0]  ;;  %v276_v36 = vadd.f32 %v5910_v26, %v5890_v13  ;;  %v309_v40 = vadd.f32 %v5912_v27, %v5892_v14  ;;  %v3942_v26 = vld [vmem:[%s7835_s2 + $0x40] sm:$0xf] }
 0x132   :  { %v5260_v47 = vpop.eup %5259  ;;  %v6226_v50 = vadd.f32 %v743_v41, %v742_v62  ;;  %v4032_v62 = vld [vmem:[%s7835_s2 + $0xf8] sm:$0xf0]  ;;  %1275 = vmatpush.bf16.msrb.mxu1 %v4027_v45  ;;  %1288 = vmatpush.bf16.msra.mxu2 %v4031_v44  ;;  %v5010_v45 = vld [vmem:[%s7835_s2 + $0xac] sm:$0xf]  ;;  %v4999_v27 = vld [vmem:[%s7835_s2 + $0x4c] sm:$0xf0] }
 0x133   :  { %v726_v51 = vadd.f32 1.0, %v5260_v47  ;;  %v4035_v41 = vor.u32 %v5018_v46, %v4032_v62  ;;  %v4006_v47 = vld [vmem:[%s7835_s2 + $0xc0] sm:$0xf]  ;;  %v4000_v44 = vld [vmem:[%s7835_s2 + $0xb8] sm:$0xf0] }
 0x134   :  { %v4003_v46 = vor.u32 %v5010_v45, %v4000_v44  ;;  %v3974_v62 = vld [vmem:[%s7835_s2 + $0x80] sm:$0xf]  ;;  %v5002_v45 = vld [vmem:[%s7835_s2 + $0x6c] sm:$0xf]  ;;  %v3968_v44 = vld [vmem:[%s7835_s2 + $0x78] sm:$0xf0] }
 0x135   :  { %5261 = vrcp.f32 %v726_v51  ;;  %v738_v22 = vand.u32 2147483648, %v726_v51  ;;  %v736_v3 = vand.u32 2147483647, %v726_v51  ;;  %vm732_vm9 = vweird.f32 %v726_v51  ;;  %1301 = vmatpush.bf16.msra.mxu3 %v4035_v41  ;;  %v5007_v41 = vld [vmem:[%s7835_s2 + $0x8c] sm:$0xf0] }
 0x136   :  { %5263 = vtanh.f32 %v6226_v50 }
 0x137   :  { %v739_v49 = vor.u32 1.1754944e-38, %v738_v22  ;;  %vm737_vm11 = vcmp.eq.f32.partialorder %v736_v3, 8.507059e+37  ;;  %v4014_v22 = vld [vmem:[%s7835_s2 + $0xc8] sm:$0xf] }
 0x13b   :  { %v5262_v11 = vpop.eup %5261 }
 0x13c   :  { %v728_v55 = vmul.f32 %v5262_v11, %v726_v51  ;;  %vm733_vm8 = vweird.f32 %v5262_v11  ;;  %v5264_v20 = vpop.eup %5263  ;;  %v5015_v51 = vld [vmem:[%s7835_s2 + $0xcc] sm:$0xf0] }
 0x13d   :  { %vm734_vm10 = vmor %vm732_vm9, %vm733_vm8 }
 0x13e   :  { %v729_v58 = vsub.f32 1.0, %v728_v55  ;;  %v4007_v55 = vor.u32 %v5015_v51, %v4006_v47  ;;  %v5005_v47 = vld [vmem:[%s7835_s2 + $0x84] sm:$0xf]  ;;  %v3975_v51 = vor.u32 %v5007_v41, %v3974_v62  ;;  %v3971_v41 = vor.u32 %v5002_v45, %v3968_v44  ;;  %v4996_v44 = vld [vmem:[%s7835_s2 + $0x34] sm:$0xf0] }
 0x140   :  { %v730_v2 = vmul.f32 %v5262_v11, %v729_v58  ;;  %v4008_v58 = vld [vmem:[%s7835_s2 + $0xd0] sm:$0xf0]  ;;  %1263 = vmatpush.bf16.msrb.mxu0 %v4007_v55  ;;  %v3982_v55 = vld [vmem:[%s7835_s2 + $0x88] sm:$0xf] }
 0x142   :  { %v731_v5 = vadd.f32 %v5262_v11, %v730_v2  ;;  %v5016_v2 = vld [vmem:[%s7835_s2 + $0xd4] sm:$0xf0] }
 0x144   :  { %v735_v56 = vsel %vm734_vm10, %v5262_v11, %v731_v5  ;;  %v5013_v11 = vld [vmem:[%s7835_s2 + $0xc4] sm:$0xf]  ;;  %v4015_v5 = vor.u32 %v5016_v2, %v4014_v22 }
 0x145   :  { %v740_v21 = vsel %vm737_vm11, %v739_v49, %v735_v56  ;;  %v4011_v3 = vor.u32 %v5013_v11, %v4008_v58  ;;  %v5014_v49 = vld [vmem:[%s7835_s2 + $0xcc] sm:$0xf]  ;;  %v4016_v56 = vld [vmem:[%s7835_s2 + $0xd8] sm:$0xf0]  ;;  %v3976_v11 = vld [vmem:[%s7835_s2 + $0x90] sm:$0xf0] }
 0x146   :  { %v6229_v0 = vmul.f32 %v5264_v20, %v740_v21  ;;  %v4019_v20 = vor.u32 %v5014_v49, %v4016_v56  ;;  %1289 = vmatpush.bf16.msra.mxu2 %v4015_v5  ;;  %v3990_v21 = vld [vmem:[%s7835_s2 + $0xa0] sm:$0xf]  ;;  %v5008_v58 = vld [vmem:[%s7835_s2 + $0x94] sm:$0xf0]  ;;  %v3979_v22 = vor.u32 %v5005_v47, %v3976_v11  ;;  %v3984_v5 = vld [vmem:[%s7835_s2 + $0x98] sm:$0xf0] }
 0x147   :  { %1276 = vmatpush.bf16.msrb.mxu1 %v4011_v3  ;;  %v3983_v2 = vor.u32 %v5008_v58, %v3982_v55  ;;  %v5006_v3 = vld [vmem:[%s7835_s2 + $0x8c] sm:$0xf]  ;;  %v3958_v56 = vld [vmem:[%s7835_s2 + $0x60] sm:$0xf]  ;;  %v4997_v11 = vld [vmem:[%s7835_s2 + $0x44] sm:$0xf]  ;;  %v3943_v55 = vor.u32 %v4999_v27, %v3942_v26 }
 0x148   :  { %v752_v31 = vpack.c.bf16 %v6229_v0, %v6229_v0  ;;  %1302 = vmatpush.bf16.msra.mxu3 %v4019_v20  ;;  %v3987_v49 = vor.u32 %v5006_v3, %v3984_v5  ;;  %v5003_v20 = vld [vmem:[%s7835_s2 + $0x6c] sm:$0xf0]  ;;  %v3944_v58 = vld [vmem:[%s7835_s2 + $0x50] sm:$0xf0] }
 0x149   :  { %v4991_v27 = vld [vmem:[%s7835_s2 + $0xc] sm:$0xf0] }
 0x14a   :  { %953 = vmatmul.bf16.vlgmr.msra.gmra.mxu0 %v752_v31  ;;  %966 = vmatmul.bf16.vlgmr.msra.gmra.mxu1 %v752_v31 }
 0x14b   :  { %979 = vmatmul.bf16.vlgmr.msrb.gmra.mxu2 %v752_v31  ;;  %992 = vmatmul.bf16.vlgmr.msrb.gmra.mxu3 %v752_v31  ;;  %v5011_v31 = vld [vmem:[%s7835_s2 + $0xac] sm:$0xf0] }
 0x14c   :  { %v3991_v43 = vor.u32 %v5011_v31, %v3990_v21  ;;  %1277 = vmatpush.bf16.msrb.mxu1 %v3995_v48  ;;  %1290 = vmatpush.bf16.msra.mxu2 %v3999_v42  ;;  %v5001_v21 = vld [vmem:[%s7835_s2 + $0x64] sm:$0xf]  ;;  %v3959_v31 = vor.u32 %v5003_v20, %v3958_v56  ;;  %v4998_v20 = vld [vmem:[%s7835_s2 + $0x4c] sm:$0xf] }
 0x14d   :  { %1303 = vmatpush.bf16.msra.mxu3 %v4003_v46  ;;  %v3963_v48 = vor.u32 %v5001_v21, %v3960_v30  ;;  %v3952_v21 = vld [vmem:[%s7835_s2 + $0x58] sm:$0xf0]  ;;  %v4995_v30 = vld [vmem:[%s7835_s2 + $0x2c] sm:$0xf0] }
 0x14e   :  { %1264 = vmatpush.bf16.msrb.mxu0 %v3991_v43  ;;  %v3966_v43 = vld [vmem:[%s7835_s2 + $0x68] sm:$0xf] }
 0x14f   :  { %v3967_v42 = vor.u32 %v5004_v34, %v3966_v43  ;;  %v3955_v43 = vor.u32 %v4998_v20, %v3952_v21  ;;  %v4990_v21 = vld [vmem:[%s7835_s2 + $0xc] sm:$0xf] }
 0x150   :  { %1278 = vmatpush.bf16.msrb.mxu1 %v3979_v22  ;;  %1291 = vmatpush.bf16.msra.mxu2 %v3983_v2  ;;  %v3950_v22 = vld [vmem:[%s7835_s2 + $0x48] sm:$0xf]  ;;  %v5000_v2 = vld [vmem:[%s7835_s2 + $0x54] sm:$0xf0] }
 0x151   :  { %1304 = vmatpush.bf16.msra.mxu3 %v3987_v49  ;;  %v3947_v49 = vor.u32 %v4997_v11, %v3944_v58  ;;  %v3951_v56 = vor.u32 %v5000_v2, %v3950_v22  ;;  %v4989_v11 = vld [vmem:[%s7835_s2 + $0x4] sm:$0xf] }
 0x152   :  { %1265 = vmatpush.bf16.msrb.mxu0 %v3975_v51 }
 0x154   :  { %1279 = vmatpush.bf16.msrb.mxu1 %v3963_v48  ;;  %1292 = vmatpush.bf16.msra.mxu2 %v3967_v42  ;;  %v3934_v48 = vld [vmem:[%s7835_s2 + $0x28] sm:$0xf]  ;;  %v375_v42 = vadd.f32 %v5942_v52, %v5946_v54  ;;  %v3910_v52 = vld [vmem:[%s7835_s2] sm:$0xf] }
 0x155   :  { %1305 = vmatpush.bf16.msra.mxu3 %v3971_v41  ;;  %v3911_v2 = vor.u32 %v4991_v27, %v3910_v52 }
 0x156   :  { %1266 = vmatpush.bf16.msrb.mxu0 %v3959_v31  ;;  %v3926_v31 = vld [vmem:[%s7835_s2 + $0x20] sm:$0xf] }
 0x157   :  { %v3927_v34 = vor.u32 %v4995_v30, %v3926_v31  ;;  %v3920_v31 = vld [vmem:[%s7835_s2 + $0x18] sm:$0xf0] }
 0x158   :  { %1280 = vmatpush.bf16.msrb.mxu1 %v3947_v49  ;;  %1293 = vmatpush.bf16.msra.mxu2 %v3951_v56  ;;  %v4992_v49 = vld [vmem:[%s7835_s2 + $0x14] sm:$0xf0] }
 0x159   :  { %1306 = vmatpush.bf16.msra.mxu3 %v3955_v43 }
 0x15a   :  { %1267 = vmatpush.bf16.msrb.mxu0 %v3943_v55 }
 0x15e   :  { %1268 = vmatpush.bf16.msrb.mxu0 %v3927_v34  ;;  %v3923_v34 = vor.u32 %v4990_v21, %v3920_v31 }
 0x162   :  { %1269 = vmatpush.bf16.msrb.mxu0 %v3911_v2 }
 0x1c7   :  { %v954_v46 = vpop.f32.mrf.mxu0  ;;  %v967_v62 = vpop.f32.mrf.mxu1 }
 0x1c8   :  { %v997_v47 = vadd.f32 %v954_v46, %v276_v36  ;;  %v998_v51 = vadd.f32 %v967_v62, %v309_v40  ;;  %v4993_v36 = vld [vmem:[%s7835_s2 + $0x24] sm:$0xf]  ;;  %v3928_v40 = vld [vmem:[%s7835_s2 + $0x30] sm:$0xf0]  ;;  %v4994_v46 = vld [vmem:[%s7835_s2 + $0x2c] sm:$0xf] }
 0x1c9   :  { %v3931_v45 = vor.u32 %v4993_v36, %v3928_v40  ;;  %v3936_v62 = vld [vmem:[%s7835_s2 + $0x38] sm:$0xf0] }
 0x1ca   :  { %v3905_v3 = vmul.f32 -1.442695, %v997_v47  ;;  %v3906_v5 = vmul.f32 -1.442695, %v998_v51  ;;  %v3935_v51 = vor.u32 %v4996_v44, %v3934_v48  ;;  %v3939_v26 = vor.u32 %v4994_v46, %v3936_v62 }
 0x1cb   :  { %1281 = vmatpush.bf16.msrb.mxu1 %v3931_v45  ;;  %v342_v46 = vadd.f32 %v5940_v7, %v5944_v53 }
 0x1cc   :  { %5265 = vpow2.f32 %v3905_v3  ;;  %v3912_v3 = vld [vmem:[%s7835_s2 + $0x10] sm:$0xf0]  ;;  %1294 = vmatpush.bf16.msra.mxu2 %v3935_v51  ;;  %1307 = vmatpush.bf16.msra.mxu3 %v3939_v26 }
 0x1cd   :  { %5267 = vpow2.f32 %v3906_v5  ;;  %v3918_v5 = vld [vmem:[%s7835_s2 + $0x8] sm:$0xf]  ;;  %v3915_v56 = vor.u32 %v4989_v11, %v3912_v3 }
 0x1ce   :  { %v980_v41 = vpop.f32.mrf.mxu2  ;;  %v993_v47 = vpop.f32.mrf.mxu3  ;;  %v3919_v20 = vor.u32 %v4992_v49, %v3918_v5 }
 0x1cf   :  { %v1000_v55 = vadd.f32 %v993_v47, %v375_v42  ;;  %v956_v58 = vpop.f32.mrf.mxu0  ;;  %v969_v22 = vpop.f32.mrf.mxu1  ;;  %1282 = vmatpush.bf16.msrb.mxu1 %v3915_v56  ;;  %v999_v51 = vadd.f32 %v980_v41, %v342_v46 }
 0x1d0   :  { %1295 = vmatpush.bf16.msra.mxu2 %v3919_v20  ;;  %1308 = vmatpush.bf16.msra.mxu3 %v3923_v34 }
 0x1d1   :  { %v3907_v30 = vmul.f32 -1.442695, %v1000_v55 }
 0x1d2   :  { %v5266_v43 = vpop.eup %5265 }
 0x1d3   :  { %v5268_v36 = vpop.eup %5267  ;;  %v1004_v40 = vadd.f32 1.0, %v5266_v43  ;;  %5269 = vpow2.f32 %v3907_v30 }
 0x1d4   :  { %v1023_v48 = vadd.f32 1.0, %v5268_v36 }
 0x1d5   :  { %5271 = vrcp.f32 %v1004_v40  ;;  %v1016_v58 = vand.u32 2147483648, %v1004_v40  ;;  %v1014_v3 = vand.u32 2147483647, %v1004_v40  ;;  %vm1010_vm14 = vweird.f32 %v1004_v40 }
 0x1d6   :  { %5273 = vrcp.f32 %v1023_v48  ;;  %v982_v42 = vpop.f32.mrf.mxu2  ;;  %v995_v45 = vpop.f32.mrf.mxu3  ;;  %v1035_v22 = vand.u32 2147483648, %v1023_v48  ;;  %v1033_v49 = vand.u32 2147483647, %v1023_v48  ;;  %vm1029_vm15 = vweird.f32 %v1023_v48 }
 0x1d7   :  { %v1017_v41 = vor.u32 1.1754944e-38, %v1016_v58  ;;  %vm1015_vm2 = vcmp.eq.f32.partialorder %v1014_v3, 8.507059e+37 }
 0x1d8   :  { %v1036_v31 = vor.u32 1.1754944e-38, %v1035_v22  ;;  %vm1034_vm3 = vcmp.eq.f32.partialorder %v1033_v49, 8.507059e+37  ;;  %v4153_v22 = vld [vmem:[%s7835_s2 + $0xe0] sm:$0xf]  ;;  %v4161_v49 = vld [vmem:[%s7835_s2 + $0xe8] sm:$0xf] }
 0x1d9   :  { %v5270_v44 = vpop.eup %5269 }
 0x1da   :  { %v1043_v62 = vadd.f32 1.0, %v5270_v44 }
 0x1db   :  { %v5272_v47 = vpop.eup %5271 }
 0x1dc   :  { %v5274_v26 = vpop.eup %5273  ;;  %v1006_v52 = vmul.f32 %v5272_v47, %v1004_v40  ;;  %5275 = vrcp.f32 %v1043_v62  ;;  %vm1011_vm12 = vweird.f32 %v5272_v47  ;;  %vm1049_vm5 = vweird.f32 %v1043_v62 }
 0x1dd   :  { %v1025_v27 = vmul.f32 %v5274_v26, %v1023_v48  ;;  %5277 = vtanh.f32 %v999_v51  ;;  %vm1030_vm13 = vweird.f32 %v5274_v26  ;;  %vm1012_vm0 = vmor %vm1010_vm14, %vm1011_vm12 }
 0x1de   :  { %v1007_v11 = vsub.f32 1.0, %v1006_v52  ;;  %vm1031_vm1 = vmor %vm1029_vm15, %vm1030_vm13  ;;  %v1055_v52 = vand.u32 2147483648, %v1043_v62 }
 0x1df   :  { %v1026_v55 = vsub.f32 1.0, %v1025_v27 }
 0x1e0   :  { %v1008_v2 = vmul.f32 %v5272_v47, %v1007_v11  ;;  %v1056_v11 = vor.u32 1.1754944e-38, %v1055_v52  ;;  %v4147_v52 = vld [vmem:[%s7835_s2 + $0xd8] sm:$0xf0] }
 0x1e1   :  { %v1027_v5 = vmul.f32 %v5274_v26, %v1026_v55 }
 0x1e2   :  { %v5276_v56 = vpop.eup %5275  ;;  %v1009_v7 = vadd.f32 %v5272_v47, %v1008_v2  ;;  %v5049_v2 = vld [vmem:[%s7835_s2 + $0xe4] sm:$0xf] }
 0x1e3   :  { %v1028_v20 = vadd.f32 %v5274_v26, %v1027_v5  ;;  %v1045_v21 = vmul.f32 %v5276_v56, %v1043_v62  ;;  %v5278_v43 = vpop.eup %5277  ;;  %vm1050_vm4 = vweird.f32 %v5276_v56  ;;  %v4155_v5 = vld [vmem:[%s7835_s2 + $0xf0] sm:$0xf0] }
 0x1e4   :  { %v1013_v30 = vsel %vm1012_vm0, %v5272_v47, %v1009_v7  ;;  %v1053_v47 = vand.u32 2147483647, %v1043_v62  ;;  %vm1051_vm6 = vmor %vm1049_vm5, %vm1050_vm4  ;;  %v5051_v62 = vld [vmem:[%s7835_s2 + $0xec] sm:$0xf0]  ;;  %v4158_v7 = vor.u32 %v5049_v2, %v4155_v5  ;;  %v5042_v5 = vld [vmem:[%s7835_s2 + $0xac] sm:$0xf] }
 0x1e5   :  { %v1018_v34 = vsel %vm1015_vm2, %v1017_v41, %v1013_v30  ;;  %v1032_v36 = vsel %vm1031_vm1, %v5274_v26, %v1028_v20  ;;  %v1046_v42 = vsub.f32 1.0, %v1045_v21  ;;  %v4154_v3 = vor.u32 %v5051_v62, %v4153_v22  ;;  %v5050_v20 = vld [vmem:[%s7835_s2 + $0xec] sm:$0xf]  ;;  %v4163_v21 = vld [vmem:[%s7835_s2 + $0xf8] sm:$0xf0] }
 0x1e6   :  { %v1037_v45 = vsel %vm1034_vm3, %v1036_v31, %v1032_v36  ;;  %v1060_v44 = vmul.f32 %v5278_v43, %v1018_v34  ;;  %vm1054_vm7 = vcmp.eq.f32.partialorder %v1053_v47, 8.507059e+37  ;;  %v4166_v31 = vor.u32 %v5050_v20, %v4163_v21  ;;  %1592 = vmatpush.bf16.msra.mxu1 %v4158_v7  ;;  %v4137_v30 = vld [vmem:[%s7835_s2 + $0xc0] sm:$0xf]  ;;  %v5047_v43 = vld [vmem:[%s7835_s2 + $0xcc] sm:$0xf0] }
 0x1e7   :  { %v1059_v46 = vmul.f32 %v1037_v45, %v6226_v50  ;;  %v1047_v51 = vmul.f32 %v5276_v56, %v1046_v42  ;;  %1579 = vmatpush.bf16.msra.mxu0 %v4154_v3  ;;  %v5045_v34 = vld [vmem:[%s7835_s2 + $0xc4] sm:$0xf]  ;;  %v4138_v36 = vor.u32 %v5047_v43, %v4137_v30  ;;  %v4139_v42 = vld [vmem:[%s7835_s2 + $0xd0] sm:$0xf0]  ;;  %v4145_v45 = vld [vmem:[%s7835_s2 + $0xc8] sm:$0xf] }
 0x1e8   :  { %1618 = vmatpush.bf16.msrb.mxu3 %v4166_v31  ;;  %v4129_v22 = vld [vmem:[%s7835_s2 + $0xa8] sm:$0xf]  ;;  %v5044_v62 = vld [vmem:[%s7835_s2 + $0xb4] sm:$0xf0]  ;;  %v4105_v7 = vld [vmem:[%s7835_s2 + $0x80] sm:$0xf] }
 0x1e9   :  { %v6434_v40 = vadd.f32 %v1060_v44, %v1059_v46  ;;  %v1048_v48 = vadd.f32 %v5276_v56, %v1047_v51  ;;  %v5048_v44 = vld [vmem:[%s7835_s2 + $0xd4] sm:$0xf0]  ;;  %v4142_v46 = vor.u32 %v5045_v34, %v4139_v42  ;;  %v4130_v3 = vor.u32 %v5044_v62, %v4129_v22  ;;  %v5037_v20 = vld [vmem:[%s7835_s2 + $0x84] sm:$0xf]  ;;  %v4107_v31 = vld [vmem:[%s7835_s2 + $0x90] sm:$0xf0] }
 0x1ea   :  { %v4146_v51 = vor.u32 %v5048_v44, %v4145_v45  ;;  %v4113_v30 = vld [vmem:[%s7835_s2 + $0x88] sm:$0xf]  ;;  %v5040_v43 = vld [vmem:[%s7835_s2 + $0x94] sm:$0xf0]  ;;  %v4110_v34 = vor.u32 %v5037_v20, %v4107_v31  ;;  %v5038_v42 = vld [vmem:[%s7835_s2 + $0x8c] sm:$0xf] }
 0x1eb   :  { %5279 = vtanh.f32 %v6434_v40  ;;  %v1052_v27 = vsel %vm1051_vm6, %v5276_v56, %v1048_v48  ;;  %v5052_v56 = vld [vmem:[%s7835_s2 + $0xf4] sm:$0xf0]  ;;  %v5046_v48 = vld [vmem:[%s7835_s2 + $0xcc] sm:$0xf]  ;;  %1580 = vmatpush.bf16.msra.mxu0 %v4138_v36  ;;  %1593 = vmatpush.bf16.msra.mxu1 %v4142_v46  ;;  %v4114_v36 = vor.u32 %v5040_v43, %v4113_v30  ;;  %v4115_v45 = vld [vmem:[%s7835_s2 + $0x98] sm:$0xf0] }
 0x1ec   :  { %v1057_v55 = vsel %vm1054_vm7, %v1056_v11, %v1052_v27  ;;  %v4162_v41 = vor.u32 %v5052_v56, %v4161_v49  ;;  %v4150_v47 = vor.u32 %v5046_v48, %v4147_v52  ;;  %v4121_v27 = vld [vmem:[%s7835_s2 + $0xa0] sm:$0xf]  ;;  %v5043_v11 = vld [vmem:[%s7835_s2 + $0xac] sm:$0xf0]  ;;  %v4131_v49 = vld [vmem:[%s7835_s2 + $0xb8] sm:$0xf0]  ;;  %v4118_v44 = vor.u32 %v5038_v42, %v4115_v45 }
 0x1ed   :  { %v4134_v56 = vor.u32 %v5042_v5, %v4131_v49  ;;  %v4089_v46 = vld [vmem:[%s7835_s2 + $0x60] sm:$0xf]  ;;  %v5033_v48 = vld [vmem:[%s7835_s2 + $0x64] sm:$0xf]  ;;  %v4099_v22 = vld [vmem:[%s7835_s2 + $0x78] sm:$0xf0] }
 0x1ee   :  { %1605 = vmatpush.bf16.msrb.mxu2 %v4162_v41  ;;  %1619 = vmatpush.bf16.msrb.mxu3 %v4150_v47  ;;  %v5039_v41 = vld [vmem:[%s7835_s2 + $0x8c] sm:$0xf0]  ;;  %v4091_v47 = vld [vmem:[%s7835_s2 + $0x70] sm:$0xf0]  ;;  %v4083_v42 = vld [vmem:[%s7835_s2 + $0x58] sm:$0xf0] }
 0x1ef   :  { %v4106_v21 = vor.u32 %v5039_v41, %v4105_v7  ;;  %v5031_v7 = vld [vmem:[%s7835_s2 + $0x4c] sm:$0xf0]  ;;  %v5029_v41 = vld [vmem:[%s7835_s2 + $0x44] sm:$0xf]  ;;  %v4057_v45 = vld [vmem:[%s7835_s2 + $0x20] sm:$0xf] }
 0x1f1   :  { %v5280_v26 = vpop.eup %5279 }
 0x1f2   :  { %v6437_v58 = vmul.f32 %v5280_v26, %v1057_v55  ;;  %1606 = vmatpush.bf16.msrb.mxu2 %v4146_v51  ;;  %v5041_v26 = vld [vmem:[%s7835_s2 + $0xa4] sm:$0xf]  ;;  %v4122_v55 = vor.u32 %v5043_v11, %v4121_v27  ;;  %1620 = vmatpush.bf16.msrb.mxu3 %v4134_v56  ;;  %v5035_v51 = vld [vmem:[%s7835_s2 + $0x6c] sm:$0xf0]  ;;  %v4097_v27 = vld [vmem:[%s7835_s2 + $0x68] sm:$0xf] }
 0x1f3   :  { %v4090_v52 = vor.u32 %v5035_v51, %v4089_v46  ;;  %v5036_v11 = vld [vmem:[%s7835_s2 + $0x74] sm:$0xf0]  ;;  %v4073_v56 = vld [vmem:[%s7835_s2 + $0x40] sm:$0xf] }
 0x1f4   :  { %v1069_v50 = vpack.c.bf16 %v6437_v58, %v6437_v58  ;;  %1581 = vmatpush.bf16.msra.mxu0 %v4122_v55  ;;  %v4098_v55 = vor.u32 %v5036_v11, %v4097_v27  ;;  %v4074_v20 = vor.u32 %v5031_v7, %v4073_v56  ;;  %v5028_v11 = vld [vmem:[%s7835_s2 + $0x34] sm:$0xf0] }
 0x1f6   :  { %1270 = vmatmul.bf16.vlgmr.msrb.gmra.mxu0 %v1069_v50  ;;  %1283 = vmatmul.bf16.vlgmr.msrb.gmra.mxu1 %v1069_v50 }
 0x1f7   :  { %1296 = vmatmul.bf16.vlgmr.msra.gmra.mxu2 %v1069_v50  ;;  %1309 = vmatmul.bf16.vlgmr.msra.gmra.mxu3 %v1069_v50  ;;  %v4123_v50 = vld [vmem:[%s7835_s2 + $0xb0] sm:$0xf0] }
 0x1f8   :  { %v4126_v2 = vor.u32 %v5041_v26, %v4123_v50  ;;  %1607 = vmatpush.bf16.msrb.mxu2 %v4130_v3  ;;  %1582 = vmatpush.bf16.msra.mxu0 %v4106_v21  ;;  %v4094_v26 = vor.u32 %v5033_v48, %v4091_v47  ;;  %v5034_v50 = vld [vmem:[%s7835_s2 + $0x6c] sm:$0xf]  ;;  %v5032_v21 = vld [vmem:[%s7835_s2 + $0x54] sm:$0xf0]  ;;  %v5025_v48 = vld [vmem:[%s7835_s2 + $0x24] sm:$0xf] }
 0x1f9   :  { %1621 = vmatpush.bf16.msrb.mxu3 %v4118_v44  ;;  %v4102_v3 = vor.u32 %v5034_v50, %v4099_v22  ;;  %v5027_v44 = vld [vmem:[%s7835_s2 + $0x2c] sm:$0xf0]  ;;  %v4065_v47 = vld [vmem:[%s7835_s2 + $0x28] sm:$0xf] }
 0x1fa   :  { %1594 = vmatpush.bf16.msra.mxu1 %v4126_v2  ;;  %v4058_v51 = vor.u32 %v5027_v44, %v4057_v45 }
 0x1fc   :  { %1608 = vmatpush.bf16.msrb.mxu2 %v4114_v36  ;;  %1583 = vmatpush.bf16.msra.mxu0 %v4090_v52  ;;  %v5030_v36 = vld [vmem:[%s7835_s2 + $0x4c] sm:$0xf]  ;;  %v4059_v52 = vld [vmem:[%s7835_s2 + $0x30] sm:$0xf0] }
 0x1fd   :  { %1622 = vmatpush.bf16.msrb.mxu3 %v4102_v3  ;;  %v4086_v46 = vor.u32 %v5030_v36, %v4083_v42  ;;  %v4062_v27 = vor.u32 %v5025_v48, %v4059_v52  ;;  %v4041_v3 = vld [vmem:[%s7835_s2] sm:$0xf] }
 0x1fe   :  { %1595 = vmatpush.bf16.msra.mxu1 %v4110_v34 }
 0x200   :  { %1609 = vmatpush.bf16.msrb.mxu2 %v4098_v55  ;;  %1584 = vmatpush.bf16.msra.mxu0 %v4074_v20  ;;  %v4067_v55 = vld [vmem:[%s7835_s2 + $0x38] sm:$0xf0] }
 0x201   :  { %1623 = vmatpush.bf16.msrb.mxu3 %v4086_v46 }
 0x202   :  { %1596 = vmatpush.bf16.msra.mxu1 %v4094_v26  ;;  %v5026_v26 = vld [vmem:[%s7835_s2 + $0x2c] sm:$0xf] }
 0x204   :  { %1585 = vmatpush.bf16.msra.mxu0 %v4058_v51 }
 0x273   :  { %v1271_v62 = vpop.f32.mrf.mxu0  ;;  %v1284_v2 = vpop.f32.mrf.mxu1 }
 0x274   :  { %v1314_v5 = vadd.f32 %v1271_v62, %v5919_v32  ;;  %v1315_v49 = vadd.f32 %v1284_v2, %v5922_v33  ;;  %v4075_v32 = vld [vmem:[%s7835_s2 + $0x50] sm:$0xf0]  ;;  %v4081_v33 = vld [vmem:[%s7835_s2 + $0x48] sm:$0xf]  ;;  %v4066_v62 = vor.u32 %v5028_v11, %v4065_v47  ;;  %v4070_v2 = vor.u32 %v5026_v26, %v4067_v55 }
 0x275   :  { %v4078_v43 = vor.u32 %v5029_v41, %v4075_v32  ;;  %v4082_v34 = vor.u32 %v5032_v21, %v4081_v33  ;;  %v4043_v32 = vld [vmem:[%s7835_s2 + $0x10] sm:$0xf0]  ;;  %v4049_v33 = vld [vmem:[%s7835_s2 + $0x8] sm:$0xf]  ;;  %v5024_v21 = vld [vmem:[%s7835_s2 + $0x14] sm:$0xf0] }
 0x276   :  { %v4036_v31 = vmul.f32 -1.442695, %v1314_v5  ;;  %v4037_v30 = vmul.f32 -1.442695, %v1315_v49  ;;  %v5023_v5 = vld [vmem:[%s7835_s2 + $0xc] sm:$0xf0]  ;;  %1624 = vmatpush.bf16.msrb.mxu3 %v4070_v2 }
 0x277   :  { %1597 = vmatpush.bf16.msra.mxu1 %v4078_v43  ;;  %1610 = vmatpush.bf16.msrb.mxu2 %v4082_v34  ;;  %v5021_v49 = vld [vmem:[%s7835_s2 + $0x4] sm:$0xf]  ;;  %v4042_v20 = vor.u32 %v5023_v5, %v4041_v3  ;;  %v4051_v43 = vld [vmem:[%s7835_s2 + $0x18] sm:$0xf0] }
 0x278   :  { %5281 = vpow2.f32 %v4036_v31  ;;  %v4046_v31 = vor.u32 %v5021_v49, %v4043_v32 }
 0x279   :  { %5283 = vpow2.f32 %v4037_v30  ;;  %v5022_v30 = vld [vmem:[%s7835_s2 + $0xc] sm:$0xf]  ;;  %1586 = vmatpush.bf16.msra.mxu0 %v4042_v20 }
 0x27a   :  { %v1297_v50 = vpop.f32.mrf.mxu2  ;;  %v1310_v22 = vpop.f32.mrf.mxu3  ;;  %v4054_v42 = vor.u32 %v5022_v30, %v4051_v43 }
 0x27b   :  { %v1317_v56 = vadd.f32 %v1310_v22, %v5952_v59  ;;  %v1273_v7 = vpop.f32.mrf.mxu0  ;;  %v1286_v41 = vpop.f32.mrf.mxu1  ;;  %1598 = vmatpush.bf16.msra.mxu1 %v4062_v27  ;;  %1611 = vmatpush.bf16.msrb.mxu2 %v4066_v62  ;;  %v4050_v59 = vor.u32 %v5024_v21, %v4049_v33  ;;  %v1316_v11 = vadd.f32 %v1297_v50, %v5949_v57 }
 0x27c   :  { %1625 = vmatpush.bf16.msrb.mxu3 %v4054_v42 }
 0x27d   :  { %v4038_v34 = vmul.f32 -1.442695, %v1317_v56 }
 0x27e   :  { %v5282_v36 = vpop.eup %5281 }
 0x27f   :  { %v5284_v45 = vpop.eup %5283  ;;  %v1321_v44 = vadd.f32 1.0, %v5282_v36  ;;  %5285 = vpow2.f32 %v4038_v34  ;;  %1599 = vmatpush.bf16.msra.mxu1 %v4046_v31  ;;  %1612 = vmatpush.bf16.msrb.mxu2 %v4050_v59 }
 0x280   :  { %v1340_v46 = vadd.f32 1.0, %v5284_v45 }
 0x281   :  { %5287 = vrcp.f32 %v1321_v44  ;;  %v1333_v3 = vand.u32 2147483648, %v1321_v44  ;;  %v1331_v56 = vand.u32 2147483647, %v1321_v44  ;;  %vm1327_vm10 = vweird.f32 %v1321_v44 }
 0x282   :  { %5289 = vrcp.f32 %v1340_v46  ;;  %v1299_v51 = vpop.f32.mrf.mxu2  ;;  %v1312_v48 = vpop.f32.mrf.mxu3  ;;  %v1352_v5 = vand.u32 2147483648, %v1340_v46  ;;  %v1350_v41 = vand.u32 2147483647, %v1340_v46  ;;  %vm1346_vm11 = vweird.f32 %v1340_v46 }
 0x283   :  { %v1334_v57 = vor.u32 1.1754944e-38, %v1333_v3  ;;  %vm1332_vm14 = vcmp.eq.f32.partialorder %v1331_v56, 8.507059e+37  ;;  %v5084_v56 = vld [vmem:[%s7835_s2 + $0xf4] sm:$0xf0] }
 0x284   :  { %v1353_v21 = vor.u32 1.1754944e-38, %v1352_v5  ;;  %vm1351_vm15 = vcmp.eq.f32.partialorder %v1350_v41, 8.507059e+37  ;;  %v4286_v5 = vld [vmem:[%s7835_s2 + $0xf0] sm:$0xf0] }
 0x285   :  { %v5286_v52 = vpop.eup %5285 }
 0x286   :  { %v1360_v47 = vadd.f32 1.0, %v5286_v52 }
 0x287   :  { %v5288_v27 = vpop.eup %5287 }
 0x288   :  { %v5290_v26 = vpop.eup %5289  ;;  %v1323_v55 = vmul.f32 %v5288_v27, %v1321_v44  ;;  %5291 = vrcp.f32 %v1360_v47  ;;  %vm1328_vm8 = vweird.f32 %v5288_v27  ;;  %v1372_v48 = vand.u32 2147483648, %v1360_v47 }
 0x289   :  { %v1342_v22 = vmul.f32 %v5290_v26, %v1340_v46  ;;  %5293 = vtanh.f32 %v1316_v11  ;;  %vm1347_vm9 = vweird.f32 %v5290_v26  ;;  %vm1329_vm12 = vmor %vm1327_vm10, %vm1328_vm8  ;;  %vm1366_vm1 = vweird.f32 %v1360_v47 }
 0x28a   :  { %v1324_v62 = vsub.f32 1.0, %v1323_v55  ;;  %vm1348_vm13 = vmor %vm1346_vm11, %vm1347_vm9  ;;  %v1370_v52 = vand.u32 2147483647, %v1360_v47  ;;  %v1373_v11 = vor.u32 1.1754944e-38, %v1372_v48  ;;  %v5075_v48 = vld [vmem:[%s7835_s2 + $0xac] sm:$0xf0] }
 0x28b   :  { %v1343_v2 = vsub.f32 1.0, %v1342_v22 }
 0x28c   :  { %v1325_v49 = vmul.f32 %v5288_v27, %v1324_v62  ;;  %vm1371_vm3 = vcmp.eq.f32.partialorder %v1370_v52, 8.507059e+37  ;;  %v4284_v62 = vld [vmem:[%s7835_s2 + $0xe0] sm:$0xf]  ;;  %v5073_v52 = vld [vmem:[%s7835_s2 + $0xa4] sm:$0xf] }
 0x28d   :  { %v1344_v7 = vmul.f32 %v5290_v26, %v1343_v2  ;;  %v5081_v2 = vld [vmem:[%s7835_s2 + $0xe4] sm:$0xf] }
 0x28e   :  { %v5292_v20 = vpop.eup %5291  ;;  %v1326_v32 = vadd.f32 %v5288_v27, %v1325_v49  ;;  %v4292_v49 = vld [vmem:[%s7835_s2 + $0xe8] sm:$0xf] }
 0x28f   :  { %v1345_v50 = vadd.f32 %v5290_v26, %v1344_v7  ;;  %v1362_v33 = vmul.f32 %v5292_v20, %v1360_v47  ;;  %v5294_v59 = vpop.eup %5293  ;;  %vm1367_vm0 = vweird.f32 %v5292_v20  ;;  %v5083_v47 = vld [vmem:[%s7835_s2 + $0xec] sm:$0xf0]  ;;  %v4289_v7 = vor.u32 %v5081_v2, %v4286_v5  ;;  %v4262_v2 = vld [vmem:[%s7835_s2 + $0xb8] sm:$0xf0]  ;;  %v4236_v5 = vld [vmem:[%s7835_s2 + $0x80] sm:$0xf] }
 0x290   :  { %v1330_v31 = vsel %vm1329_vm12, %v5288_v27, %v1326_v32  ;;  %vm1368_vm2 = vmor %vm1366_vm1, %vm1367_vm0  ;;  %v4285_v3 = vor.u32 %v5083_v47, %v4284_v62  ;;  %v4293_v41 = vor.u32 %v5084_v56, %v4292_v49  ;;  %v4294_v32 = vld [vmem:[%s7835_s2 + $0xf8] sm:$0xf0]  ;;  %v5074_v47 = vld [vmem:[%s7835_s2 + $0xac] sm:$0xf] }
 0x291   :  { %v1335_v30 = vsel %vm1332_vm14, %v1334_v57, %v1330_v31  ;;  %v1349_v43 = vsel %vm1348_vm13, %v5290_v26, %v1345_v50  ;;  %v1363_v34 = vsub.f32 1.0, %v1362_v33  ;;  %1909 = vmatpush.bf16.msrb.mxu1 %v4289_v7  ;;  %v4268_v50 = vld [vmem:[%s7835_s2 + $0xc0] sm:$0xf]  ;;  %v5079_v33 = vld [vmem:[%s7835_s2 + $0xcc] sm:$0xf0] }
 0x292   :  { %v1354_v36 = vsel %vm1351_vm15, %v1353_v21, %v1349_v43  ;;  %v1377_v42 = vmul.f32 %v5294_v59, %v1335_v30  ;;  %1896 = vmatpush.bf16.msrb.mxu0 %v4285_v3  ;;  %1922 = vmatpush.bf16.msra.mxu2 %v4293_v41  ;;  %v5077_v21 = vld [vmem:[%s7835_s2 + $0xc4] sm:$0xf]  ;;  %v4269_v31 = vor.u32 %v5079_v33, %v4268_v50  ;;  %v4270_v59 = vld [vmem:[%s7835_s2 + $0xd0] sm:$0xf0]  ;;  %v4276_v30 = vld [vmem:[%s7835_s2 + $0xc8] sm:$0xf] }
 0x293   :  { %v1376_v45 = vmul.f32 %v1354_v36, %v6434_v40  ;;  %v1364_v51 = vmul.f32 %v5292_v20, %v1363_v34  ;;  %v5080_v43 = vld [vmem:[%s7835_s2 + $0xd4] sm:$0xf0]  ;;  %v4273_v34 = vor.u32 %v5077_v21, %v4270_v59  ;;  %v4265_v3 = vor.u32 %v5074_v47, %v4262_v2  ;;  %v5071_v49 = vld [vmem:[%s7835_s2 + $0x8c] sm:$0xf0]  ;;  %v5069_v56 = vld [vmem:[%s7835_s2 + $0x84] sm:$0xf] }
 0x294   :  { %v4277_v36 = vor.u32 %v5080_v43, %v4276_v30  ;;  %v4237_v7 = vor.u32 %v5071_v49, %v4236_v5  ;;  %v4238_v41 = vld [vmem:[%s7835_s2 + $0x90] sm:$0xf0]  ;;  %v5070_v33 = vld [vmem:[%s7835_s2 + $0x8c] sm:$0xf]  ;;  %v4246_v21 = vld [vmem:[%s7835_s2 + $0x98] sm:$0xf0] }
 0x295   :  { %v6638_v44 = vadd.f32 %v1377_v42, %v1376_v45  ;;  %v1365_v46 = vadd.f32 %v5292_v20, %v1364_v51  ;;  %v5078_v42 = vld [vmem:[%s7835_s2 + $0xcc] sm:$0xf]  ;;  %v4278_v45 = vld [vmem:[%s7835_s2 + $0xd8] sm:$0xf0]  ;;  %1910 = vmatpush.bf16.msrb.mxu1 %v4273_v34  ;;  %v4220_v59 = vld [vmem:[%s7835_s2 + $0x60] sm:$0xf] }
 0x296   :  { %1897 = vmatpush.bf16.msrb.mxu0 %v4269_v31  ;;  %v4281_v51 = vor.u32 %v5078_v42, %v4278_v45  ;;  %1923 = vmatpush.bf16.msra.mxu2 %v4277_v36  ;;  %v4249_v31 = vor.u32 %v5070_v33, %v4246_v21  ;;  %v5067_v30 = vld [vmem:[%s7835_s2 + $0x6c] sm:$0xf0]  ;;  %v5065_v43 = vld [vmem:[%s7835_s2 + $0x64] sm:$0xf]  ;;  %v4222_v36 = vld [vmem:[%s7835_s2 + $0x70] sm:$0xf0] }
 0x297   :  { %5295 = vtanh.f32 %v6638_v44  ;;  %v1369_v27 = vsel %vm1368_vm2, %v5292_v20, %v1365_v46  ;;  %v5082_v20 = vld [vmem:[%s7835_s2 + $0xec] sm:$0xf]  ;;  %v4252_v46 = vld [vmem:[%s7835_s2 + $0xa0] sm:$0xf]  ;;  %v4221_v34 = vor.u32 %v5067_v30, %v4220_v59  ;;  %v4228_v42 = vld [vmem:[%s7835_s2 + $0x68] sm:$0xf] }
 0x298   :  { %v1374_v55 = vsel %vm1371_vm3, %v1373_v11, %v1369_v27  ;;  %v4297_v57 = vor.u32 %v5082_v20, %v4294_v32  ;;  %v4253_v27 = vor.u32 %v5075_v48, %v4252_v46  ;;  %v4254_v11 = vld [vmem:[%s7835_s2 + $0xb0] sm:$0xf0]  ;;  %v4244_v20 = vld [vmem:[%s7835_s2 + $0x88] sm:$0xf]  ;;  %v5072_v32 = vld [vmem:[%s7835_s2 + $0x94] sm:$0xf0]  ;;  %v314_v46 = vadd.f32 %v5932_v39, %v5892_v14 }
 0x299   :  { %v4245_v50 = vor.u32 %v5072_v32, %v4244_v20  ;;  %v5068_v45 = vld [vmem:[%s7835_s2 + $0x74] sm:$0xf0]  ;;  %v4225_v48 = vor.u32 %v5065_v43, %v4222_v36  ;;  %v5063_v39 = vld [vmem:[%s7835_s2 + $0x4c] sm:$0xf0]  ;;  %v5061_v2 = vld [vmem:[%s7835_s2 + $0x44] sm:$0xf]  ;;  %v380_v36 = vadd.f32 %v5956_v61, %v5946_v54 }
 0x29a   :  { %1935 = vmatpush.bf16.msra.mxu3 %v4297_v57  ;;  %1898 = vmatpush.bf16.msrb.mxu0 %v4253_v27  ;;  %v4241_v57 = vor.u32 %v5069_v56, %v4238_v41  ;;  %v5066_v27 = vld [vmem:[%s7835_s2 + $0x6c] sm:$0xf]  ;;  %v4206_v5 = vld [vmem:[%s7835_s2 + $0x50] sm:$0xf0]  ;;  %v4212_v49 = vld [vmem:[%s7835_s2 + $0x48] sm:$0xf] }
 0x29b   :  { %v5064_v56 = vld [vmem:[%s7835_s2 + $0x54] sm:$0xf0]  ;;  %v4209_v20 = vor.u32 %v5061_v2, %v4206_v5  ;;  %v4188_v33 = vld [vmem:[%s7835_s2 + $0x20] sm:$0xf]  ;;  %v5059_v21 = vld [vmem:[%s7835_s2 + $0x2c] sm:$0xf0] }
 0x29c   :  { %v4213_v32 = vor.u32 %v5064_v56, %v4212_v49  ;;  %v4189_v59 = vor.u32 %v5059_v21, %v4188_v33  ;;  %v5057_v30 = vld [vmem:[%s7835_s2 + $0x24] sm:$0xf]  ;;  %v4190_v43 = vld [vmem:[%s7835_s2 + $0x30] sm:$0xf0]  ;;  %v4172_v54 = vld [vmem:[%s7835_s2] sm:$0xf] }
 0x29d   :  { %v5296_v26 = vpop.eup %5295  ;;  %v5055_v61 = vld [vmem:[%s7835_s2 + $0xc] sm:$0xf0]  ;;  %v5056_v2 = vld [vmem:[%s7835_s2 + $0x14] sm:$0xf0]  ;;  %v5054_v49 = vld [vmem:[%s7835_s2 + $0xc] sm:$0xf] }
 0x29e   :  { %v6641_v22 = vmul.f32 %v5296_v26, %v1374_v55  ;;  %1936 = vmatpush.bf16.msra.mxu3 %v4281_v51  ;;  %v4260_v26 = vld [vmem:[%s7835_s2 + $0xa8] sm:$0xf]  ;;  %v5076_v55 = vld [vmem:[%s7835_s2 + $0xb4] sm:$0xf0]  ;;  %1899 = vmatpush.bf16.msrb.mxu0 %v4237_v7  ;;  %v281_v51 = vadd.f32 %v5930_v38, %v5890_v13  ;;  %v4204_v38 = vld [vmem:[%s7835_s2 + $0x40] sm:$0xf] }
 0x29f   :  { %v4261_v62 = vor.u32 %v5076_v55, %v4260_v26  ;;  %v4182_v56 = vld [vmem:[%s7835_s2 + $0x18] sm:$0xf0] }
 0x2a0   :  { %v1386_v40 = vpack.c.bf16 %v6641_v22, %v6641_v22 }
 0x2a1   :  { %1924 = vmatpush.bf16.msra.mxu2 %v4261_v62 }
 0x2a2   :  { %1587 = vmatmul.bf16.vlgmr.msra.gmra.mxu0 %v1386_v40  ;;  %1600 = vmatmul.bf16.vlgmr.msra.gmra.mxu1 %v1386_v40 }
 0x2a3   :  { %1613 = vmatmul.bf16.vlgmr.msrb.gmra.mxu2 %v1386_v40  ;;  %1626 = vmatmul.bf16.vlgmr.msrb.gmra.mxu3 %v1386_v40  ;;  %v4257_v40 = vor.u32 %v5073_v52, %v4254_v11  ;;  %v4229_v52 = vor.u32 %v5068_v45, %v4228_v42  ;;  %v4230_v11 = vld [vmem:[%s7835_s2 + $0x78] sm:$0xf0]  ;;  %v4193_v42 = vor.u32 %v5057_v30, %v4190_v43  ;;  %v5060_v45 = vld [vmem:[%s7835_s2 + $0x34] sm:$0xf0] }
 0x2a4   :  { %1937 = vmatpush.bf16.msra.mxu3 %v4265_v3  ;;  %1900 = vmatpush.bf16.msrb.mxu0 %v4221_v34  ;;  %v4205_v3 = vor.u32 %v5063_v39, %v4204_v38  ;;  %v4196_v34 = vld [vmem:[%s7835_s2 + $0x28] sm:$0xf]  ;;  %v4174_v38 = vld [vmem:[%s7835_s2 + $0x10] sm:$0xf0] }
 0x2a5   :  { %1911 = vmatpush.bf16.msrb.mxu1 %v4257_v40  ;;  %1925 = vmatpush.bf16.msra.mxu2 %v4245_v50  ;;  %v4233_v40 = vor.u32 %v5066_v27, %v4230_v11  ;;  %v4214_v50 = vld [vmem:[%s7835_s2 + $0x58] sm:$0xf0]  ;;  %v4197_v27 = vor.u32 %v5060_v45, %v4196_v34  ;;  %v4180_v39 = vld [vmem:[%s7835_s2 + $0x8] sm:$0xf] }
 0x2a6   :  { %v4181_v5 = vor.u32 %v5056_v2, %v4180_v39 }
 0x2a8   :  { %1938 = vmatpush.bf16.msra.mxu3 %v4249_v31  ;;  %1901 = vmatpush.bf16.msrb.mxu0 %v4205_v3 }
 0x2a9   :  { %1912 = vmatpush.bf16.msrb.mxu1 %v4241_v57  ;;  %1926 = vmatpush.bf16.msra.mxu2 %v4229_v52  ;;  %v5062_v57 = vld [vmem:[%s7835_s2 + $0x4c] sm:$0xf] }
 0x2aa   :  { %v4217_v31 = vor.u32 %v5062_v57, %v4214_v50 }
 0x2ac   :  { %1939 = vmatpush.bf16.msra.mxu3 %v4233_v40  ;;  %1902 = vmatpush.bf16.msrb.mxu0 %v4189_v59  ;;  %v347_v59 = vadd.f32 %v5954_v60, %v5944_v53 }
 0x2ad   :  { %1913 = vmatpush.bf16.msrb.mxu1 %v4225_v48  ;;  %1927 = vmatpush.bf16.msra.mxu2 %v4213_v32 }
 0x2b0   :  { %1940 = vmatpush.bf16.msra.mxu3 %v4217_v31 }
 0x2b1   :  { %1914 = vmatpush.bf16.msrb.mxu1 %v4209_v20  ;;  %1928 = vmatpush.bf16.msra.mxu2 %v4197_v27  ;;  %v4185_v20 = vor.u32 %v5054_v49, %v4182_v56 }
 0x2b5   :  { %1915 = vmatpush.bf16.msrb.mxu1 %v4193_v42  ;;  %1929 = vmatpush.bf16.msra.mxu2 %v4181_v5 }
 0x31f   :  { %v1588_v26 = vpop.f32.mrf.mxu0  ;;  %v1601_v55 = vpop.f32.mrf.mxu1 }
 0x320   :  { %v1631_v62 = vadd.f32 %v1588_v26, %v281_v51  ;;  %v1632_v47 = vadd.f32 %v1601_v55, %v314_v46  ;;  %v5058_v51 = vld [vmem:[%s7835_s2 + $0x2c] sm:$0xf]  ;;  %v4198_v46 = vld [vmem:[%s7835_s2 + $0x38] sm:$0xf0]  ;;  %v5053_v26 = vld [vmem:[%s7835_s2 + $0x4] sm:$0xf] }
 0x321   :  { %v4201_v11 = vor.u32 %v5058_v51, %v4198_v46  ;;  %v4177_v3 = vor.u32 %v5053_v26, %v4174_v38 }
 0x322   :  { %v4167_v7 = vmul.f32 -1.442695, %v1631_v62  ;;  %v4168_v41 = vmul.f32 -1.442695, %v1632_v47  ;;  %v4173_v47 = vor.u32 %v5055_v61, %v4172_v54 }
 0x323   :  { %1941 = vmatpush.bf16.msra.mxu3 %v4201_v11  ;;  %1916 = vmatpush.bf16.msrb.mxu1 %v4177_v3 }
 0x324   :  { %5297 = vpow2.f32 %v4167_v7  ;;  %1903 = vmatpush.bf16.msrb.mxu0 %v4173_v47 }
 0x325   :  { %5299 = vpow2.f32 %v4168_v41 }
 0x326   :  { %v1614_v48 = vpop.f32.mrf.mxu2  ;;  %v1627_v52 = vpop.f32.mrf.mxu3 }
 0x327   :  { %v1634_v55 = vadd.f32 %v1627_v52, %v380_v36  ;;  %v1590_v40 = vpop.f32.mrf.mxu0  ;;  %v1603_v62 = vpop.f32.mrf.mxu1  ;;  %1942 = vmatpush.bf16.msra.mxu3 %v4185_v20  ;;  %v1633_v34 = vadd.f32 %v1614_v48, %v347_v59 }
 0x329   :  { %v4169_v7 = vmul.f32 -1.442695, %v1634_v55 }
 0x32a   :  { %v5298_v41 = vpop.eup %5297 }
 0x32b   :  { %v5300_v32 = vpop.eup %5299  ;;  %v1638_v57 = vadd.f32 1.0, %v5298_v41  ;;  %5301 = vpow2.f32 %v4169_v7 }
 0x32c   :  { %v1657_v50 = vadd.f32 1.0, %v5300_v32 }
 0x32d   :  { %5303 = vrcp.f32 %v1638_v57  ;;  %v1650_v52 = vand.u32 2147483648, %v1638_v57  ;;  %v1648_v54 = vand.u32 2147483647, %v1638_v57  ;;  %vm1644_vm6 = vweird.f32 %v1638_v57 }
 0x32e   :  { %5305 = vrcp.f32 %v1657_v50  ;;  %v1616_v33 = vpop.f32.mrf.mxu2  ;;  %v1629_v21 = vpop.f32.mrf.mxu3  ;;  %v1669_v27 = vand.u32 2147483648, %v1657_v50  ;;  %v1667_v26 = vand.u32 2147483647, %v1657_v50  ;;  %vm1663_vm7 = vweird.f32 %v1657_v50 }
 0x32f   :  { %v1651_v60 = vor.u32 1.1754944e-38, %v1650_v52  ;;  %vm1649_vm10 = vcmp.eq.f32.partialorder %v1648_v54, 8.507059e+37 }
 0x330   :  { %v1670_v62 = vor.u32 1.1754944e-38, %v1669_v27  ;;  %vm1668_vm11 = vcmp.eq.f32.partialorder %v1667_v26, 8.507059e+37  ;;  %v5114_v27 = vld [vmem:[%s7835_s2 + $0xec] sm:$0xf]  ;;  %v5111_v26 = vld [vmem:[%s7835_s2 + $0xcc] sm:$0xf0] }
 0x331   :  { %v5302_v31 = vpop.eup %5301 }
 0x332   :  { %v1677_v30 = vadd.f32 1.0, %v5302_v31 }
 0x333   :  { %v5304_v43 = vpop.eup %5303 }
 0x334   :  { %v5306_v36 = vpop.eup %5305  ;;  %v1640_v42 = vmul.f32 %v5304_v43, %v1638_v57  ;;  %5307 = vrcp.f32 %v1677_v30  ;;  %vm1645_vm4 = vweird.f32 %v5304_v43  ;;  %v1689_v32 = vand.u32 2147483648, %v1677_v30 }
 0x335   :  { %v1659_v45 = vmul.f32 %v5306_v36, %v1657_v50  ;;  %5309 = vtanh.f32 %v1633_v34  ;;  %vm1664_vm5 = vweird.f32 %v5306_v36  ;;  %vm1646_vm8 = vmor %vm1644_vm6, %vm1645_vm4  ;;  %vm1683_vm13 = vweird.f32 %v1677_v30  ;;  %v5113_v34 = vld [vmem:[%s7835_s2 + $0xe4] sm:$0xf] }
 0x336   :  { %v1641_v51 = vsub.f32 1.0, %v1640_v42  ;;  %vm1665_vm9 = vmor %vm1663_vm7, %vm1664_vm5  ;;  %v1687_v57 = vand.u32 2147483647, %v1677_v30  ;;  %v1690_v33 = vor.u32 1.1754944e-38, %v1689_v32  ;;  %v4417_v42 = vld [vmem:[%s7835_s2 + $0xf0] sm:$0xf0] }
 0x337   :  { %v1660_v46 = vsub.f32 1.0, %v1659_v45  ;;  %v4423_v45 = vld [vmem:[%s7835_s2 + $0xe8] sm:$0xf]  ;;  %v5108_v32 = vld [vmem:[%s7835_s2 + $0xb4] sm:$0xf0] }
 0x338   :  { %v1642_v11 = vmul.f32 %v5304_v43, %v1641_v51  ;;  %vm1688_vm15 = vcmp.eq.f32.partialorder %v1687_v57, 8.507059e+37  ;;  %v5116_v51 = vld [vmem:[%s7835_s2 + $0xf4] sm:$0xf0] }
 0x339   :  { %v1661_v61 = vmul.f32 %v5306_v36, %v1660_v46  ;;  %v4420_v46 = vor.u32 %v5113_v34, %v4417_v42  ;;  %v4424_v52 = vor.u32 %v5116_v51, %v4423_v45  ;;  %v4375_v42 = vld [vmem:[%s7835_s2 + $0x88] sm:$0xf]  ;;  %v5104_v45 = vld [vmem:[%s7835_s2 + $0x94] sm:$0xf0] }
 0x33a   :  { %v5308_v55 = vpop.eup %5307  ;;  %v1643_v53 = vadd.f32 %v5304_v43, %v1642_v11  ;;  %v4425_v11 = vld [vmem:[%s7835_s2 + $0xf8] sm:$0xf0] }
 0x33b   :  { %v1662_v48 = vadd.f32 %v5306_v36, %v1661_v61  ;;  %v1679_v40 = vmul.f32 %v5308_v55, %v1677_v30  ;;  %v5310_v38 = vpop.eup %5309  ;;  %vm1684_vm12 = vweird.f32 %v5308_v55  ;;  %v5115_v30 = vld [vmem:[%s7835_s2 + $0xec] sm:$0xf0]  ;;  %v4428_v54 = vor.u32 %v5114_v27, %v4425_v11  ;;  %2226 = vmatpush.bf16.msra.mxu1 %v4420_v46  ;;  %2239 = vmatpush.bf16.msrb.mxu2 %v4424_v52  ;;  %v4399_v61 = vld [vmem:[%s7835_s2 + $0xc0] sm:$0xf]  ;;  %v5102_v52 = vld [vmem:[%s7835_s2 + $0x8c] sm:$0xf] }
 0x33c   :  { %v1647_v47 = vsel %vm1646_vm8, %v5304_v43, %v1643_v53  ;;  %vm1685_vm14 = vmor %vm1683_vm13, %vm1684_vm12  ;;  %v4415_v43 = vld [vmem:[%s7835_s2 + $0xe0] sm:$0xf]  ;;  %v4400_v53 = vor.u32 %v5111_v26, %v4399_v61  ;;  %v4376_v46 = vor.u32 %v5104_v45, %v4375_v42  ;;  %v4377_v27 = vld [vmem:[%s7835_s2 + $0x98] sm:$0xf0] }
 0x33d   :  { %v1652_v39 = vsel %vm1649_vm10, %v1651_v60, %v1647_v47  ;;  %v1666_v2 = vsel %vm1665_vm9, %v5306_v36, %v1662_v48  ;;  %v1680_v3 = vsub.f32 1.0, %v1679_v40  ;;  %v4416_v36 = vor.u32 %v5115_v30, %v4415_v43  ;;  %2252 = vmatpush.bf16.msrb.mxu3 %v4428_v54  ;;  %v4401_v60 = vld [vmem:[%s7835_s2 + $0xd0] sm:$0xf0]  ;;  %v4407_v48 = vld [vmem:[%s7835_s2 + $0xc8] sm:$0xf] }
 0x33e   :  { %v1671_v5 = vsel %vm1668_vm11, %v1670_v62, %v1666_v2  ;;  %v1694_v49 = vmul.f32 %v5310_v38, %v1652_v39  ;;  %v5112_v40 = vld [vmem:[%s7835_s2 + $0xd4] sm:$0xf0]  ;;  %v5110_v38 = vld [vmem:[%s7835_s2 + $0xcc] sm:$0xf]  ;;  %v4409_v39 = vld [vmem:[%s7835_s2 + $0xd8] sm:$0xf0]  ;;  %v4380_v11 = vor.u32 %v5102_v52, %v4377_v27 }
 0x33f   :  { %v1693_v56 = vmul.f32 %v1671_v5, %v6638_v44  ;;  %v1681_v7 = vmul.f32 %v5308_v55, %v1680_v3  ;;  %2213 = vmatpush.bf16.msra.mxu0 %v4416_v36  ;;  %v4408_v47 = vor.u32 %v5112_v40, %v4407_v48  ;;  %v4412_v2 = vor.u32 %v5110_v38, %v4409_v39  ;;  %v4383_v3 = vld [vmem:[%s7835_s2 + $0xa0] sm:$0xf]  ;;  %v5107_v5 = vld [vmem:[%s7835_s2 + $0xac] sm:$0xf0]  ;;  %v5101_v30 = vld [vmem:[%s7835_s2 + $0x84] sm:$0xf] }
 0x340   :  { %v5103_v43 = vld [vmem:[%s7835_s2 + $0x8c] sm:$0xf0]  ;;  %v4369_v36 = vld [vmem:[%s7835_s2 + $0x90] sm:$0xf0]  ;;  %v4351_v54 = vld [vmem:[%s7835_s2 + $0x60] sm:$0xf] }
 0x341   :  { %v6846_v41 = vadd.f32 %v1694_v49, %v1693_v56  ;;  %v1682_v20 = vadd.f32 %v5308_v55, %v1681_v7  ;;  %2240 = vmatpush.bf16.msrb.mxu2 %v4408_v47  ;;  %v5105_v49 = vld [vmem:[%s7835_s2 + $0xa4] sm:$0xf]  ;;  %2253 = vmatpush.bf16.msrb.mxu3 %v4412_v2  ;;  %v4384_v56 = vor.u32 %v5107_v5, %v4383_v3  ;;  %v4385_v7 = vld [vmem:[%s7835_s2 + $0xb0] sm:$0xf0]  ;;  %v5099_v61 = vld [vmem:[%s7835_s2 + $0x6c] sm:$0xf0] }
 0x342   :  { %v4388_v57 = vor.u32 %v5105_v49, %v4385_v7  ;;  %v4372_v51 = vor.u32 %v5101_v30, %v4369_v36  ;;  %v5097_v26 = vld [vmem:[%s7835_s2 + $0x64] sm:$0xf]  ;;  %v5100_v48 = vld [vmem:[%s7835_s2 + $0x74] sm:$0xf0]  ;;  %v5098_v47 = vld [vmem:[%s7835_s2 + $0x6c] sm:$0xf] }
 0x343   :  { %5311 = vtanh.f32 %v6846_v41  ;;  %v1686_v50 = vsel %vm1685_vm14, %v5308_v55, %v1682_v20  ;;  %v5109_v55 = vld [vmem:[%s7835_s2 + $0xc4] sm:$0xf]  ;;  %2214 = vmatpush.bf16.msra.mxu0 %v4400_v53  ;;  %v4391_v20 = vld [vmem:[%s7835_s2 + $0xa8] sm:$0xf]  ;;  %v4353_v53 = vld [vmem:[%s7835_s2 + $0x70] sm:$0xf0] }
 0x344   :  { %v1691_v31 = vsel %vm1688_vm15, %v1690_v33, %v1686_v50  ;;  %v4404_v62 = vor.u32 %v5109_v55, %v4401_v60  ;;  %v4392_v50 = vor.u32 %v5108_v32, %v4391_v20  ;;  %v5106_v33 = vld [vmem:[%s7835_s2 + $0xac] sm:$0xf]  ;;  %v4352_v55 = vor.u32 %v5099_v61, %v4351_v54  ;;  %v4359_v60 = vld [vmem:[%s7835_s2 + $0x68] sm:$0xf]  ;;  %v4361_v38 = vld [vmem:[%s7835_s2 + $0x78] sm:$0xf0] }
 0x345   :  { %v4356_v40 = vor.u32 %v5097_v26, %v4353_v53  ;;  %v4364_v3 = vor.u32 %v5098_v47, %v4361_v38  ;;  %v5095_v7 = vld [vmem:[%s7835_s2 + $0x4c] sm:$0xf0]  ;;  %v5093_v20 = vld [vmem:[%s7835_s2 + $0x44] sm:$0xf]  ;;  %v4319_v30 = vld [vmem:[%s7835_s2 + $0x20] sm:$0xf] }
 0x346   :  { %2227 = vmatpush.bf16.msra.mxu1 %v4404_v62  ;;  %2241 = vmatpush.bf16.msrb.mxu2 %v4392_v50  ;;  %v4360_v62 = vor.u32 %v5100_v48, %v4359_v60  ;;  %v5089_v45 = vld [vmem:[%s7835_s2 + $0x24] sm:$0xf]  ;;  %v5092_v27 = vld [vmem:[%s7835_s2 + $0x34] sm:$0xf0]  ;;  %v4329_v54 = vld [vmem:[%s7835_s2 + $0x38] sm:$0xf0] }
 0x347   :  { %2215 = vmatpush.bf16.msra.mxu0 %v4384_v56  ;;  %v4335_v56 = vld [vmem:[%s7835_s2 + $0x40] sm:$0xf]  ;;  %v5087_v48 = vld [vmem:[%s7835_s2 + $0xc] sm:$0xf0] }
 0x348   :  { %v4336_v32 = vor.u32 %v5095_v7, %v4335_v56  ;;  %v4303_v60 = vld [vmem:[%s7835_s2] sm:$0xf]  ;;  %v5086_v56 = vld [vmem:[%s7835_s2 + $0xc] sm:$0xf]  ;;  %v4313_v7 = vld [vmem:[%s7835_s2 + $0x18] sm:$0xf0] }
 0x349   :  { %v5312_v21 = vpop.eup %5311 }
 0x34a   :  { %v6849_v59 = vmul.f32 %v5312_v21, %v1691_v31  ;;  %v4393_v21 = vld [vmem:[%s7835_s2 + $0xb8] sm:$0xf0]  ;;  %2228 = vmatpush.bf16.msra.mxu1 %v4388_v57  ;;  %2242 = vmatpush.bf16.msrb.mxu2 %v4376_v46  ;;  %v5096_v57 = vld [vmem:[%s7835_s2 + $0x54] sm:$0xf0]  ;;  %v4327_v46 = vld [vmem:[%s7835_s2 + $0x28] sm:$0xf] }
 0x34b   :  { %v4396_v31 = vor.u32 %v5106_v33, %v4393_v21 }
 0x34c   :  { %v1703_v44 = vpack.c.bf16 %v6849_v59, %v6849_v59 }
 0x34d   :  { %2254 = vmatpush.bf16.msrb.mxu3 %v4396_v31 }
 0x34e   :  { %1904 = vmatmul.bf16.vlgmr.msrb.gmra.mxu0 %v1703_v44  ;;  %1917 = vmatmul.bf16.vlgmr.msrb.gmra.mxu1 %v1703_v44 }
 0x34f   :  { %1930 = vmatmul.bf16.vlgmr.msra.gmra.mxu2 %v1703_v44  ;;  %1943 = vmatmul.bf16.vlgmr.msra.gmra.mxu3 %v1703_v44  ;;  %v4367_v44 = vld [vmem:[%s7835_s2 + $0x80] sm:$0xf] }
 0x350   :  { %v4368_v34 = vor.u32 %v5103_v43, %v4367_v44  ;;  %2229 = vmatpush.bf16.msra.mxu1 %v4372_v51  ;;  %2243 = vmatpush.bf16.msrb.mxu2 %v4360_v62  ;;  %v5094_v44 = vld [vmem:[%s7835_s2 + $0x4c] sm:$0xf]  ;;  %v4345_v43 = vld [vmem:[%s7835_s2 + $0x58] sm:$0xf0]  ;;  %v4321_v51 = vld [vmem:[%s7835_s2 + $0x30] sm:$0xf0] }
 0x351   :  { %2255 = vmatpush.bf16.msrb.mxu3 %v4380_v11  ;;  %v4348_v36 = vor.u32 %v5094_v44, %v4345_v43  ;;  %v4324_v52 = vor.u32 %v5089_v45, %v4321_v51  ;;  %v5090_v11 = vld [vmem:[%s7835_s2 + $0x2c] sm:$0xf] }
 0x352   :  { %2216 = vmatpush.bf16.msra.mxu0 %v4368_v34  ;;  %v5091_v34 = vld [vmem:[%s7835_s2 + $0x2c] sm:$0xf0]  ;;  %v4332_v53 = vor.u32 %v5090_v11, %v4329_v54 }
 0x353   :  { %v4320_v42 = vor.u32 %v5091_v34, %v4319_v30 }
 0x354   :  { %2230 = vmatpush.bf16.msra.mxu1 %v4356_v40  ;;  %v5085_v40 = vld [vmem:[%s7835_s2 + $0x4] sm:$0xf] }
 0x355   :  { %2256 = vmatpush.bf16.msrb.mxu3 %v4364_v3  ;;  %v4311_v3 = vld [vmem:[%s7835_s2 + $0x8] sm:$0xf] }
 0x356   :  { %2217 = vmatpush.bf16.msra.mxu0 %v4352_v55  ;;  %v4328_v55 = vor.u32 %v5092_v27, %v4327_v46 }
 0x359   :  { %2257 = vmatpush.bf16.msrb.mxu3 %v4348_v36 }
 0x35a   :  { %2218 = vmatpush.bf16.msra.mxu0 %v4336_v32 }
 0x35d   :  { %2258 = vmatpush.bf16.msrb.mxu3 %v4332_v53 }
 0x35e   :  { %2219 = vmatpush.bf16.msra.mxu0 %v4320_v42 }
 0x3cb   :  { %v1905_v39 = vpop.f32.mrf.mxu0  ;;  %v1918_v2 = vpop.f32.mrf.mxu1 }
 0x3cc   :  { %v1948_v5 = vadd.f32 %v1905_v39, %v5895_v16  ;;  %v1949_v49 = vadd.f32 %v1918_v2, %v5898_v18  ;;  %v4337_v16 = vld [vmem:[%s7835_s2 + $0x50] sm:$0xf0]  ;;  %v4343_v18 = vld [vmem:[%s7835_s2 + $0x48] sm:$0xf]  ;;  %v4304_v39 = vor.u32 %v5087_v48, %v4303_v60 }
 0x3cd   :  { %v4340_v21 = vor.u32 %v5093_v20, %v4337_v16  ;;  %v4344_v31 = vor.u32 %v5096_v57, %v4343_v18  ;;  %v4305_v2 = vld [vmem:[%s7835_s2 + $0x10] sm:$0xf0]  ;;  %v4316_v16 = vor.u32 %v5086_v56, %v4313_v7 }
 0x3ce   :  { %v4298_v50 = vmul.f32 -1.442695, %v1948_v5  ;;  %v4299_v33 = vmul.f32 -1.442695, %v1949_v49  ;;  %v5088_v5 = vld [vmem:[%s7835_s2 + $0x14] sm:$0xf0]  ;;  %v4308_v49 = vor.u32 %v5085_v40, %v4305_v2  ;;  %2220 = vmatpush.bf16.msra.mxu0 %v4304_v39 }
 0x3cf   :  { %2231 = vmatpush.bf16.msra.mxu1 %v4340_v21  ;;  %2244 = vmatpush.bf16.msrb.mxu2 %v4344_v31 }
 0x3d0   :  { %5313 = vpow2.f32 %v4298_v50  ;;  %2259 = vmatpush.bf16.msrb.mxu3 %v4316_v16 }
 0x3d1   :  { %5315 = vpow2.f32 %v4299_v33 }
 0x3d2   :  { %v1931_v61 = vpop.f32.mrf.mxu2  ;;  %v1944_v26 = vpop.f32.mrf.mxu3 }
 0x3d3   :  { %v1951_v62 = vadd.f32 %v1944_v26, %v5962_v1  ;;  %v1907_v47 = vpop.f32.mrf.mxu0  ;;  %v1920_v38 = vpop.f32.mrf.mxu1  ;;  %2232 = vmatpush.bf16.msra.mxu1 %v4324_v52  ;;  %2245 = vmatpush.bf16.msrb.mxu2 %v4328_v55  ;;  %v4312_v1 = vor.u32 %v5088_v5, %v4311_v3  ;;  %v1950_v30 = vadd.f32 %v1931_v61, %v5959_v63 }
 0x3d5   :  { %v4300_v20 = vmul.f32 -1.442695, %v1951_v62 }
 0x3d6   :  { %v5314_v32 = vpop.eup %5313 }
 0x3d7   :  { %v5316_v18 = vpop.eup %5315  ;;  %v1955_v57 = vadd.f32 1.0, %v5314_v32  ;;  %5317 = vpow2.f32 %v4300_v20  ;;  %2233 = vmatpush.bf16.msra.mxu1 %v4308_v49  ;;  %2246 = vmatpush.bf16.msrb.mxu2 %v4312_v1 }
 0x3d8   :  { %v1974_v50 = vadd.f32 1.0, %v5316_v18 }
 0x3d9   :  { %5319 = vrcp.f32 %v1955_v57  ;;  %v1967_v46 = vand.u32 2147483648, %v1955_v57  ;;  %v1965_v11 = vand.u32 2147483647, %v1955_v57  ;;  %vm1961_vm2 = vweird.f32 %v1955_v57 }
 0x3da   :  { %5321 = vrcp.f32 %v1974_v50  ;;  %v1933_v33 = vpop.f32.mrf.mxu2  ;;  %v1946_v21 = vpop.f32.mrf.mxu3  ;;  %v1986_v52 = vand.u32 2147483648, %v1974_v50  ;;  %v1984_v26 = vand.u32 2147483647, %v1974_v50  ;;  %vm1980_vm3 = vweird.f32 %v1974_v50 }
 0x3db   :  { %v1968_v63 = vor.u32 1.1754944e-38, %v1967_v46  ;;  %vm1966_vm6 = vcmp.eq.f32.partialorder %v1965_v11, 8.507059e+37  ;;  %v4546_v33 = vld [vmem:[%s7835_s2 + $0xe0] sm:$0xf]  ;;  %v5147_v21 = vld [vmem:[%s7835_s2 + $0xec] sm:$0xf0] }
 0x3dc   :  { %v1987_v48 = vor.u32 1.1754944e-38, %v1986_v52  ;;  %vm1985_vm7 = vcmp.eq.f32.partialorder %v1984_v26, 8.507059e+37  ;;  %v4530_v52 = vld [vmem:[%s7835_s2 + $0xc0] sm:$0xf]  ;;  %v5141_v11 = vld [vmem:[%s7835_s2 + $0xc4] sm:$0xf] }
 0x3dd   :  { %v5318_v31 = vpop.eup %5317  ;;  %v4532_v26 = vld [vmem:[%s7835_s2 + $0xd0] sm:$0xf0] }
 0x3de   :  { %v1994_v44 = vadd.f32 1.0, %v5318_v31  ;;  %v5145_v31 = vld [vmem:[%s7835_s2 + $0xe4] sm:$0xf] }
 0x3df   :  { %v5320_v43 = vpop.eup %5319 }
 0x3e0   :  { %v5322_v34 = vpop.eup %5321  ;;  %v1957_v36 = vmul.f32 %v5320_v43, %v1955_v57  ;;  %5323 = vrcp.f32 %v1994_v44  ;;  %vm1962_vm0 = vweird.f32 %v5320_v43  ;;  %v2006_v7 = vand.u32 2147483648, %v1994_v44 }
 0x3e1   :  { %v1976_v42 = vmul.f32 %v5322_v34, %v1974_v50  ;;  %5325 = vtanh.f32 %v1950_v30  ;;  %vm1981_vm1 = vweird.f32 %v5322_v34  ;;  %vm1963_vm4 = vmor %vm1961_vm2, %vm1962_vm0  ;;  %vm2000_vm9 = vweird.f32 %v1994_v44  ;;  %v4554_v30 = vld [vmem:[%s7835_s2 + $0xe8] sm:$0xf] }
 0x3e2   :  { %v1958_v45 = vsub.f32 1.0, %v1957_v36  ;;  %vm1982_vm5 = vmor %vm1980_vm3, %vm1981_vm1  ;;  %v2004_v20 = vand.u32 2147483647, %v1994_v44  ;;  %v2007_v16 = vor.u32 1.1754944e-38, %v2006_v7  ;;  %v5138_v7 = vld [vmem:[%s7835_s2 + $0xac] sm:$0xf] }
 0x3e3   :  { %v1977_v51 = vsub.f32 1.0, %v1976_v42 }
 0x3e4   :  { %v1959_v27 = vmul.f32 %v5320_v43, %v1958_v45  ;;  %vm2005_vm11 = vcmp.eq.f32.partialorder %v2004_v20, 8.507059e+37  ;;  %v5146_v45 = vld [vmem:[%s7835_s2 + $0xec] sm:$0xf]  ;;  %v4524_v20 = vld [vmem:[%s7835_s2 + $0xb8] sm:$0xf0] }
 0x3e5   :  { %v1978_v54 = vmul.f32 %v5322_v34, %v1977_v51  ;;  %v4556_v51 = vld [vmem:[%s7835_s2 + $0xf8] sm:$0xf0] }
 0x3e6   :  { %v5324_v55 = vpop.eup %5323  ;;  %v1960_v53 = vadd.f32 %v5320_v43, %v1959_v27  ;;  %v4559_v46 = vor.u32 %v5146_v45, %v4556_v51  ;;  %v5143_v27 = vld [vmem:[%s7835_s2 + $0xcc] sm:$0xf0]  ;;  %v5129_v51 = vld [vmem:[%s7835_s2 + $0x64] sm:$0xf] }
 0x3e7   :  { %v1979_v61 = vadd.f32 %v5322_v34, %v1978_v54  ;;  %v1996_v60 = vmul.f32 %v5324_v55, %v1994_v44  ;;  %v5326_v62 = vpop.eup %5325  ;;  %vm2001_vm8 = vweird.f32 %v5324_v55  ;;  %v4547_v44 = vor.u32 %v5147_v21, %v4546_v33  ;;  %v4500_v33 = vld [vmem:[%s7835_s2 + $0x90] sm:$0xf0]  ;;  %v4506_v21 = vld [vmem:[%s7835_s2 + $0x88] sm:$0xf]  ;;  %v5131_v45 = vld [vmem:[%s7835_s2 + $0x6c] sm:$0xf0] }
 0x3e8   :  { %v1964_v40 = vsel %vm1963_vm4, %v5320_v43, %v1960_v53  ;;  %vm2002_vm10 = vmor %vm2000_vm9, %vm2001_vm8  ;;  %v4548_v43 = vld [vmem:[%s7835_s2 + $0xf0] sm:$0xf0]  ;;  %2569 = vmatpush.bf16.msra.mxu3 %v4559_v46  ;;  %v4531_v54 = vor.u32 %v5143_v27, %v4530_v52  ;;  %v5144_v53 = vld [vmem:[%s7835_s2 + $0xd4] sm:$0xf0] }
 0x3e9   :  { %v1969_v47 = vsel %vm1966_vm6, %v1968_v63, %v1964_v40  ;;  %v1983_v38 = vsel %vm1982_vm5, %v5322_v34, %v1979_v61  ;;  %v1997_v39 = vsub.f32 1.0, %v1996_v60  ;;  %v5148_v34 = vld [vmem:[%s7835_s2 + $0xf4] sm:$0xf0]  ;;  %v4551_v36 = vor.u32 %v5145_v31, %v4548_v43  ;;  %2530 = vmatpush.bf16.msrb.mxu0 %v4547_v44  ;;  %v5142_v60 = vld [vmem:[%s7835_s2 + $0xcc] sm:$0xf] }
 0x3ea   :  { %v1988_v2 = vsel %vm1985_vm7, %v1987_v48, %v1983_v38  ;;  %v2011_v3 = vmul.f32 %v5326_v62, %v1969_v47  ;;  %v4555_v42 = vor.u32 %v5148_v34, %v4554_v30  ;;  %v4535_v63 = vor.u32 %v5141_v11, %v4532_v26  ;;  %v4540_v48 = vld [vmem:[%s7835_s2 + $0xd8] sm:$0xf0]  ;;  %v4514_v62 = vld [vmem:[%s7835_s2 + $0xa0] sm:$0xf]  ;;  %v5139_v47 = vld [vmem:[%s7835_s2 + $0xac] sm:$0xf0] }
 0x3eb   :  { %v2010_v5 = vmul.f32 %v1988_v2, %v6846_v41  ;;  %v1998_v49 = vmul.f32 %v5324_v55, %v1997_v39  ;;  %2543 = vmatpush.bf16.msrb.mxu1 %v4551_v36  ;;  %v4543_v40 = vor.u32 %v5142_v60, %v4540_v48  ;;  %v5137_v38 = vld [vmem:[%s7835_s2 + $0xa4] sm:$0xf]  ;;  %v4515_v39 = vor.u32 %v5139_v47, %v4514_v62  ;;  %v4516_v2 = vld [vmem:[%s7835_s2 + $0xb0] sm:$0xf0]  ;;  %v5136_v31 = vld [vmem:[%s7835_s2 + $0x94] sm:$0xf0] }
 0x3ec   :  { %2556 = vmatpush.bf16.msra.mxu2 %v4555_v42  ;;  %v4507_v43 = vor.u32 %v5136_v31, %v4506_v21  ;;  %v5134_v30 = vld [vmem:[%s7835_s2 + $0x8c] sm:$0xf]  ;;  %v4508_v34 = vld [vmem:[%s7835_s2 + $0x98] sm:$0xf0]  ;;  %v4482_v42 = vld [vmem:[%s7835_s2 + $0x60] sm:$0xf]  ;;  %v319_v26 = vadd.f32 %v5902_v8, %v5892_v14 }
 0x3ed   :  { %v7050_v1 = vadd.f32 %v2011_v3, %v2010_v5  ;;  %v1999_v56 = vadd.f32 %v5324_v55, %v1998_v49  ;;  %2531 = vmatpush.bf16.msrb.mxu0 %v4531_v54  ;;  %2570 = vmatpush.bf16.msra.mxu3 %v4543_v40  ;;  %v4522_v3 = vld [vmem:[%s7835_s2 + $0xa8] sm:$0xf]  ;;  %v5140_v5 = vld [vmem:[%s7835_s2 + $0xb4] sm:$0xf0]  ;;  %v4519_v49 = vor.u32 %v5137_v38, %v4516_v2  ;;  %v4484_v52 = vld [vmem:[%s7835_s2 + $0x70] sm:$0xf0] }
 0x3ee   :  { %v4511_v36 = vor.u32 %v5134_v30, %v4508_v34  ;;  %v4483_v46 = vor.u32 %v5131_v45, %v4482_v42  ;;  %v4490_v27 = vld [vmem:[%s7835_s2 + $0x68] sm:$0xf]  ;;  %v5132_v11 = vld [vmem:[%s7835_s2 + $0x74] sm:$0xf0]  ;;  %v286_v54 = vadd.f32 %v5900_v19, %v5890_v13  ;;  %v4466_v19 = vld [vmem:[%s7835_s2 + $0x40] sm:$0xf] }
 0x3ef   :  { %5327 = vtanh.f32 %v7050_v1  ;;  %v2003_v32 = vsel %vm2002_vm10, %v5324_v55, %v1999_v56  ;;  %v4538_v55 = vld [vmem:[%s7835_s2 + $0xc8] sm:$0xf]  ;;  %2544 = vmatpush.bf16.msrb.mxu1 %v4535_v63  ;;  %v4523_v56 = vor.u32 %v5140_v5, %v4522_v3  ;;  %v5130_v63 = vld [vmem:[%s7835_s2 + $0x6c] sm:$0xf]  ;;  %v5127_v8 = vld [vmem:[%s7835_s2 + $0x4c] sm:$0xf0] }
 0x3f0   :  { %v2008_v57 = vsel %vm2005_vm11, %v2007_v16, %v2003_v32  ;;  %v4539_v61 = vor.u32 %v5144_v53, %v4538_v55  ;;  %v4527_v32 = vor.u32 %v5138_v7, %v4524_v20  ;;  %v4498_v16 = vld [vmem:[%s7835_s2 + $0x80] sm:$0xf]  ;;  %v4487_v55 = vor.u32 %v5129_v51, %v4484_v52  ;;  %v5125_v38 = vld [vmem:[%s7835_s2 + $0x44] sm:$0xf]  ;;  %v4468_v2 = vld [vmem:[%s7835_s2 + $0x50] sm:$0xf0] }
 0x3f1   :  { %2532 = vmatpush.bf16.msrb.mxu0 %v4515_v39  ;;  %v4491_v53 = vor.u32 %v5132_v11, %v4490_v27  ;;  %v4467_v39 = vor.u32 %v5127_v8, %v4466_v19  ;;  %v4474_v3 = vld [vmem:[%s7835_s2 + $0x48] sm:$0xf]  ;;  %v5128_v5 = vld [vmem:[%s7835_s2 + $0x54] sm:$0xf0]  ;;  %v4471_v7 = vor.u32 %v5125_v38, %v4468_v2  ;;  %v5121_v21 = vld [vmem:[%s7835_s2 + $0x24] sm:$0xf] }
 0x3f2   :  { %2557 = vmatpush.bf16.msra.mxu2 %v4539_v61  ;;  %2571 = vmatpush.bf16.msra.mxu3 %v4527_v32  ;;  %v4492_v61 = vld [vmem:[%s7835_s2 + $0x78] sm:$0xf0]  ;;  %v4475_v20 = vor.u32 %v5128_v5, %v4474_v3  ;;  %v5126_v32 = vld [vmem:[%s7835_s2 + $0x4c] sm:$0xf]  ;;  %v4452_v31 = vld [vmem:[%s7835_s2 + $0x30] sm:$0xf0] }
 0x3f3   :  { %2545 = vmatpush.bf16.msrb.mxu1 %v4519_v49  ;;  %v4495_v40 = vor.u32 %v5130_v63, %v4492_v61  ;;  %v5124_v30 = vld [vmem:[%s7835_s2 + $0x34] sm:$0xf0]  ;;  %v5122_v34 = vld [vmem:[%s7835_s2 + $0x2c] sm:$0xf]  ;;  %v4434_v52 = vld [vmem:[%s7835_s2] sm:$0xf] }
 0x3f4   :  { %v5119_v27 = vld [vmem:[%s7835_s2 + $0xc] sm:$0xf0]  ;;  %v5117_v11 = vld [vmem:[%s7835_s2 + $0x4] sm:$0xf]  ;;  %v4436_v63 = vld [vmem:[%s7835_s2 + $0x10] sm:$0xf0] }
 0x3f5   :  { %v5328_v18 = vpop.eup %5327  ;;  %v4442_v61 = vld [vmem:[%s7835_s2 + $0x8] sm:$0xf] }
 0x3f6   :  { %v7053_v50 = vmul.f32 %v5328_v18, %v2008_v57  ;;  %2558 = vmatpush.bf16.msra.mxu2 %v4523_v56  ;;  %v5135_v18 = vld [vmem:[%s7835_s2 + $0x8c] sm:$0xf0]  ;;  %v5133_v57 = vld [vmem:[%s7835_s2 + $0x84] sm:$0xf]  ;;  %2572 = vmatpush.bf16.msra.mxu3 %v4511_v36  ;;  %v4460_v36 = vld [vmem:[%s7835_s2 + $0x38] sm:$0xf0] }
 0x3f7   :  { %v4503_v44 = vor.u32 %v5133_v57, %v4500_v33  ;;  %v5123_v57 = vld [vmem:[%s7835_s2 + $0x2c] sm:$0xf0] }
 0x3f8   :  { %v2020_v41 = vpack.c.bf16 %v7053_v50, %v7053_v50 }
 0x3f9   :  { %2546 = vmatpush.bf16.msrb.mxu1 %v4503_v44  ;;  %v4458_v44 = vld [vmem:[%s7835_s2 + $0x28] sm:$0xf] }
 0x3fa   :  { %2221 = vmatmul.bf16.vlgmr.msra.gmra.mxu0 %v2020_v41  ;;  %2234 = vmatmul.bf16.vlgmr.msra.gmra.mxu1 %v2020_v41  ;;  %v4459_v51 = vor.u32 %v5124_v30, %v4458_v44 }
 0x3fb   :  { %2247 = vmatmul.bf16.vlgmr.msrb.gmra.mxu2 %v2020_v41  ;;  %2260 = vmatmul.bf16.vlgmr.msrb.gmra.mxu3 %v2020_v41  ;;  %v4499_v41 = vor.u32 %v5135_v18, %v4498_v16  ;;  %v4476_v16 = vld [vmem:[%s7835_s2 + $0x58] sm:$0xf0]  ;;  %v4450_v18 = vld [vmem:[%s7835_s2 + $0x20] sm:$0xf] }
 0x3fc   :  { %2559 = vmatpush.bf16.msra.mxu2 %v4507_v43  ;;  %2573 = vmatpush.bf16.msra.mxu3 %v4495_v40  ;;  %v4451_v33 = vor.u32 %v5123_v57, %v4450_v18  ;;  %v4455_v43 = vor.u32 %v5121_v21, %v4452_v31  ;;  %v5118_v40 = vld [vmem:[%s7835_s2 + $0xc] sm:$0xf] }
 0x3fd   :  { %2533 = vmatpush.bf16.msrb.mxu0 %v4499_v41  ;;  %2547 = vmatpush.bf16.msrb.mxu1 %v4487_v55  ;;  %v4479_v41 = vor.u32 %v5126_v32, %v4476_v16 }
 0x400   :  { %2560 = vmatpush.bf16.msra.mxu2 %v4491_v53  ;;  %2574 = vmatpush.bf16.msra.mxu3 %v4479_v41  ;;  %v4435_v53 = vor.u32 %v5119_v27, %v4434_v52 }
 0x401   :  { %2534 = vmatpush.bf16.msrb.mxu0 %v4483_v46  ;;  %2548 = vmatpush.bf16.msrb.mxu1 %v4471_v7  ;;  %v4463_v46 = vor.u32 %v5122_v34, %v4460_v36 }
 0x404   :  { %2561 = vmatpush.bf16.msra.mxu2 %v4475_v20  ;;  %2575 = vmatpush.bf16.msra.mxu3 %v4463_v46 }
 0x405   :  { %2535 = vmatpush.bf16.msrb.mxu0 %v4467_v39  ;;  %2549 = vmatpush.bf16.msrb.mxu1 %v4455_v43 }
 0x408   :  { %2562 = vmatpush.bf16.msra.mxu2 %v4459_v51 }
 0x409   :  { %2536 = vmatpush.bf16.msrb.mxu0 %v4451_v33 }
 0x40d   :  { %2537 = vmatpush.bf16.msrb.mxu0 %v4435_v53 }
 0x477   :  { %v2222_v60 = vpop.f32.mrf.mxu0  ;;  %v2235_v48 = vpop.f32.mrf.mxu1 }
 0x478   :  { %v2265_v62 = vadd.f32 %v2222_v60, %v286_v54  ;;  %v2266_v47 = vadd.f32 %v2235_v48, %v319_v26  ;;  %v5120_v60 = vld [vmem:[%s7835_s2 + $0x14] sm:$0xf0]  ;;  %v4439_v48 = vor.u32 %v5117_v11, %v4436_v63 }
 0x47a   :  { %v4429_v49 = vmul.f32 -1.442695, %v2265_v62  ;;  %v4430_v56 = vmul.f32 -1.442695, %v2266_v47  ;;  %v4444_v62 = vld [vmem:[%s7835_s2 + $0x18] sm:$0xf0]  ;;  %2550 = vmatpush.bf16.msrb.mxu1 %v4439_v48 }
 0x47b   :  { %v4447_v8 = vor.u32 %v5118_v40, %v4444_v62 }
 0x47c   :  { %5329 = vpow2.f32 %v4429_v49 }
 0x47d   :  { %5331 = vpow2.f32 %v4430_v56  ;;  %2576 = vmatpush.bf16.msra.mxu3 %v4447_v8 }
 0x47e   :  { %v2248_v42 = vpop.f32.mrf.mxu2  ;;  %v2261_v45 = vpop.f32.mrf.mxu3 }
 0x47f   :  { %v2268_v54 = vadd.f32 %v2261_v45, %v5968_v6  ;;  %v2224_v26 = vpop.f32.mrf.mxu0  ;;  %v2237_v55 = vpop.f32.mrf.mxu1  ;;  %v4443_v6 = vor.u32 %v5120_v60, %v4442_v61  ;;  %v2267_v20 = vadd.f32 %v2248_v42, %v5965_v4 }
 0x481   :  { %v4431_v47 = vmul.f32 -1.442695, %v2268_v54  ;;  %2563 = vmatpush.bf16.msra.mxu2 %v4443_v6 }
 0x482   :  { %v5330_v19 = vpop.eup %5329 }
 0x483   :  { %v5332_v38 = vpop.eup %5331  ;;  %v2272_v39 = vadd.f32 1.0, %v5330_v19  ;;  %5333 = vpow2.f32 %v4431_v47 }
 0x484   :  { %v2291_v2 = vadd.f32 1.0, %v5332_v38  ;;  %v4677_v38 = vld [vmem:[%s7835_s2 + $0xe0] sm:$0xf] }
 0x485   :  { %5335 = vrcp.f32 %v2272_v39  ;;  %v2284_v33 = vand.u32 2147483648, %v2272_v39  ;;  %v2282_v44 = vand.u32 2147483647, %v2272_v39  ;;  %vm2278_vm14 = vweird.f32 %v2272_v39 }
 0x486   :  { %5337 = vrcp.f32 %v2291_v2  ;;  %v2250_v3 = vpop.f32.mrf.mxu2  ;;  %v2263_v5 = vpop.f32.mrf.mxu3  ;;  %v2303_v21 = vand.u32 2147483648, %v2291_v2  ;;  %v2301_v30 = vand.u32 2147483647, %v2291_v2  ;;  %vm2297_vm15 = vweird.f32 %v2291_v2 }
 0x487   :  { %v2285_v4 = vor.u32 1.1754944e-38, %v2284_v33  ;;  %vm2283_vm2 = vcmp.eq.f32.partialorder %v2282_v44, 8.507059e+37  ;;  %v4679_v5 = vld [vmem:[%s7835_s2 + $0xf0] sm:$0xf0]  ;;  %v5173_v33 = vld [vmem:[%s7835_s2 + $0xc4] sm:$0xf] }
 0x488   :  { %v2304_v51 = vor.u32 1.1754944e-38, %v2303_v21  ;;  %vm2302_vm3 = vcmp.eq.f32.partialorder %v2301_v30, 8.507059e+37  ;;  %v4669_v44 = vld [vmem:[%s7835_s2 + $0xc8] sm:$0xf] }
 0x489   :  { %v5334_v49 = vpop.eup %5333 }
 0x48a   :  { %v2311_v56 = vadd.f32 1.0, %v5334_v49  ;;  %v4685_v49 = vld [vmem:[%s7835_s2 + $0xe8] sm:$0xf] }
 0x48b   :  { %v5336_v7 = vpop.eup %5335 }
 0x48c   :  { %v5338_v32 = vpop.eup %5337  ;;  %v2274_v16 = vmul.f32 %v5336_v7, %v2272_v39  ;;  %5339 = vrcp.f32 %v2311_v56  ;;  %vm2279_vm12 = vweird.f32 %v5336_v7  ;;  %v2323_v48 = vand.u32 2147483648, %v2311_v56  ;;  %v5179_v39 = vld [vmem:[%s7835_s2 + $0xec] sm:$0xf0] }
 0x48d   :  { %v2293_v18 = vmul.f32 %v5338_v32, %v2291_v2  ;;  %5341 = vtanh.f32 %v2267_v20  ;;  %vm2298_vm13 = vweird.f32 %v5338_v32  ;;  %vm2280_vm0 = vmor %vm2278_vm14, %vm2279_vm12  ;;  %vm2317_vm5 = vweird.f32 %v2311_v56  ;;  %v5177_v2 = vld [vmem:[%s7835_s2 + $0xe4] sm:$0xf] }
 0x48e   :  { %v2275_v57 = vsub.f32 1.0, %v2274_v16  ;;  %vm2299_vm1 = vmor %vm2297_vm15, %vm2298_vm13  ;;  %v2321_v6 = vand.u32 2147483647, %v2311_v56  ;;  %v2324_v62 = vor.u32 1.1754944e-38, %v2323_v48  ;;  %v4678_v3 = vor.u32 %v5179_v39, %v4677_v38  ;;  %v4687_v16 = vld [vmem:[%s7835_s2 + $0xf8] sm:$0xf0] }
 0x48f   :  { %v2294_v41 = vsub.f32 1.0, %v2293_v18  ;;  %v4629_v48 = vld [vmem:[%s7835_s2 + $0x80] sm:$0xf] }
 0x490   :  { %v2276_v31 = vmul.f32 %v5336_v7, %v2275_v57  ;;  %vm2322_vm7 = vcmp.eq.f32.partialorder %v2321_v6, 8.507059e+37  ;;  %2847 = vmatpush.bf16.msra.mxu0 %v4678_v3  ;;  %v4661_v57 = vld [vmem:[%s7835_s2 + $0xc0] sm:$0xf]  ;;  %v5167_v6 = vld [vmem:[%s7835_s2 + $0x8c] sm:$0xf0] }
 0x491   :  { %v2295_v43 = vmul.f32 %v5338_v32, %v2294_v41  ;;  %v5175_v41 = vld [vmem:[%s7835_s2 + $0xcc] sm:$0xf0]  ;;  %v4639_v3 = vld [vmem:[%s7835_s2 + $0x98] sm:$0xf0] }
 0x492   :  { %v5340_v34 = vpop.eup %5339  ;;  %v2277_v36 = vadd.f32 %v5336_v7, %v2276_v31  ;;  %v4662_v21 = vor.u32 %v5175_v41, %v4661_v57  ;;  %v4663_v31 = vld [vmem:[%s7835_s2 + $0xd0] sm:$0xf0] }
 0x493   :  { %v2296_v42 = vadd.f32 %v5338_v32, %v2295_v43  ;;  %v2313_v45 = vmul.f32 %v5340_v34, %v2311_v56  ;;  %v5342_v52 = vpop.eup %5341  ;;  %vm2318_vm4 = vweird.f32 %v5340_v34  ;;  %v5180_v56 = vld [vmem:[%s7835_s2 + $0xf4] sm:$0xf0]  ;;  %v4666_v30 = vor.u32 %v5173_v33, %v4663_v31  ;;  %v5162_v33 = vld [vmem:[%s7835_s2 + $0x6c] sm:$0xf] }
 0x494   :  { %v2281_v46 = vsel %vm2280_vm0, %v5336_v7, %v2277_v36  ;;  %vm2319_vm6 = vmor %vm2317_vm5, %vm2318_vm4  ;;  %v4682_v7 = vor.u32 %v5177_v2, %v4679_v5  ;;  %v4686_v20 = vor.u32 %v5180_v56, %v4685_v49  ;;  %v5176_v43 = vld [vmem:[%s7835_s2 + $0xd4] sm:$0xf0]  ;;  %v5174_v36 = vld [vmem:[%s7835_s2 + $0xcc] sm:$0xf]  ;;  %2848 = vmatpush.bf16.msra.mxu0 %v4662_v21 }
 0x495   :  { %v2286_v27 = vsel %vm2283_vm2, %v2285_v4, %v2281_v46  ;;  %v2300_v11 = vsel %vm2299_vm1, %v5338_v32, %v2296_v42  ;;  %v2314_v54 = vsub.f32 1.0, %v2313_v45  ;;  %v5178_v32 = vld [vmem:[%s7835_s2 + $0xec] sm:$0xf]  ;;  %v4671_v4 = vld [vmem:[%s7835_s2 + $0xd8] sm:$0xf0] }
 0x496   :  { %v2305_v26 = vsel %vm2302_vm3, %v2304_v51, %v2300_v11  ;;  %v2328_v55 = vmul.f32 %v5342_v52, %v2286_v27  ;;  %v4690_v18 = vor.u32 %v5178_v32, %v4687_v16  ;;  %2860 = vmatpush.bf16.msra.mxu1 %v4682_v7  ;;  %2873 = vmatpush.bf16.msrb.mxu2 %v4686_v20  ;;  %v4645_v45 = vld [vmem:[%s7835_s2 + $0xa0] sm:$0xf]  ;;  %v5171_v51 = vld [vmem:[%s7835_s2 + $0xac] sm:$0xf0]  ;;  %v5169_v46 = vld [vmem:[%s7835_s2 + $0xa4] sm:$0xf] }
 0x497   :  { %v2327_v53 = vmul.f32 %v2305_v26, %v7050_v1  ;;  %v2315_v63 = vmul.f32 %v5340_v34, %v2314_v54  ;;  %v4674_v42 = vor.u32 %v5174_v36, %v4671_v4  ;;  %v4646_v52 = vor.u32 %v5171_v51, %v4645_v45  ;;  %v4647_v27 = vld [vmem:[%s7835_s2 + $0xb0] sm:$0xf0]  ;;  %v4653_v11 = vld [vmem:[%s7835_s2 + $0xa8] sm:$0xf]  ;;  %v5172_v54 = vld [vmem:[%s7835_s2 + $0xb4] sm:$0xf0] }
 0x498   :  { %2886 = vmatpush.bf16.msrb.mxu3 %v4690_v18  ;;  %v4650_v26 = vor.u32 %v5169_v46, %v4647_v27  ;;  %v5166_v2 = vld [vmem:[%s7835_s2 + $0x8c] sm:$0xf]  ;;  %v4613_v49 = vld [vmem:[%s7835_s2 + $0x60] sm:$0xf]  ;;  %v5163_v56 = vld [vmem:[%s7835_s2 + $0x6c] sm:$0xf0] }
 0x499   :  { %v7256_v61 = vadd.f32 %v2328_v55, %v2327_v53  ;;  %v2316_v60 = vadd.f32 %v5340_v34, %v2315_v63  ;;  %v4654_v55 = vor.u32 %v5172_v54, %v4653_v11  ;;  %v5170_v53 = vld [vmem:[%s7835_s2 + $0xac] sm:$0xf]  ;;  %v4655_v63 = vld [vmem:[%s7835_s2 + $0xb8] sm:$0xf0]  ;;  %2849 = vmatpush.bf16.msra.mxu0 %v4646_v52  ;;  %v4642_v5 = vor.u32 %v5166_v2, %v4639_v3  ;;  %v5161_v7 = vld [vmem:[%s7835_s2 + $0x64] sm:$0xf] }
 0x49a   :  { %2861 = vmatpush.bf16.msra.mxu1 %v4666_v30  ;;  %v4614_v20 = vor.u32 %v5163_v56, %v4613_v49  ;;  %v4615_v32 = vld [vmem:[%s7835_s2 + $0x70] sm:$0xf0]  ;;  %v4621_v16 = vld [vmem:[%s7835_s2 + $0x68] sm:$0xf]  ;;  %v5164_v18 = vld [vmem:[%s7835_s2 + $0x74] sm:$0xf0] }
 0x49b   :  { %5343 = vtanh.f32 %v7256_v61  ;;  %v2320_v40 = vsel %vm2319_vm6, %v5340_v34, %v2316_v60  ;;  %v4670_v34 = vor.u32 %v5176_v43, %v4669_v44  ;;  %v4658_v60 = vor.u32 %v5170_v53, %v4655_v63  ;;  %v4623_v21 = vld [vmem:[%s7835_s2 + $0x78] sm:$0xf0]  ;;  %v4597_v36 = vld [vmem:[%s7835_s2 + $0x40] sm:$0xf]  ;;  %v5159_v4 = vld [vmem:[%s7835_s2 + $0x4c] sm:$0xf0] }
 0x49c   :  { %v2325_v19 = vsel %vm2322_vm7, %v2324_v62, %v2320_v40  ;;  %2887 = vmatpush.bf16.msrb.mxu3 %v4674_v42  ;;  %v5165_v40 = vld [vmem:[%s7835_s2 + $0x84] sm:$0xf]  ;;  %v4630_v62 = vor.u32 %v5167_v6, %v4629_v48  ;;  %v4618_v57 = vor.u32 %v5161_v7, %v4615_v32  ;;  %v4622_v41 = vor.u32 %v5164_v18, %v4621_v16  ;;  %v5160_v51 = vld [vmem:[%s7835_s2 + $0x54] sm:$0xf0]  ;;  %v5158_v54 = vld [vmem:[%s7835_s2 + $0x4c] sm:$0xf] }
 0x49d   :  { %2874 = vmatpush.bf16.msrb.mxu2 %v4670_v34  ;;  %v4626_v43 = vor.u32 %v5162_v33, %v4623_v21  ;;  %v5157_v42 = vld [vmem:[%s7835_s2 + $0x44] sm:$0xf]  ;;  %v4598_v45 = vor.u32 %v5159_v4, %v4597_v36  ;;  %v5155_v53 = vld [vmem:[%s7835_s2 + $0x2c] sm:$0xf0]  ;;  %v4583_v6 = vld [vmem:[%s7835_s2 + $0x30] sm:$0xf0] }
 0x49e   :  { %2862 = vmatpush.bf16.msra.mxu1 %v4650_v26  ;;  %2850 = vmatpush.bf16.msra.mxu0 %v4630_v62  ;;  %v4607_v26 = vld [vmem:[%s7835_s2 + $0x58] sm:$0xf0]  ;;  %v5153_v48 = vld [vmem:[%s7835_s2 + $0x24] sm:$0xf]  ;;  %v5151_v49 = vld [vmem:[%s7835_s2 + $0xc] sm:$0xf0] }
 0x49f   :  { %v4610_v63 = vor.u32 %v5158_v54, %v4607_v26  ;;  %v4586_v62 = vor.u32 %v5153_v48, %v4583_v6  ;;  %v5149_v56 = vld [vmem:[%s7835_s2 + $0x4] sm:$0xf]  ;;  %v4567_v18 = vld [vmem:[%s7835_s2 + $0x10] sm:$0xf0]  ;;  %v5150_v21 = vld [vmem:[%s7835_s2 + $0xc] sm:$0xf] }
 0x4a0   :  { %2888 = vmatpush.bf16.msrb.mxu3 %v4658_v60  ;;  %v4570_v33 = vor.u32 %v5149_v56, %v4567_v18 }
 0x4a1   :  { %v5344_v47 = vpop.eup %5343  ;;  %2875 = vmatpush.bf16.msrb.mxu2 %v4654_v55  ;;  %v4581_v55 = vld [vmem:[%s7835_s2 + $0x20] sm:$0xf] }
 0x4a2   :  { %v7259_v8 = vmul.f32 %v5344_v47, %v2325_v19  ;;  %v4631_v47 = vld [vmem:[%s7835_s2 + $0x90] sm:$0xf0]  ;;  %v4637_v19 = vld [vmem:[%s7835_s2 + $0x88] sm:$0xf]  ;;  %2851 = vmatpush.bf16.msra.mxu0 %v4614_v20  ;;  %v4582_v60 = vor.u32 %v5155_v53, %v4581_v55 }
 0x4a3   :  { %v4634_v38 = vor.u32 %v5165_v40, %v4631_v47  ;;  %v4589_v40 = vld [vmem:[%s7835_s2 + $0x28] sm:$0xf]  ;;  %v5156_v47 = vld [vmem:[%s7835_s2 + $0x34] sm:$0xf0] }
 0x4a4   :  { %v2337_v1 = vpack.c.bf16 %v7259_v8, %v7259_v8  ;;  %2889 = vmatpush.bf16.msrb.mxu3 %v4642_v5  ;;  %v4590_v2 = vor.u32 %v5156_v47, %v4589_v40  ;;  %v4565_v5 = vld [vmem:[%s7835_s2] sm:$0xf] }
 0x4a5   :  { %2863 = vmatpush.bf16.msra.mxu1 %v4634_v38  ;;  %v4566_v16 = vor.u32 %v5151_v49, %v4565_v5 }
 0x4a6   :  { %2538 = vmatmul.bf16.vlgmr.msrb.gmra.mxu0 %v2337_v1  ;;  %2551 = vmatmul.bf16.vlgmr.msrb.gmra.mxu1 %v2337_v1 }
 0x4a7   :  { %2564 = vmatmul.bf16.vlgmr.msra.gmra.mxu2 %v2337_v1  ;;  %2577 = vmatmul.bf16.vlgmr.msra.gmra.mxu3 %v2337_v1  ;;  %v5168_v1 = vld [vmem:[%s7835_s2 + $0x94] sm:$0xf0] }
 0x4a8   :  { %v4638_v39 = vor.u32 %v5168_v1, %v4637_v19  ;;  %2890 = vmatpush.bf16.msrb.mxu3 %v4626_v43  ;;  %2852 = vmatpush.bf16.msra.mxu0 %v4598_v45  ;;  %v5154_v19 = vld [vmem:[%s7835_s2 + $0x2c] sm:$0xf]  ;;  %v4591_v1 = vld [vmem:[%s7835_s2 + $0x38] sm:$0xf0] }
 0x4a9   :  { %2864 = vmatpush.bf16.msra.mxu1 %v4618_v57  ;;  %v4594_v3 = vor.u32 %v5154_v19, %v4591_v1  ;;  %v4573_v57 = vld [vmem:[%s7835_s2 + $0x8] sm:$0xf] }
 0x4aa   :  { %2876 = vmatpush.bf16.msrb.mxu2 %v4638_v39 }
 0x4ac   :  { %2891 = vmatpush.bf16.msrb.mxu3 %v4610_v63  ;;  %2853 = vmatpush.bf16.msra.mxu0 %v4582_v60 }
 0x4ae   :  { %2877 = vmatpush.bf16.msrb.mxu2 %v4622_v41  ;;  %v5152_v41 = vld [vmem:[%s7835_s2 + $0x14] sm:$0xf0] }
 0x4b0   :  { %2892 = vmatpush.bf16.msrb.mxu3 %v4594_v3  ;;  %2854 = vmatpush.bf16.msra.mxu0 %v4566_v16 }
 0x523   :  { %v2539_v31 = vpop.f32.mrf.mxu0  ;;  %v2552_v44 = vpop.f32.mrf.mxu1 }
 0x524   :  { %v2582_v30 = vadd.f32 %v2539_v31, %v5905_v23  ;;  %v2583_v34 = vadd.f32 %v2552_v44, %v5908_v25  ;;  %v4599_v23 = vld [vmem:[%s7835_s2 + $0x50] sm:$0xf0]  ;;  %v4605_v25 = vld [vmem:[%s7835_s2 + $0x48] sm:$0xf]  ;;  %v4575_v31 = vld [vmem:[%s7835_s2 + $0x18] sm:$0xf0] }
 0x525   :  { %v4602_v27 = vor.u32 %v5157_v42, %v4599_v23  ;;  %v4606_v11 = vor.u32 %v5160_v51, %v4605_v25 }
 0x526   :  { %v4560_v46 = vmul.f32 -1.442695, %v2582_v30  ;;  %v4561_v52 = vmul.f32 -1.442695, %v2583_v34  ;;  %v4578_v30 = vor.u32 %v5150_v21, %v4575_v31 }
 0x527   :  { %2865 = vmatpush.bf16.msra.mxu1 %v4602_v27  ;;  %2878 = vmatpush.bf16.msrb.mxu2 %v4606_v11 }
 0x528   :  { %5345 = vpow2.f32 %v4560_v46  ;;  %2893 = vmatpush.bf16.msrb.mxu3 %v4578_v30  ;;  %v5209_v30 = vld [vmem:[%s7835_s2 + $0xe4] sm:$0xf] }
 0x529   :  { %5347 = vpow2.f32 %v4561_v52 }
 0x52a   :  { %v2565_v38 = vpop.f32.mrf.mxu2  ;;  %v2578_v39 = vpop.f32.mrf.mxu3 }
 0x52b   :  { %v2585_v7 = vadd.f32 %v2578_v39, %v5974_v15  ;;  %v2541_v20 = vpop.f32.mrf.mxu0  ;;  %v2554_v32 = vpop.f32.mrf.mxu1  ;;  %2866 = vmatpush.bf16.msra.mxu1 %v4586_v62  ;;  %2879 = vmatpush.bf16.msrb.mxu2 %v4590_v2  ;;  %v4574_v15 = vor.u32 %v5152_v41, %v4573_v57  ;;  %v2584_v46 = vadd.f32 %v2565_v38, %v5971_v10 }
 0x52d   :  { %v4562_v44 = vmul.f32 -1.442695, %v2585_v7 }
 0x52e   :  { %v5346_v43 = vpop.eup %5345 }
 0x52f   :  { %v5348_v34 = vpop.eup %5347  ;;  %v2589_v36 = vadd.f32 1.0, %v5346_v43  ;;  %5349 = vpow2.f32 %v4562_v44  ;;  %2867 = vmatpush.bf16.msra.mxu1 %v4570_v33  ;;  %2880 = vmatpush.bf16.msrb.mxu2 %v4574_v15  ;;  %v4808_v44 = vld [vmem:[%s7835_s2 + $0xe0] sm:$0xf]  ;;  %v5211_v43 = vld [vmem:[%s7835_s2 + $0xec] sm:$0xf0] }
 0x530   :  { %v2608_v4 = vadd.f32 1.0, %v5348_v34  ;;  %v4809_v34 = vor.u32 %v5211_v43, %v4808_v44  ;;  %v4730_v44 = vld [vmem:[%s7835_s2 + $0x50] sm:$0xf0]  ;;  %v4784_v43 = vld [vmem:[%s7835_s2 + $0xa8] sm:$0xf] }
 0x531   :  { %5351 = vrcp.f32 %v2589_v36  ;;  %v2601_v55 = vand.u32 2147483648, %v2589_v36  ;;  %v2599_v60 = vand.u32 2147483647, %v2589_v36  ;;  %vm2595_vm10 = vweird.f32 %v2589_v36 }
 0x532   :  { %5353 = vrcp.f32 %v2608_v4  ;;  %v2567_v42 = vpop.f32.mrf.mxu2  ;;  %v2580_v45 = vpop.f32.mrf.mxu3  ;;  %v2620_v53 = vand.u32 2147483648, %v2608_v4  ;;  %v2618_v6 = vand.u32 2147483647, %v2608_v4  ;;  %vm2614_vm11 = vweird.f32 %v2608_v4  ;;  %3164 = vmatpush.bf16.msrb.mxu0 %v4809_v34 }
 0x533   :  { %v2602_v10 = vor.u32 1.1754944e-38, %v2601_v55  ;;  %vm2600_vm14 = vcmp.eq.f32.partialorder %v2599_v60, 8.507059e+37  ;;  %v4792_v42 = vld [vmem:[%s7835_s2 + $0xc0] sm:$0xf]  ;;  %v5207_v45 = vld [vmem:[%s7835_s2 + $0xcc] sm:$0xf0] }
 0x534   :  { %v2621_v1 = vor.u32 1.1754944e-38, %v2620_v53  ;;  %vm2619_vm15 = vcmp.eq.f32.partialorder %v2618_v6, 8.507059e+37  ;;  %v4760_v53 = vld [vmem:[%s7835_s2 + $0x80] sm:$0xf]  ;;  %v5197_v60 = vld [vmem:[%s7835_s2 + $0x84] sm:$0xf] }
 0x535   :  { %v5350_v23 = vpop.eup %5349  ;;  %v4762_v6 = vld [vmem:[%s7835_s2 + $0x90] sm:$0xf0] }
 0x536   :  { %v2628_v25 = vadd.f32 1.0, %v5350_v23  ;;  %v5205_v23 = vld [vmem:[%s7835_s2 + $0xc4] sm:$0xf] }
 0x537   :  { %v5352_v51 = vpop.eup %5351 }
 0x538   :  { %v5354_v52 = vpop.eup %5353  ;;  %v2591_v27 = vmul.f32 %v5352_v51, %v2589_v36  ;;  %5355 = vrcp.f32 %v2628_v25  ;;  %vm2596_vm8 = vweird.f32 %v5352_v51  ;;  %v2640_v18 = vand.u32 2147483648, %v2628_v25  ;;  %v4810_v36 = vld [vmem:[%s7835_s2 + $0xf0] sm:$0xf0] }
 0x539   :  { %v2610_v11 = vmul.f32 %v5354_v52, %v2608_v4  ;;  %5357 = vtanh.f32 %v2584_v46  ;;  %vm2615_vm9 = vweird.f32 %v5354_v52  ;;  %vm2597_vm12 = vmor %vm2595_vm10, %vm2596_vm8  ;;  %vm2634_vm1 = vweird.f32 %v2628_v25 }
 0x53a   :  { %v2592_v54 = vsub.f32 1.0, %v2591_v27  ;;  %vm2616_vm13 = vmor %vm2614_vm11, %vm2615_vm9  ;;  %v2638_v57 = vand.u32 2147483647, %v2628_v25  ;;  %v2641_v33 = vor.u32 1.1754944e-38, %v2640_v18  ;;  %v4813_v4 = vor.u32 %v5209_v30, %v4810_v36  ;;  %v5203_v27 = vld [vmem:[%s7835_s2 + $0xac] sm:$0xf0] }
 0x53b   :  { %v2611_v26 = vsub.f32 1.0, %v2610_v11  ;;  %v5201_v11 = vld [vmem:[%s7835_s2 + $0xa4] sm:$0xf]  ;;  %v5206_v18 = vld [vmem:[%s7835_s2 + $0xcc] sm:$0xf] }
 0x53c   :  { %v2593_v63 = vmul.f32 %v5352_v51, %v2592_v54  ;;  %vm2639_vm3 = vcmp.eq.f32.partialorder %v2638_v57, 8.507059e+37  ;;  %3177 = vmatpush.bf16.msrb.mxu1 %v4813_v4  ;;  %v4802_v57 = vld [vmem:[%s7835_s2 + $0xd8] sm:$0xf0]  ;;  %v5204_v30 = vld [vmem:[%s7835_s2 + $0xb4] sm:$0xf0] }
 0x53d   :  { %v2612_v48 = vmul.f32 %v5354_v52, %v2611_v26  ;;  %v4778_v26 = vld [vmem:[%s7835_s2 + $0xb0] sm:$0xf0]  ;;  %v4785_v36 = vor.u32 %v5204_v30, %v4784_v43  ;;  %v5202_v4 = vld [vmem:[%s7835_s2 + $0xac] sm:$0xf] }
 0x53e   :  { %v5356_v40 = vpop.eup %5355  ;;  %v2594_v62 = vadd.f32 %v5352_v51, %v2593_v63  ;;  %v4781_v55 = vor.u32 %v5201_v11, %v4778_v26  ;;  %v5199_v63 = vld [vmem:[%s7835_s2 + $0x8c] sm:$0xf0]  ;;  %v5200_v11 = vld [vmem:[%s7835_s2 + $0x94] sm:$0xf0] }
 0x53f   :  { %v2613_v47 = vadd.f32 %v5354_v52, %v2612_v48  ;;  %v2630_v19 = vmul.f32 %v5356_v40, %v2628_v25  ;;  %v5358_v39 = vpop.eup %5357  ;;  %vm2635_vm0 = vweird.f32 %v5356_v40  ;;  %v4793_v25 = vor.u32 %v5207_v45, %v4792_v42  ;;  %v4786_v42 = vld [vmem:[%s7835_s2 + $0xb8] sm:$0xf0] }
 0x540   :  { %v2598_v38 = vsel %vm2597_vm12, %v5352_v51, %v2594_v62  ;;  %vm2636_vm2 = vmor %vm2634_vm1, %vm2635_vm0  ;;  %v4794_v51 = vld [vmem:[%s7835_s2 + $0xd0] sm:$0xf0]  ;;  %v4761_v48 = vor.u32 %v5199_v63, %v4760_v53  ;;  %v5212_v62 = vld [vmem:[%s7835_s2 + $0xf4] sm:$0xf0]  ;;  %v4789_v45 = vor.u32 %v5202_v4, %v4786_v42 }
 0x541   :  { %v2603_v2 = vsel %vm2600_vm14, %v2602_v10, %v2598_v38  ;;  %v2617_v3 = vsel %vm2616_vm13, %v5354_v52, %v2613_v47  ;;  %v2631_v5 = vsub.f32 1.0, %v2630_v19  ;;  %v4797_v46 = vor.u32 %v5205_v23, %v4794_v51  ;;  %3165 = vmatpush.bf16.msrb.mxu0 %v4793_v25  ;;  %v4776_v52 = vld [vmem:[%s7835_s2 + $0xa0] sm:$0xf]  ;;  %v5210_v19 = vld [vmem:[%s7835_s2 + $0xec] sm:$0xf] }
 0x542   :  { %v2622_v49 = vsel %vm2619_vm15, %v2621_v1, %v2617_v3  ;;  %v2645_v56 = vmul.f32 %v5358_v39, %v2603_v2  ;;  %v4777_v54 = vor.u32 %v5203_v27, %v4776_v52  ;;  %v4765_v10 = vor.u32 %v5197_v60, %v4762_v6  ;;  %v4818_v1 = vld [vmem:[%s7835_s2 + $0xf8] sm:$0xf0]  ;;  %v4744_v39 = vld [vmem:[%s7835_s2 + $0x60] sm:$0xf]  ;;  %v5195_v2 = vld [vmem:[%s7835_s2 + $0x6c] sm:$0xf0] }
 0x543   :  { %v2644_v7 = vmul.f32 %v2622_v49, %v7256_v61  ;;  %v2632_v20 = vmul.f32 %v5356_v40, %v2631_v5  ;;  %3178 = vmatpush.bf16.msrb.mxu1 %v4797_v46  ;;  %v4821_v38 = vor.u32 %v5210_v19, %v4818_v1  ;;  %v5193_v3 = vld [vmem:[%s7835_s2 + $0x64] sm:$0xf]  ;;  %v4745_v5 = vor.u32 %v5195_v2, %v4744_v39  ;;  %v4746_v49 = vld [vmem:[%s7835_s2 + $0x70] sm:$0xf0]  ;;  %v4712_v23 = vld [vmem:[%s7835_s2 + $0x20] sm:$0xf] }
 0x544   :  { %v5187_v25 = vld [vmem:[%s7835_s2 + $0x2c] sm:$0xf0]  ;;  %v5185_v51 = vld [vmem:[%s7835_s2 + $0x24] sm:$0xf]  ;;  %v4714_v52 = vld [vmem:[%s7835_s2 + $0x30] sm:$0xf0] }
 0x545   :  { %v7460_v32 = vadd.f32 %v2645_v56, %v2644_v7  ;;  %v2633_v16 = vadd.f32 %v5356_v40, %v2632_v20  ;;  %3166 = vmatpush.bf16.msrb.mxu0 %v4777_v54  ;;  %3203 = vmatpush.bf16.msra.mxu3 %v4821_v38  ;;  %v4800_v56 = vld [vmem:[%s7835_s2 + $0xc8] sm:$0xf]  ;;  %v5208_v7 = vld [vmem:[%s7835_s2 + $0xd4] sm:$0xf0]  ;;  %v4749_v20 = vor.u32 %v5193_v3, %v4746_v49  ;;  %v4770_v53 = vld [vmem:[%s7835_s2 + $0x98] sm:$0xf0] }
 0x546   :  { %v4713_v46 = vor.u32 %v5187_v25, %v4712_v23  ;;  %v4768_v27 = vld [vmem:[%s7835_s2 + $0x88] sm:$0xf]  ;;  %v4717_v54 = vor.u32 %v5185_v51, %v4714_v52  ;;  %v4696_v60 = vld [vmem:[%s7835_s2] sm:$0xf]  ;;  %v5181_v6 = vld [vmem:[%s7835_s2 + $0x4] sm:$0xf]  ;;  %v291_v3 = vadd.f32 %v5914_v28, %v5890_v13 }
 0x547   :  { %5359 = vtanh.f32 %v7460_v32  ;;  %v2637_v41 = vsel %vm2636_vm2, %v5356_v40, %v2633_v16  ;;  %3179 = vmatpush.bf16.msrb.mxu1 %v4781_v55  ;;  %v4816_v40 = vld [vmem:[%s7835_s2 + $0xe8] sm:$0xf]  ;;  %v4801_v16 = vor.u32 %v5208_v7, %v4800_v56  ;;  %v4769_v26 = vor.u32 %v5200_v11, %v4768_v27  ;;  %v5198_v55 = vld [vmem:[%s7835_s2 + $0x8c] sm:$0xf]  ;;  %v4754_v39 = vld [vmem:[%s7835_s2 + $0x78] sm:$0xf0] }
 0x548   :  { %v2642_v21 = vsel %vm2639_vm3, %v2641_v33, %v2637_v41  ;;  %v4817_v47 = vor.u32 %v5212_v62, %v4816_v40  ;;  %v4805_v41 = vor.u32 %v5206_v18, %v4802_v57  ;;  %v4728_v33 = vld [vmem:[%s7835_s2 + $0x40] sm:$0xf]  ;;  %v4773_v63 = vor.u32 %v5198_v55, %v4770_v53  ;;  %v4698_v62 = vld [vmem:[%s7835_s2 + $0x10] sm:$0xf0]  ;;  %v5194_v38 = vld [vmem:[%s7835_s2 + $0x6c] sm:$0xf] }
 0x549   :  { %3167 = vmatpush.bf16.msrb.mxu0 %v4761_v48  ;;  %v5183_v48 = vld [vmem:[%s7835_s2 + $0xc] sm:$0xf0]  ;;  %v4701_v19 = vor.u32 %v5181_v6, %v4698_v62  ;;  %v4757_v49 = vor.u32 %v5194_v38, %v4754_v39  ;;  %v5228_v56 = vld [vmem:[%s7837_s4 + $0x74] sm:$0xf0]  ;;  %v5227_v7 = vld [vmem:[%s7837_s4 + $0x74] sm:$0xf] }
 0x54a   :  { %3190 = vmatpush.bf16.msra.mxu2 %v4817_v47  ;;  %3204 = vmatpush.bf16.msra.mxu3 %v4805_v41  ;;  %v4697_v40 = vor.u32 %v5183_v48, %v4696_v60  ;;  %v5196_v47 = vld [vmem:[%s7835_s2 + $0x74] sm:$0xf0]  ;;  %v4883_v2 = vld [vmem:[%s7837_s4 + $0x70] sm:$0xf]  ;;  %v4736_v57 = vld [vmem:[%s7835_s2 + $0x48] sm:$0xf] }
 0x54b   :  { %3180 = vmatpush.bf16.msrb.mxu1 %v4765_v10  ;;  %v4752_v10 = vld [vmem:[%s7835_s2 + $0x68] sm:$0xf]  ;;  %v4884_v13 = vor.u32 %v5228_v56, %v4883_v2  ;;  %v5192_v41 = vld [vmem:[%s7835_s2 + $0x54] sm:$0xf0]  ;;  %v5225_v4 = vld [vmem:[%s7837_s4 + $0x64] sm:$0xf] }
 0x54c   :  { %v4753_v1 = vor.u32 %v5196_v47, %v4752_v10  ;;  %v4877_v42 = vld [vmem:[%s7837_s4 + $0x68] sm:$0xf0]  ;;  %v5188_v23 = vld [vmem:[%s7835_s2 + $0x34] sm:$0xf0]  ;;  %v4722_v52 = vld [vmem:[%s7835_s2 + $0x38] sm:$0xf0] }
 0x54d   :  { %v5360_v15 = vpop.eup %5359  ;;  %3168 = vmatpush.bf16.msrb.mxu0 %v4745_v5  ;;  %v324_v5 = vadd.f32 %v5916_v29, %v5892_v14  ;;  %v4880_v25 = vor.u32 %v5225_v4, %v4877_v42  ;;  %v4867_v27 = vld [vmem:[%s7837_s4 + $0x50] sm:$0xf]  ;;  %v4869_v55 = vld [vmem:[%s7837_s4 + $0x58] sm:$0xf0]  ;;  %v4704_v6 = vld [vmem:[%s7835_s2 + $0x8] sm:$0xf] }
 0x54e   :  { %v7463_v31 = vmul.f32 %v5360_v15, %v2642_v21  ;;  %3191 = vmatpush.bf16.msra.mxu2 %v4801_v16  ;;  %v5191_v15 = vld [vmem:[%s7835_s2 + $0x4c] sm:$0xf0]  ;;  %v5189_v21 = vld [vmem:[%s7835_s2 + $0x44] sm:$0xf]  ;;  %3205 = vmatpush.bf16.msra.mxu3 %v4789_v45  ;;  %v4720_v45 = vld [vmem:[%s7835_s2 + $0x28] sm:$0xf] }
 0x54f   :  { %3181 = vmatpush.bf16.msrb.mxu1 %v4749_v20  ;;  %v4733_v34 = vor.u32 %v5189_v21, %v4730_v44  ;;  %v4885_v20 = vld [vmem:[%s7837_s4 + $0x78] sm:$0xf0]  ;;  %v5226_v44 = vld [vmem:[%s7837_s4 + $0x64] sm:$0xf0]  ;;  %v4721_v51 = vor.u32 %v5188_v23, %v4720_v45  ;;  %v5182_v62 = vld [vmem:[%s7835_s2 + $0xc] sm:$0xf] }
 0x550   :  { %v2654_v61 = vpack.c.bf16 %v7463_v31, %v7463_v31  ;;  %v4888_v14 = vor.u32 %v5227_v7, %v4885_v20  ;;  %v4738_v21 = vld [vmem:[%s7835_s2 + $0x58] sm:$0xf0]  ;;  %v4859_v39 = vld [vmem:[%s7837_s4 + $0x40] sm:$0xf]  ;;  %v5222_v2 = vld [vmem:[%s7837_s4 + $0x44] sm:$0xf0] }
 0x551   :  { %v4706_v38 = vld [vmem:[%s7835_s2 + $0x18] sm:$0xf0]  ;;  %v4860_v56 = vor.u32 %v5222_v2, %v4859_v39  ;;  %v4835_v45 = vld [vmem:[%s7837_s4 + $0x10] sm:$0xf]  ;;  %v5216_v23 = vld [vmem:[%s7837_s4 + $0x14] sm:$0xf0] }
 0x552   :  { %2855 = vmatmul.bf16.vlgmr.msra.gmra.mxu0 %v2654_v61  ;;  %2868 = vmatmul.bf16.vlgmr.msra.gmra.mxu1 %v2654_v61 }
 0x553   :  { %2881 = vmatmul.bf16.vlgmr.msrb.gmra.mxu2 %v2654_v61  ;;  %2894 = vmatmul.bf16.vlgmr.msrb.gmra.mxu3 %v2654_v61  ;;  %v4729_v61 = vor.u32 %v5191_v15, %v4728_v33  ;;  %v5190_v33 = vld [vmem:[%s7835_s2 + $0x4c] sm:$0xf]  ;;  %v4737_v15 = vor.u32 %v5192_v41, %v4736_v57  ;;  %v5220_v57 = vld [vmem:[%s7837_s4 + $0x34] sm:$0xf0] }
 0x554   :  { %3182 = vmatpush.bf16.msrb.mxu1 %v4733_v34  ;;  %3192 = vmatpush.bf16.msra.mxu2 %v4785_v36  ;;  %v4741_v34 = vor.u32 %v5190_v33, %v4738_v21  ;;  %v5219_v33 = vld [vmem:[%s7837_s4 + $0x34] sm:$0xf] }
 0x555   :  { %3169 = vmatpush.bf16.msrb.mxu0 %v4729_v61  ;;  %3206 = vmatpush.bf16.msra.mxu3 %v4773_v63  ;;  %v4875_v61 = vld [vmem:[%s7837_s4 + $0x60] sm:$0xf] }
 0x556   :  { %v4876_v36 = vor.u32 %v5226_v44, %v4875_v61  ;;  %v4843_v61 = vld [vmem:[%s7837_s4 + $0x20] sm:$0xf]  ;;  %v5218_v44 = vld [vmem:[%s7837_s4 + $0x24] sm:$0xf0] }
 0x558   :  { %3183 = vmatpush.bf16.msrb.mxu1 %v4717_v54  ;;  %3193 = vmatpush.bf16.msra.mxu2 %v4769_v26  ;;  %v5224_v54 = vld [vmem:[%s7837_s4 + $0x54] sm:$0xf0]  ;;  %v5223_v26 = vld [vmem:[%s7837_s4 + $0x54] sm:$0xf] }
 0x559   :  { %3170 = vmatpush.bf16.msrb.mxu0 %v4713_v46  ;;  %3207 = vmatpush.bf16.msra.mxu3 %v4757_v49  ;;  %v5186_v46 = vld [vmem:[%s7835_s2 + $0x2c] sm:$0xf]  ;;  %v4868_v60 = vor.u32 %v5224_v54, %v4867_v27  ;;  %v4872_v48 = vor.u32 %v5223_v26, %v4869_v55  ;;  %v4836_v26 = vor.u32 %v5216_v23, %v4835_v45 }
 0x55a   :  { %v4725_v11 = vor.u32 %v5186_v46, %v4722_v52  ;;  %v5215_v46 = vld [vmem:[%s7837_s4 + $0x14] sm:$0xf]  ;;  %v4837_v52 = vld [vmem:[%s7837_s4 + $0x18] sm:$0xf0] }
 0x55c   :  { %3184 = vmatpush.bf16.msrb.mxu1 %v4701_v19  ;;  %3194 = vmatpush.bf16.msra.mxu2 %v4753_v1 }
 0x55d   :  { %3171 = vmatpush.bf16.msrb.mxu0 %v4697_v40  ;;  %3208 = vmatpush.bf16.msra.mxu3 %v4741_v34  ;;  %v5184_v40 = vld [vmem:[%s7835_s2 + $0x14] sm:$0xf0]  ;;  %v5217_v34 = vld [vmem:[%s7837_s4 + $0x24] sm:$0xf] }
 0x55e   :  { %v4705_v1 = vor.u32 %v5184_v40, %v4704_v6  ;;  %v5213_v6 = vld [vmem:[%s7837_s4 + $0x4] sm:$0xf]  ;;  %v4829_v40 = vld [vmem:[%s7837_s4 + $0x8] sm:$0xf0] }
 0x560   :  { %3433 = vmatpush.bf16.msra.mxu1 %v4888_v14  ;;  %3195 = vmatpush.bf16.msra.mxu2 %v4737_v15  ;;  %v4851_v14 = vld [vmem:[%s7837_s4 + $0x30] sm:$0xf]  ;;  %v4853_v15 = vld [vmem:[%s7837_s4 + $0x38] sm:$0xf0] }
 0x561   :  { %3400 = vmatpush.bf16.msra.mxu0 %v4884_v13  ;;  %3209 = vmatpush.bf16.msra.mxu3 %v4725_v11  ;;  %v4852_v41 = vor.u32 %v5220_v57, %v4851_v14  ;;  %v4856_v21 = vor.u32 %v5219_v33, %v4853_v15 }
 0x564   :  { %3434 = vmatpush.bf16.msra.mxu1 %v4880_v25  ;;  %3196 = vmatpush.bf16.msra.mxu2 %v4721_v51 }
 0x565   :  { %3401 = vmatpush.bf16.msra.mxu0 %v4876_v36  ;;  %v4845_v36 = vld [vmem:[%s7837_s4 + $0x28] sm:$0xf0] }
 0x566   :  { %v4848_v42 = vor.u32 %v5217_v34, %v4845_v36  ;;  %v3293_v36 = vpack.c.bf16 %v6437_v58, %v6229_v0 }
 0x568   :  { %3435 = vmatpush.bf16.msra.mxu1 %v4872_v48  ;;  %3197 = vmatpush.bf16.msra.mxu2 %v4705_v1 }
 0x569   :  { %3402 = vmatpush.bf16.msra.mxu0 %v4868_v60 }
 0x56d   :  { %3403 = vmatpush.bf16.msra.mxu0 %v4860_v56 }
 0x571   :  { %3404 = vmatpush.bf16.msra.mxu0 %v4852_v41 }
 0x5cf   :  { %v2856_v16 = vpop.f32.mrf.mxu0  ;;  %v2869_v18 = vpop.f32.mrf.mxu1 }
 0x5d0   :  { %v2899_v28 = vadd.f32 %v2856_v16, %v291_v3  ;;  %v2900_v29 = vadd.f32 %v2869_v18, %v324_v5  ;;  %v4709_v3 = vor.u32 %v5182_v62, %v4706_v38  ;;  %v4861_v5 = vld [vmem:[%s7837_s4 + $0x48] sm:$0xf0] }
 0x5d2   :  { %v4691_v43 = vmul.f32 -1.442695, %v2899_v28  ;;  %v4692_v30 = vmul.f32 -1.442695, %v2900_v29  ;;  %3210 = vmatpush.bf16.msra.mxu3 %v4709_v3  ;;  %v4832_v3 = vor.u32 %v5213_v6, %v4829_v40 }
 0x5d4   :  { %5361 = vpow2.f32 %v4691_v43 }
 0x5d5   :  { %5363 = vpow2.f32 %v4692_v30  ;;  %v4844_v30 = vor.u32 %v5218_v44, %v4843_v61 }
 0x5d6   :  { %v2882_v53 = vpop.f32.mrf.mxu2  ;;  %v2895_v63 = vpop.f32.mrf.mxu3 }
 0x5d7   :  { %v2902_v10 = vadd.f32 %v2895_v63, %v6032_v17  ;;  %v2858_v47 = vpop.f32.mrf.mxu0  ;;  %v2871_v19 = vpop.f32.mrf.mxu1  ;;  %v5221_v17 = vld [vmem:[%s7837_s4 + $0x44] sm:$0xf]  ;;  %v2901_v51 = vadd.f32 %v2882_v53, %v6029_v9  ;;  %3405 = vmatpush.bf16.msra.mxu0 %v4844_v30  ;;  %v4840_v9 = vor.u32 %v5215_v46, %v4837_v52  ;;  %v4827_v53 = vld [vmem:[%s7837_s4] sm:$0xf]  ;;  %v5214_v63 = vld [vmem:[%s7837_s4 + $0x4] sm:$0xf0] }
 0x5d8   :  { %v4864_v20 = vor.u32 %v5221_v17, %v4861_v5  ;;  %v4828_v38 = vor.u32 %v5214_v63, %v4827_v53 }
 0x5d9   :  { %v4693_v49 = vmul.f32 -1.442695, %v2902_v10 }
 0x5da   :  { %v5362_v7 = vpop.eup %5361  ;;  %3436 = vmatpush.bf16.msra.mxu1 %v4864_v20 }
 0x5db   :  { %v5364_v16 = vpop.eup %5363  ;;  %v7712_v18 = vadd.f32 1.0, %v5362_v7  ;;  %5365 = vpow2.f32 %v4693_v49  ;;  %3406 = vmatpush.bf16.msra.mxu0 %v4836_v26 }
 0x5dc   :  { %v7714_v13 = vadd.f32 1.0, %v5364_v16 }
 0x5dd   :  { %5367 = vrcp.f32 %v7712_v18  ;;  %v2918_v48 = vand.u32 2147483648, %v7712_v18  ;;  %v2916_v47 = vand.u32 2147483647, %v7712_v18  ;;  %vm2912_vm6 = vweird.f32 %v7712_v18 }
 0x5de   :  { %5369 = vrcp.f32 %v7714_v13  ;;  %v2884_v28 = vpop.f32.mrf.mxu2  ;;  %v2897_v29 = vpop.f32.mrf.mxu3  ;;  %3437 = vmatpush.bf16.msra.mxu1 %v4856_v21  ;;  %v2937_v62 = vand.u32 2147483648, %v7714_v13  ;;  %v2935_v1 = vand.u32 2147483647, %v7714_v13  ;;  %vm2931_vm7 = vweird.f32 %v7714_v13 }
 0x5df   :  { %v2919_v17 = vor.u32 1.1754944e-38, %v2918_v48  ;;  %vm2917_vm10 = vcmp.eq.f32.partialorder %v2916_v47, 8.507059e+37  ;;  %3407 = vmatpush.bf16.msra.mxu0 %v4828_v38 }
 0x5e0   :  { %v2938_v56 = vor.u32 1.1754944e-38, %v2937_v62  ;;  %vm2936_vm11 = vcmp.eq.f32.partialorder %v2935_v1, 8.507059e+37 }
 0x5e1   :  { %v5366_v43 = vpop.eup %5365 }
 0x5e2   :  { %v7742_v4 = vadd.f32 1.0, %v5366_v43  ;;  %3438 = vmatpush.bf16.msra.mxu1 %v4848_v42  ;;  %v3295_v42 = vpack.c.bf16 %v7259_v8, %v7053_v50 }
 0x5e3   :  { %v5368_v25 = vpop.eup %5367 }
 0x5e4   :  { %v5370_v27 = vpop.eup %5369  ;;  %v2908_v11 = vmul.f32 %v5368_v25, %v7712_v18  ;;  %5371 = vrcp.f32 %v7742_v4  ;;  %vm2913_vm4 = vweird.f32 %v5368_v25  ;;  %v2957_v15 = vand.u32 2147483648, %v7742_v4 }
 0x5e5   :  { %v2927_v54 = vmul.f32 %v5370_v27, %v7714_v13  ;;  %5373 = vtanh.f32 %v2901_v51  ;;  %vm2932_vm5 = vweird.f32 %v5370_v27  ;;  %vm2914_vm8 = vmor %vm2912_vm6, %vm2913_vm4  ;;  %vm2951_vm13 = vweird.f32 %v7742_v4 }
 0x5e6   :  { %v2909_v55 = vsub.f32 1.0, %v2908_v11  ;;  %3439 = vmatpush.bf16.msra.mxu1 %v4840_v9  ;;  %vm2933_vm9 = vmor %vm2931_vm7, %vm2932_vm5  ;;  %v2955_v21 = vand.u32 2147483647, %v7742_v4  ;;  %v2958_v44 = vor.u32 1.1754944e-38, %v2957_v15 }
 0x5e7   :  { %v2928_v60 = vsub.f32 1.0, %v2927_v54 }
 0x5e8   :  { %v2910_v10 = vmul.f32 %v5368_v25, %v2909_v55  ;;  %vm2956_vm15 = vcmp.eq.f32.partialorder %v2955_v21, 8.507059e+37 }
 0x5e9   :  { %v2929_v19 = vmul.f32 %v5370_v27, %v2928_v60 }
 0x5ea   :  { %v5372_v39 = vpop.eup %5371  ;;  %v2911_v2 = vadd.f32 %v5368_v25, %v2910_v10  ;;  %3440 = vmatpush.bf16.msra.mxu1 %v4832_v3 }
 0x5eb   :  { %v2930_v5 = vadd.f32 %v5370_v27, %v2929_v19  ;;  %v2947_v49 = vmul.f32 %v5372_v39, %v7742_v4  ;;  %v5374_v20 = vpop.eup %5373  ;;  %vm2952_vm12 = vweird.f32 %v5372_v39  ;;  %v3294_v4 = vpack.c.bf16 %v6849_v59, %v6641_v22 }
 0x5ec   :  { %v2915_v7 = vsel %vm2914_vm8, %v5368_v25, %v2911_v2  ;;  %vm2953_vm14 = vmor %vm2951_vm13, %vm2952_vm12 }
 0x5ed   :  { %v2920_v16 = vsel %vm2917_vm10, %v2919_v17, %v2915_v7  ;;  %v2934_v14 = vsel %vm2933_vm9, %v5370_v27, %v2930_v5  ;;  %v2948_v28 = vsub.f32 1.0, %v2947_v49 }
 0x5ee   :  { %v2939_v18 = vsel %vm2936_vm11, %v2938_v56, %v2934_v14  ;;  %v2962_v29 = vmul.f32 %v5374_v20, %v2920_v16 }
 0x5ef   :  { %v2961_v13 = vmul.f32 %v2939_v18, %v7460_v32  ;;  %v2949_v57 = vmul.f32 %v5372_v39, %v2948_v28 }
 0x5f1   :  { %v7780_v41 = vadd.f32 %v2962_v29, %v2961_v13  ;;  %v2950_v33 = vadd.f32 %v5372_v39, %v2949_v57 }
 0x5f3   :  { %5375 = vtanh.f32 %v7780_v41  ;;  %v2954_v61 = vsel %vm2953_vm14, %v5372_v39, %v2950_v33 }
 0x5f4   :  { %v2959_v30 = vsel %vm2956_vm15, %v2958_v44, %v2954_v61 }
 0x5f9   :  { %v5376_v43 = vpop.eup %5375 }
 0x5fa   :  { %v2965_v32 = vmul.f32 %v5376_v43, %v2959_v30 }
 0x5fc   :  { %v2971_v34 = vpack.c.bf16 %v2965_v32, %v2965_v32  ;;  %v3296_v45 = vpack.c.bf16 %v2965_v32, %v7463_v31  ;;  %v3314_v31 = vld [vmem:[%s7838_s5] sm:$0x3]  ;;  %s5420_s5 = smov [#allocation4]  }
 0x5fd   :  { %v7799_v26 = vperm.slane %v3314_v31, 0  ;;  %v7801_v55 = vperm.slane %v3314_v31, 1  ;;  %s3488_s22 = sshll.u32 %s5420_s5, 4  ;;  %s3489_s22 = int_to_ptr.vmem [resolvable:$true] %s3488_s22 }
 0x5fe   :  { %3172 = vmatmul.bf16.vlgmr.msrb.gmra.mxu0 %v2971_v34  ;;  %3185 = vmatmul.bf16.vlgmr.msrb.gmra.mxu1 %v2971_v34 }
 0x5ff   :  { %3198 = vmatmul.bf16.vlgmr.msra.gmra.mxu2 %v2971_v34  ;;  %3211 = vmatmul.bf16.vlgmr.msra.gmra.mxu3 %v2971_v34 }
 0x60e   :  { %3408 = vmatmul.bf16.vlgmr.msra.gmra.mxu0 %v3293_v36  ;;  %3441 = vmatmul.bf16.vlgmr.msra.gmra.mxu1 %v3293_v36 }
 0x61e   :  { %3413 = vmatmul.bf16.gmra.mxu0 %v3294_v4  ;;  %3446 = vmatmul.bf16.gmra.mxu1 %v3294_v4 }
 0x62e   :  { %3418 = vmatmul.bf16.gmra.mxu0 %v3295_v42  ;;  %3451 = vmatmul.bf16.gmra.mxu1 %v3295_v42 }
 0x63e   :  { %3423 = vmatmul.bf16.gmra.mxu0 %v3296_v45  ;;  %3456 = vmatmul.bf16.gmra.mxu1 %v3296_v45 }
 0x67b   :  { %v3173_v23 = vpop.f32.mrf.mxu0  ;;  %v3186_v25 = vpop.f32.mrf.mxu1 }
 0x67c   :  { %v3216_v0 = vadd.f32 %v3173_v23, %v5925_v35  ;;  %v3217_v58 = vadd.f32 %v3186_v25, %v5928_v37 }
 0x67e   :  { %v4822_v51 = vmul.f32 -1.442695, %v3216_v0  ;;  %v4823_v46 = vmul.f32 -1.442695, %v3217_v58 }
 0x680   :  { %5377 = vpow2.f32 %v4822_v51 }
 0x681   :  { %5379 = vpow2.f32 %v4823_v46 }
 0x682   :  { %v3199_v22 = vpop.f32.mrf.mxu2  ;;  %v3212_v59 = vpop.f32.mrf.mxu3 }
 0x683   :  { %v3219_v50 = vadd.f32 %v3212_v59, %v6092_v24  ;;  %v3175_v8 = vpop.f32.mrf.mxu0  ;;  %v3188_v52 = vpop.f32.mrf.mxu1  ;;  %v3218_v40 = vadd.f32 %v3199_v22, %v6087_v12 }
 0x685   :  { %v4824_v27 = vmul.f32 -1.442695, %v3219_v50 }
 0x686   :  { %v5378_v11 = vpop.eup %5377 }
 0x687   :  { %v5380_v54 = vpop.eup %5379  ;;  %v3223_v35 = vadd.f32 1.0, %v5378_v11  ;;  %5381 = vpow2.f32 %v4824_v27 }
 0x688   :  { %v3242_v37 = vadd.f32 1.0, %v5380_v54 }
 0x689   :  { %5383 = vrcp.f32 %v3223_v35  ;;  %v3233_v3 = vand.u32 2147483647, %v3223_v35  ;;  %v3235_v17 = vand.u32 2147483648, %v3223_v35  ;;  %vm3229_vm2 = vweird.f32 %v3223_v35 }
 0x68a   :  { %5385 = vrcp.f32 %v3242_v37  ;;  %v3201_v9 = vpop.f32.mrf.mxu2  ;;  %v3214_v24 = vpop.f32.mrf.mxu3  ;;  %v3254_v2 = vand.u32 2147483648, %v3242_v37  ;;  %v3252_v16 = vand.u32 2147483647, %v3242_v37  ;;  %vm3248_vm3 = vweird.f32 %v3242_v37 }
 0x68b   :  { %v3409_v53 = vpop.f32.mrf.mxu0  ;;  %v3442_v63 = vpop.f32.mrf.mxu1  ;;  %v3236_v18 = vor.u32 1.1754944e-38, %v3235_v17  ;;  %vm3234_vm6 = vcmp.eq.f32.partialorder %v3233_v3, 8.507059e+37 }
 0x68c   :  { %v3410_v60 = vadd.f32 %v3409_v53, %v7799_v26  ;;  %v3443_v48 = vadd.f32 %v3442_v63, %v7801_v55  ;;  %v3255_v33 = vor.u32 1.1754944e-38, %v3254_v2  ;;  %vm3253_vm7 = vcmp.eq.f32.partialorder %v3252_v16, 8.507059e+37 }
 0x68d   :  { %v5382_v6 = vpop.eup %5381 }
 0x68e   :  { %v7806_v62 = vadd.f32 1.0, %v5382_v6  ;;  %3466 = vst [vmem:[#allocation4] sm:$0xff] %v3410_v60 }
 0x68f   :  { %v5384_v10 = vpop.eup %5383  ;;  %3467 = vst [vmem:[#allocation4 + $0x8] sm:$0xff] %v3443_v48 }
 0x690   :  { %v5386_v47 = vpop.eup %5385  ;;  %v3225_v19 = vmul.f32 %v5384_v10, %v3223_v35  ;;  %5387 = vrcp.f32 %v7806_v62  ;;  %vm3230_vm0 = vweird.f32 %v5384_v10  ;;  %v3274_v0 = vand.u32 2147483648, %v7806_v62 }
 0x691   :  { %v3244_v1 = vmul.f32 %v5386_v47, %v3242_v37  ;;  %5389 = vtanh.f32 %v3218_v40  ;;  %vm3249_vm1 = vweird.f32 %v5386_v47  ;;  %vm3231_vm4 = vmor %vm3229_vm2, %vm3230_vm0  ;;  %vm3268_vm9 = vweird.f32 %v7806_v62 }
 0x692   :  { %v3226_v38 = vsub.f32 1.0, %v3225_v19  ;;  %vm3250_vm5 = vmor %vm3248_vm3, %vm3249_vm1  ;;  %v3272_v58 = vand.u32 2147483647, %v7806_v62  ;;  %v3275_v22 = vor.u32 1.1754944e-38, %v3274_v0 }
 0x693   :  { %v3245_v39 = vsub.f32 1.0, %v3244_v1  ;;  %v3411_v5 = vpop.f32.mrf.mxu0  ;;  %v3444_v49 = vpop.f32.mrf.mxu1 }
 0x694   :  { %v3227_v56 = vmul.f32 %v5384_v10, %v3226_v38  ;;  %v3412_v12 = vadd.f32 %v3411_v5, %v7799_v26  ;;  %v3445_v7 = vadd.f32 %v3444_v49, %v7801_v55  ;;  %vm3273_vm11 = vcmp.eq.f32.partialorder %v3272_v58, 8.507059e+37 }
 0x695   :  { %v3246_v20 = vmul.f32 %v5386_v47, %v3245_v39 }
 0x696   :  { %v5388_v14 = vpop.eup %5387  ;;  %v3228_v28 = vadd.f32 %v5384_v10, %v3227_v56  ;;  %3468 = vst [vmem:[#allocation4 + $0x10] sm:$0xff] %v3412_v12 }
 0x697   :  { %v3247_v29 = vadd.f32 %v5386_v47, %v3246_v20  ;;  %v3264_v13 = vmul.f32 %v5388_v14, %v7806_v62  ;;  %3469 = vst [vmem:[#allocation4 + $0x18] sm:$0xff] %v3445_v7  ;;  %v5390_v57 = vpop.eup %5389  ;;  %vm3269_vm8 = vweird.f32 %v5388_v14 }
 0x698   :  { %v3232_v15 = vsel %vm3231_vm4, %v5384_v10, %v3228_v28  ;;  %vm3270_vm10 = vmor %vm3268_vm9, %vm3269_vm8 }
 0x699   :  { %v3237_v21 = vsel %vm3234_vm6, %v3236_v18, %v3232_v15  ;;  %v3251_v61 = vsel %vm3250_vm5, %v5386_v47, %v3247_v29  ;;  %v3265_v44 = vsub.f32 1.0, %v3264_v13 }
 0x69a   :  { %v3256_v43 = vsel %vm3253_vm7, %v3255_v33, %v3251_v61  ;;  %v3279_v30 = vmul.f32 %v5390_v57, %v3237_v21 }
 0x69b   :  { %v3278_v32 = vmul.f32 %v3256_v43, %v7780_v41  ;;  %v3414_v34 = vpop.f32.mrf.mxu0  ;;  %v3447_v36 = vpop.f32.mrf.mxu1  ;;  %v3266_v4 = vmul.f32 %v5388_v14, %v3265_v44 }
 0x69c   :  { %v3415_v42 = vadd.f32 %v3414_v34, %v7799_v26  ;;  %v3448_v45 = vadd.f32 %v3447_v36, %v7801_v55 }
 0x69d   :  { %v3280_v23 = vadd.f32 %v3279_v30, %v3278_v32  ;;  %v3267_v25 = vadd.f32 %v5388_v14, %v3266_v4 }
 0x69e   :  { %3470 = vst [vmem:[#allocation4 + $0x20] sm:$0xff] %v3415_v42 }
 0x69f   :  { %5391 = vtanh.f32 %v3280_v23  ;;  %3471 = vst [vmem:[#allocation4 + $0x28] sm:$0xff] %v3448_v45  ;;  %v3271_v41 = vsel %vm3270_vm10, %v5388_v14, %v3267_v25 }
 0x6a0   :  { %v3276_v52 = vsel %vm3273_vm11, %v3275_v22, %v3271_v41 }
 0x6a3   :  { %v3416_v51 = vpop.f32.mrf.mxu0  ;;  %v3449_v46 = vpop.f32.mrf.mxu1 }
 0x6a4   :  { %v3417_v59 = vadd.f32 %v3416_v51, %v7799_v26  ;;  %v3450_v50 = vadd.f32 %v3449_v46, %v7801_v55 }
 0x6a5   :  { %v5392_v8 = vpop.eup %5391 }
 0x6a6   :  { %3472 = vst [vmem:[#allocation4 + $0x30] sm:$0xff] %v3417_v59  ;;  %v3282_v27 = vmul.f32 %v5392_v8, %v3276_v52 }
 0x6a7   :  { %3473 = vst [vmem:[#allocation4 + $0x38] sm:$0xff] %v3450_v50 }
 0x6a8   :  { %v3297_v31 = vpack.c.bf16 %v3282_v27, %v3282_v27 }
 0x6aa   :  { %3428 = vmatmul.bf16.gmra.mxu0 %v3297_v31  ;;  %3461 = vmatmul.bf16.gmra.mxu1 %v3297_v31 }
 0x6ab   :  { %v3419_v11 = vpop.f32.mrf.mxu0  ;;  %v3452_v54 = vpop.f32.mrf.mxu1 }
 0x6ac   :  { %v3420_v35 = vadd.f32 %v3419_v11, %v7799_v26  ;;  %v3453_v37 = vadd.f32 %v3452_v54, %v7801_v55 }
 0x6ae   :  { %3474 = vst [vmem:[#allocation4 + $0x40] sm:$0xff] %v3420_v35 }
 0x6af   :  { %3475 = vst [vmem:[#allocation4 + $0x48] sm:$0xff] %v3453_v37 }
 0x6b3   :  { %v3421_v9 = vpop.f32.mrf.mxu0  ;;  %v3454_v24 = vpop.f32.mrf.mxu1 }
 0x6b4   :  { %v3422_v53 = vadd.f32 %v3421_v9, %v7799_v26  ;;  %v3455_v63 = vadd.f32 %v3454_v24, %v7801_v55 }
 0x6b6   :  { %3476 = vst [vmem:[#allocation4 + $0x50] sm:$0xff] %v3422_v53 }
 0x6b7   :  { %3477 = vst [vmem:[#allocation4 + $0x58] sm:$0xff] %v3455_v63 }
 0x6bb   :  { %v3424_v60 = vpop.f32.mrf.mxu0  ;;  %v3457_v48 = vpop.f32.mrf.mxu1 }
 0x6bc   :  { %v3425_v6 = vadd.f32 %v3424_v60, %v7799_v26  ;;  %v3458_v40 = vadd.f32 %v3457_v48, %v7801_v55 }
 0x6be   :  { %3478 = vst [vmem:[#allocation4 + $0x60] sm:$0xff] %v3425_v6 }
 0x6bf   :  { %3479 = vst [vmem:[#allocation4 + $0x68] sm:$0xff] %v3458_v40 }
 0x6c3   :  { %v3426_v62 = vpop.f32.mrf.mxu0  ;;  %v3459_v10 = vpop.f32.mrf.mxu1 }
 0x6c4   :  { %v3427_v47 = vadd.f32 %v3426_v62, %v7799_v26  ;;  %v3460_v19 = vadd.f32 %v3459_v10, %v7801_v55 }
 0x6c6   :  { %3480 = vst [vmem:[#allocation4 + $0x70] sm:$0xff] %v3427_v47 }
 0x6c7   :  { %3481 = vst [vmem:[#allocation4 + $0x78] sm:$0xff] %v3460_v19 }
 0x727   :  { %v3429_v1 = vpop.f32.mrf.mxu0  ;;  %v3462_v38 = vpop.f32.mrf.mxu1 }
 0x728   :  { %v3430_v39 = vadd.f32 %v3429_v1, %v7799_v26  ;;  %v3463_v2 = vadd.f32 %v3462_v38, %v7801_v55 }
 0x72a   :  { %3482 = vst [vmem:[#allocation4 + $0x80] sm:$0xff] %v3430_v39 }
 0x72b   :  { %3483 = vst [vmem:[#allocation4 + $0x88] sm:$0xff] %v3463_v2 }
 0x72c   :  { %3496 = dma.vmem_to_hbm [thread:$0]  %s3489_s22, 2304, %s3491_s25, [#allocation5], %s5421_s26, %s5421_s26, %s5422_s27  }
 0x72f   :  { %v3431_v3 = vpop.f32.mrf.mxu0  ;;  %v3464_v17 = vpop.f32.mrf.mxu1 }
 0x730   :  { %5417 = dma.done.wait [#allocation5], 2304  }
 0x731   :  { %5418 = vsyncadd [#allocation5], 4294964992 }
 0x732   :  { %3501 = vsyncpa [#allocation5], 1 }

</bundles_post_ra>
